<compile_context>
chip_gen: v7x
topology: tpu7x:2x2x1
jax: 0.10.0
libtpu: 0.0.40
codegen_flags: <defaults>
</compile_context>

<pallas_src>
import math
import functools

import jax
import jax.numpy as jnp
from jax.experimental import pallas as pl
from jax.experimental.pallas import tpu as pltpu

PAD_IDX = 1
NEG = jnp.float32(-1e30)  # stand-in for -inf in additive attention masks
LN_EPS = 1e-5


# ----------------------------------------------------------------------------
# In-kernel helpers (traced inside Pallas kernels, operate on VMEM values)
# ----------------------------------------------------------------------------
def _ln(x, g, b, eps=LN_EPS):
    mu = jnp.mean(x, axis=-1, keepdims=True)
    d = x - mu
    var = jnp.mean(d * d, axis=-1, keepdims=True)
    return d * jax.lax.rsqrt(var + eps) * g + b


def _softmax_rows(s):
    s = s - jnp.max(s, axis=-1, keepdims=True)
    p = jnp.exp(s)
    denom = jnp.sum(p, axis=-1, keepdims=True)
    return p * pl.reciprocal(denom, approx=True)


def _mha_proj(q, k, v, mask, wo_t, bo, nhead):
    """Multi-head attention + output projection, accumulated per head.

    q: (Tq, E) (Q already carries the 1/sqrt(Dh) scale, folded into the weights),
    k, v: (Tk, E), mask: (Tq, Tk) or (1, Tk) additive f32, wo_t: (E, E), bo: (1, E).
    concat_h(attn_h) @ Wo == sum_h attn_h @ Wo[h*Dh:(h+1)*Dh, :]  (avoids concat/transpose).
    """
    _, E = q.shape
    Dh = E // nhead
    acc = None
    for h in range(nhead):
        sl = slice(h * Dh, (h + 1) * Dh)
        s = jax.lax.dot_general(q[:, sl], k[:, sl], (((1,), (1,)), ((), ())),
                                preferred_element_type=jnp.float32)
        p = _softmax_rows(s + mask)
        oh = jnp.dot(p, v[:, sl], preferred_element_type=jnp.float32)
        contrib = jnp.dot(oh, wo_t[sl, :], preferred_element_type=jnp.float32)
        acc = contrib if acc is None else acc + contrib
    return acc + bo


# ----------------------------------------------------------------------------
# Fused encoder layer kernel (one pallas_call per layer, grid over batch)
# ----------------------------------------------------------------------------
def _enc_layer_kernel(x_ref, mask_ref,
                      wqkv_ref, bqkv_ref, wo_ref, bo_ref,
                      ln1_g_ref, ln1_b_ref,
                      w1_ref, fb1_ref, w2_ref, fb2_ref,
                      ln2_g_ref, ln2_b_ref,
                      o_ref, *, nhead, emb):
    x = x_ref[0]            # (S, E)
    mask = mask_ref[0]      # (1, S) additive key-padding bias, broadcasts over queries

    qkv = jnp.dot(x, wqkv_ref[...], preferred_element_type=jnp.float32) + bqkv_ref[...]
    a = _mha_proj(qkv[:, :emb], qkv[:, emb:2 * emb], qkv[:, 2 * emb:],
                  mask, wo_ref[...], bo_ref[...], nhead)
    y = _ln(x + a, ln1_g_ref[...], ln1_b_ref[...])

    h = jnp.maximum(
        jnp.dot(y, w1_ref[...], preferred_element_type=jnp.float32) + fb1_ref[...], 0.0)
    f = jnp.dot(h, w2_ref[...], preferred_element_type=jnp.float32) + fb2_ref[...]
    o_ref[0] = _ln(y + f, ln2_g_ref[...], ln2_b_ref[...])


def encoder_layer_call(p, x, src_kpm, nhead):
    B, S, E = x.shape
    FF = p["w1_t"].shape[1]
    kern = functools.partial(_enc_layer_kernel, nhead=nhead, emb=E)
    row = lambda b: (0, 0)
    act = lambda b: (b, 0, 0)
    return pl.pallas_call(
        kern,
        out_shape=jax.ShapeDtypeStruct((B, S, E), jnp.float32),
        grid=(B,),
        in_specs=[
            pl.BlockSpec((1, S, E), act),
            pl.BlockSpec((1, 1, S), act),
            pl.BlockSpec((E, 3 * E), row), pl.BlockSpec((1, 3 * E), row),
            pl.BlockSpec((E, E), row), pl.BlockSpec((1, E), row),
            pl.BlockSpec((1, E), row), pl.BlockSpec((1, E), row),
            pl.BlockSpec((E, FF), row), pl.BlockSpec((1, FF), row),
            pl.BlockSpec((FF, E), row), pl.BlockSpec((1, E), row),
            pl.BlockSpec((1, E), row), pl.BlockSpec((1, E), row),
        ],
        out_specs=pl.BlockSpec((1, S, E), act),
        compiler_params=pltpu.CompilerParams(dimension_semantics=("parallel",)),
    )(x, src_kpm,
      p["wqkv_t"], p["bqkv"], p["wo_t"], p["bo"],
      p["ln1_g"], p["ln1_b"],
      p["w1_t"], p["b1"], p["w2_t"], p["b2"],
      p["ln2_g"], p["ln2_b"])


# ----------------------------------------------------------------------------
# Fused decoder layer kernel (self-attn + cross-attn + FFN in one pallas_call)
# ----------------------------------------------------------------------------
def _dec_layer_kernel(x_ref, mem_ref, tmask_ref, mmask_ref,
                      sa_wqkv_ref, sa_bqkv_ref, sa_wo_ref, sa_bo_ref,
                      ln1_g_ref, ln1_b_ref,
                      ca_wq_ref, ca_bq_ref, ca_wkv_ref, ca_bkv_ref,
                      ca_wo_ref, ca_bo_ref,
                      ln2_g_ref, ln2_b_ref,
                      w1_ref, fb1_ref, w2_ref, fb2_ref,
                      ln3_g_ref, ln3_b_ref,
                      o_ref, *, nhead, emb):
    x = x_ref[0]           # (Tt, E)
    mem = mem_ref[0]       # (Ss, E)
    tmask = tmask_ref[0]   # (Tt, Tt) causal + tgt key padding
    mmask = mmask_ref[0]   # (1, Ss)  memory key padding, broadcasts over queries

    # masked self-attention + add & norm
    qkv = jnp.dot(x, sa_wqkv_ref[...], preferred_element_type=jnp.float32) + sa_bqkv_ref[...]
    a = _mha_proj(qkv[:, :emb], qkv[:, emb:2 * emb], qkv[:, 2 * emb:],
                  tmask, sa_wo_ref[...], sa_bo_ref[...], nhead)
    y = _ln(x + a, ln1_g_ref[...], ln1_b_ref[...])

    # cross-attention + add & norm
    q = jnp.dot(y, ca_wq_ref[...], preferred_element_type=jnp.float32) + ca_bq_ref[...]
    kv = jnp.dot(mem, ca_wkv_ref[...], preferred_element_type=jnp.float32) + ca_bkv_ref[...]
    c = _mha_proj(q, kv[:, :emb], kv[:, emb:],
                  mmask, ca_wo_ref[...], ca_bo_ref[...], nhead)
    z = _ln(y + c, ln2_g_ref[...], ln2_b_ref[...])

    # feed-forward + add & norm
    h = jnp.maximum(
        jnp.dot(z, w1_ref[...], preferred_element_type=jnp.float32) + fb1_ref[...], 0.0)
    f = jnp.dot(h, w2_ref[...], preferred_element_type=jnp.float32) + fb2_ref[...]
    o_ref[0] = _ln(z + f, ln3_g_ref[...], ln3_b_ref[...])


def decoder_layer_call(p, x, memory, tgt_mask, mem_kpm, nhead):
    B, Tt, E = x.shape
    Ss = memory.shape[1]
    FF = p["w1_t"].shape[1]
    kern = functools.partial(_dec_layer_kernel, nhead=nhead, emb=E)
    row = lambda b: (0, 0)
    act = lambda b: (b, 0, 0)
    return pl.pallas_call(
        kern,
        out_shape=jax.ShapeDtypeStruct((B, Tt, E), jnp.float32),
        grid=(B,),
        in_specs=[
            pl.BlockSpec((1, Tt, E), act),
            pl.BlockSpec((1, Ss, E), act),
            pl.BlockSpec((1, Tt, Tt), act),
            pl.BlockSpec((1, 1, Ss), act),
            pl.BlockSpec((E, 3 * E), row), pl.BlockSpec((1, 3 * E), row),
            pl.BlockSpec((E, E), row), pl.BlockSpec((1, E), row),
            pl.BlockSpec((1, E), row), pl.BlockSpec((1, E), row),
            pl.BlockSpec((E, E), row), pl.BlockSpec((1, E), row),
            pl.BlockSpec((E, 2 * E), row), pl.BlockSpec((1, 2 * E), row),
            pl.BlockSpec((E, E), row), pl.BlockSpec((1, E), row),
            pl.BlockSpec((1, E), row), pl.BlockSpec((1, E), row),
            pl.BlockSpec((E, FF), row), pl.BlockSpec((1, FF), row),
            pl.BlockSpec((FF, E), row), pl.BlockSpec((1, E), row),
            pl.BlockSpec((1, E), row), pl.BlockSpec((1, E), row),
        ],
        out_specs=pl.BlockSpec((1, Tt, E), act),
        compiler_params=pltpu.CompilerParams(dimension_semantics=("parallel",)),
    )(x, memory, tgt_mask, mem_kpm,
      p["sa_wqkv_t"], p["sa_bqkv"], p["sa_wo_t"], p["sa_bo"],
      p["ln1_g"], p["ln1_b"],
      p["ca_wq_t"], p["ca_bq"], p["ca_wkv_t"], p["ca_bkv"], p["ca_wo_t"], p["ca_bo"],
      p["ln2_g"], p["ln2_b"],
      p["w1_t"], p["b1"], p["w2_t"], p["b2"],
      p["ln3_g"], p["ln3_b"])


# ----------------------------------------------------------------------------
# Final LayerNorm kernel and fused LayerNorm + generator kernel
# ----------------------------------------------------------------------------
def _ln_kernel(x_ref, g_ref, b_ref, o_ref):
    o_ref[...] = _ln(x_ref[...], g_ref[...], b_ref[...])


def pallas_layernorm(x2d, g, b):
    M, E = x2d.shape
    return pl.pallas_call(
        _ln_kernel,
        out_shape=jax.ShapeDtypeStruct((M, E), jnp.float32),
        grid=(1,),
        in_specs=[pl.BlockSpec((M, E), lambda i: (0, 0)),
                  pl.BlockSpec((1, E), lambda i: (0, 0)),
                  pl.BlockSpec((1, E), lambda i: (0, 0))],
        out_specs=pl.BlockSpec((M, E), lambda i: (0, 0)),
    )(x2d, g, b)


def _ln_linear_kernel(x_ref, g_ref, b_ref, w_ref, bias_ref, o_ref):
    y = _ln(x_ref[...], g_ref[...], b_ref[...])
    o_ref[...] = jnp.dot(y, w_ref[...], preferred_element_type=jnp.float32) + bias_ref[...]


def pallas_ln_linear(x2d, g, b, w_t, bias):
    # TODO(synk): at realistic vocab sizes tile this over an (M, N, K) grid with a VMEM
    # accumulator (grid=(1,) full-block is only valid at this demo scale).
    M, E = x2d.shape
    V = w_t.shape[1]
    return pl.pallas_call(
        _ln_linear_kernel,
        out_shape=jax.ShapeDtypeStruct((M, V), jnp.float32),
        grid=(1,),
        in_specs=[pl.BlockSpec((M, E), lambda i: (0, 0)),
                  pl.BlockSpec((1, E), lambda i: (0, 0)),
                  pl.BlockSpec((1, E), lambda i: (0, 0)),
                  pl.BlockSpec((E, V), lambda i: (0, 0)),
                  pl.BlockSpec((1, V), lambda i: (0, 0))],
        out_specs=pl.BlockSpec((M, V), lambda i: (0, 0)),
    )(x2d, g, b, w_t, bias)


# ----------------------------------------------------------------------------
# Masks (additive, per batch — NOT broadcast over heads) and embeddings
# ----------------------------------------------------------------------------
def build_masks(src, tgt):
    """Replicates Seq2SeqTransformer._create_mask as additive float biases."""
    B, Ss = src.shape
    Tt = tgt.shape[1]
    src_kpm = jnp.where(src == PAD_IDX, NEG, jnp.float32(0.0)).reshape(B, 1, Ss)
    tgt_kpm = jnp.where(tgt == PAD_IDX, NEG, jnp.float32(0.0)).reshape(B, 1, Tt)
    causal = jnp.where(jnp.triu(jnp.ones((Tt, Tt), jnp.float32), k=1) > 0,
                       NEG, jnp.float32(0.0))
    tgt_mask = causal[None, :, :] + tgt_kpm        # (B, Tt, Tt)
    return src_kpm, tgt_mask, src_kpm              # mem key-padding == src key-padding


def embed(tokens, table, pe, emb_size):
    # TokenEmbedding (* sqrt(E)) + PositionalEncoding — trivial elementwise glue in JAX.
    S = tokens.shape[1]
    return jnp.take(table, tokens, axis=0) * math.sqrt(emb_size) + pe[:S][None]


# ----------------------------------------------------------------------------
# Full forward
# ----------------------------------------------------------------------------
def seq2seq_forward(params, src_tokens, tgt_tokens, cfg):
    E, H = cfg["emb_size"], cfg["nhead"]
    B, Tt = tgt_tokens.shape
    Ss = src_tokens.shape[1]
    src_kpm, tgt_mask, mem_kpm = build_masks(src_tokens, tgt_tokens)

    src_emb = embed(src_tokens, params["src_emb"], params["pe"], E)
    tgt_emb = embed(tgt_tokens, params["tgt_emb"], params["pe"], E)

    # encoder stack + final encoder LayerNorm (nn.Transformer default)
    x = src_emb
    for lp in params["enc_layers"]:
        x = encoder_layer_call(lp, x, src_kpm, H)
    memory = pallas_layernorm(x.reshape(B * Ss, E),
                              params["enc_norm_g"], params["enc_norm_b"]).reshape(B, Ss, E)

    # decoder stack + final decoder LayerNorm fused with the generator linear
    y = tgt_emb
    for lp in params["dec_layers"]:
        y = decoder_layer_call(lp, y, memory, tgt_mask, mem_kpm, H)

    V = params["gen_w_t"].shape[1]
    logits = pallas_ln_linear(y.reshape(B * Tt, E),
                              params["dec_norm_g"], params["dec_norm_b"],
                              params["gen_w_t"], params["gen_b"])
    return logits.reshape(B, Tt, V)


# ----------------------------------------------------------------------------
# Deterministic parameter init (shapes mirror the PyTorch module).
# Weights are stored PRE-TRANSPOSED (in_dim, out_dim); the 1/sqrt(Dh) attention
# scale is folded into the Q projection (exactly equivalent, since it is linear).
# ----------------------------------------------------------------------------
def _dense_t(key, in_dim, out_dim, scale=0.05):
    kw, kb = jax.random.split(key)
    w = jax.random.normal(kw, (out_dim, in_dim), jnp.float32) * scale
    b = jax.random.normal(kb, (out_dim,), jnp.float32) * 0.01
    return w.T, b            # (in_dim, out_dim), (out_dim,)


def _ln_pair(E):
    return jnp.ones((1, E), jnp.float32), jnp.zeros((1, E), jnp.float32)


def _self_attn_params(key, E, H, prefix=""):
    scale = 1.0 / math.sqrt(E // H)
    k1, k2 = jax.random.split(key)
    w_in_t, b_in = _dense_t(k1, E, 3 * E)
    w_out_t, b_out = _dense_t(k2, E, E)
    w_in_t = w_in_t.at[:, :E].multiply(scale)     # fold attention scale into Q proj
    b_in = b_in.at[:E].multiply(scale)
    return {prefix + "wqkv_t": w_in_t, prefix + "bqkv": b_in.reshape(1, 3 * E),
            prefix + "wo_t": w_out_t, prefix + "bo": b_out.reshape(1, E)}


def _cross_attn_params(key, E, H):
    scale = 1.0 / math.sqrt(E // H)
    k1, k2 = jax.random.split(key)
    w_in_t, b_in = _dense_t(k1, E, 3 * E)
    w_out_t, b_out = _dense_t(k2, E, E)
    return {"ca_wq_t": w_in_t[:, :E] * scale, "ca_bq": (b_in[:E] * scale).reshape(1, E),
            "ca_wkv_t": w_in_t[:, E:], "ca_bkv": b_in[E:].reshape(1, 2 * E),
            "ca_wo_t": w_out_t, "ca_bo": b_out.reshape(1, E)}


def _ffn_params(key, E, FF):
    k1, k2 = jax.random.split(key)
    w1_t, b1 = _dense_t(k1, E, FF)
    w2_t, b2 = _dense_t(k2, FF, E)
    return {"w1_t": w1_t, "b1": b1.reshape(1, FF),
            "w2_t": w2_t, "b2": b2.reshape(1, E)}


def sinusoidal_pe(maxlen, emb_size):
    den = jnp.exp(-jnp.arange(0, emb_size, 2, dtype=jnp.float32)
                  * (math.log(10000.0) / emb_size))
    pos = jnp.arange(maxlen, dtype=jnp.float32)[:, None]
    pe = jnp.zeros((maxlen, emb_size), jnp.float32)
    pe = pe.at[:, 0::2].set(jnp.sin(pos * den))
    pe = pe.at[:, 1::2].set(jnp.cos(pos * den))
    return pe


def init_params(key, cfg):
    E, FF, H = cfg["emb_size"], cfg["dim_feedforward"], cfg["nhead"]
    keys = jax.random.split(key, 8)

    enc_layers = []
    for lk in jax.random.split(keys[0], cfg["num_encoder_layers"]):
        ka, kf = jax.random.split(lk)
        p = _self_attn_params(ka, E, H)
        p.update(_ffn_params(kf, E, FF))
        p["ln1_g"], p["ln1_b"] = _ln_pair(E)
        p["ln2_g"], p["ln2_b"] = _ln_pair(E)
        enc_layers.append(p)

    dec_layers = []
    for lk in jax.random.split(keys[1], cfg["num_decoder_layers"]):
        ka, kc, kf = jax.random.split(lk, 3)
        p = _self_attn_params(ka, E, H, prefix="sa_")
        p.update(_cross_attn_params(kc, E, H))
        p.update(_ffn_params(kf, E, FF))
        p["ln1_g"], p["ln1_b"] = _ln_pair(E)
        p["ln2_g"], p["ln2_b"] = _ln_pair(E)
        p["ln3_g"], p["ln3_b"] = _ln_pair(E)
        dec_layers.append(p)

    gen_w_t, gen_b = _dense_t(keys[2], E, cfg["tgt_vocab_size"])
    enc_g, enc_b = _ln_pair(E)
    dec_g, dec_b = _ln_pair(E)
    return {
        "src_emb": jax.random.normal(keys[3], (cfg["src_vocab_size"], E), jnp.float32) * 0.1,
        "tgt_emb": jax.random.normal(keys[4], (cfg["tgt_vocab_size"], E), jnp.float32) * 0.1,
        "pe": sinusoidal_pe(128, E),
        "enc_layers": enc_layers,
        "dec_layers": dec_layers,
        "enc_norm_g": enc_g, "enc_norm_b": enc_b,
        "dec_norm_g": dec_g, "dec_norm_b": dec_b,
        "gen_w_t": gen_w_t, "gen_b": gen_b.reshape(1, cfg["tgt_vocab_size"]),
    }


# ----------------------------------------------------------------------------
if __name__ == "__main__":
    cfg = dict(emb_size=32, nhead=4, num_encoder_layers=2, num_decoder_layers=2,
               dim_feedforward=64, dropout=0.0,
               src_vocab_size=48, tgt_vocab_size=56)

    key = jax.random.PRNGKey(0)
    kp, ks, kt = jax.random.split(key, 3)
    params = init_params(kp, cfg)

    B, S_src, S_tgt = 2, 12, 8
    src = jax.random.randint(ks, (B, S_src), 4, cfg["src_vocab_size"], dtype=jnp.int32)
    tgt = jax.random.randint(kt, (B, S_tgt), 4, cfg["tgt_vocab_size"], dtype=jnp.int32)
    # introduce a few PAD tokens so padding masks are exercised
    src = src.at[:, -2:].set(PAD_IDX)
    tgt = tgt.at[0, -1].set(PAD_IDX)

    fwd = jax.jit(functools.partial(seq2seq_forward, cfg=cfg))
    logits = fwd(params, src, tgt)
    jax.block_until_ready(logits)

    assert logits.shape == (B, S_tgt, cfg["tgt_vocab_size"]), logits.shape
    assert bool(jnp.all(jnp.isfinite(logits)))
    print("KERNEL_OK")
</pallas_src>

<mosaic_0001>
module attributes {stable_mosaic.version = 11 : i64} {
  func.func @_ln_kernel(%arg0: i32, %arg1: memref<24x32xf32, #tpu.memory_space<vmem>>, %arg2: memref<1x32xf32, #tpu.memory_space<vmem>>, %arg3: memref<1x32xf32, #tpu.memory_space<vmem>>, %arg4: memref<24x32xf32, #tpu.memory_space<vmem>>) attributes {dimension_semantics = [#tpu.dimension_semantics<arbitrary>], iteration_bounds = array<i64: 1>, scalar_prefetch = 0 : i64, scratch_operands = 0 : i64, tpu.core_type = #tpu.core_type<tc>, window_params = [{pipeline_mode = #tpu.pipeline_mode<synchronous>, transform_indices = @transform_0, window_bounds = array<i64: 24, 32>}, {pipeline_mode = #tpu.pipeline_mode<synchronous>, transform_indices = @transform_1, window_bounds = array<i64: 1, 32>}, {pipeline_mode = #tpu.pipeline_mode<synchronous>, transform_indices = @transform_2, window_bounds = array<i64: 1, 32>}, {pipeline_mode = #tpu.pipeline_mode<synchronous>, transform_indices = @transform_3, window_bounds = array<i64: 24, 32>}]} {
    %c0 = arith.constant 0 : index
    %c0_0 = arith.constant 0 : index
    %0 = vector.load %arg1[%c0, %c0_0] : memref<24x32xf32, #tpu.memory_space<vmem>>, vector<24x32xf32>
    %c0_1 = arith.constant 0 : index
    %c0_2 = arith.constant 0 : index
    %1 = vector.load %arg2[%c0_1, %c0_2] : memref<1x32xf32, #tpu.memory_space<vmem>>, vector<1x32xf32>
    %c0_3 = arith.constant 0 : index
    %c0_4 = arith.constant 0 : index
    %2 = vector.load %arg3[%c0_3, %c0_4] : memref<1x32xf32, #tpu.memory_space<vmem>>, vector<1x32xf32>
    %cst = arith.constant dense<0.000000e+00> : vector<24xf32>
    %3 = vector.multi_reduction <add>, %0, %cst [1] : vector<24x32xf32> to vector<24xf32>
    %4 = vector.shape_cast %3 : vector<24xf32> to vector<24x1xf32>
    %cst_5 = arith.constant 3.200000e+01 : f32
    %5 = vector.broadcast %cst_5 : f32 to vector<24x1xf32>
    %6 = arith.divf %4, %5 : vector<24x1xf32>
    %7 = vector.broadcast %6 : vector<24x1xf32> to vector<24x32xf32>
    %8 = arith.subf %0, %7 : vector<24x32xf32>
    %9 = arith.mulf %8, %8 : vector<24x32xf32>
    %cst_6 = arith.constant dense<0.000000e+00> : vector<24xf32>
    %10 = vector.multi_reduction <add>, %9, %cst_6 [1] : vector<24x32xf32> to vector<24xf32>
    %11 = vector.shape_cast %10 : vector<24xf32> to vector<24x1xf32>
    %cst_7 = arith.constant 3.200000e+01 : f32
    %12 = vector.broadcast %cst_7 : f32 to vector<24x1xf32>
    %13 = arith.divf %11, %12 : vector<24x1xf32>
    %cst_8 = arith.constant 9.99999974E-6 : f32
    %14 = vector.broadcast %cst_8 : f32 to vector<24x1xf32>
    %15 = arith.addf %13, %14 : vector<24x1xf32>
    %16 = math.rsqrt %15 : vector<24x1xf32>
    %17 = vector.broadcast %16 : vector<24x1xf32> to vector<24x32xf32>
    %18 = arith.mulf %8, %17 : vector<24x32xf32>
    %19 = vector.broadcast %1 : vector<1x32xf32> to vector<24x32xf32>
    %20 = arith.mulf %18, %19 : vector<24x32xf32>
    %21 = vector.broadcast %2 : vector<1x32xf32> to vector<24x32xf32>
    %22 = arith.addf %20, %21 : vector<24x32xf32>
    %c0_9 = arith.constant 0 : index
    %c0_10 = arith.constant 0 : index
    %23 = vector.load %arg4[%c0_9, %c0_10] : memref<24x32xf32, #tpu.memory_space<vmem>>, vector<24x32xf32>
    tpu.vector_store %arg4[%c0_9, %c0_10], %22 {strides = array<i32>} : memref<24x32xf32, #tpu.memory_space<vmem>>, vector<24x32xf32>,
    return
  }
  func.func @transform_0(%arg0: i32) -> (i32, i32) {
    %c0_i32 = arith.constant 0 : i32
    %c0_i32_0 = arith.constant 0 : i32
    %c0_i32_1 = arith.constant 0 : i32
    return %c0_i32, %c0_i32_0 : i32, i32
  }
  func.func @transform_1(%arg0: i32) -> (i32, i32) {
    %c0_i32 = arith.constant 0 : i32
    %c0_i32_0 = arith.constant 0 : i32
    %c0_i32_1 = arith.constant 0 : i32
    return %c0_i32, %c0_i32_0 : i32, i32
  }
  func.func @transform_2(%arg0: i32) -> (i32, i32) {
    %c0_i32 = arith.constant 0 : i32
    %c0_i32_0 = arith.constant 0 : i32
    %c0_i32_1 = arith.constant 0 : i32
    return %c0_i32, %c0_i32_0 : i32, i32
  }
  func.func @transform_3(%arg0: i32) -> (i32, i32) {
    %c0_i32 = arith.constant 0 : i32
    %c0_i32_0 = arith.constant 0 : i32
    %c0_i32_1 = arith.constant 0 : i32
    return %c0_i32, %c0_i32_0 : i32, i32
  }
}

module attributes {stable_mosaic.version = 11 : i64} {
  func.func @_enc_layer_kernel(%arg0: i32, %arg1: memref<1x12x32xf32, #tpu.memory_space<vmem>>, %arg2: memref<1x1x12xf32, #tpu.memory_space<vmem>>, %arg3: memref<32x96xf32, #tpu.memory_space<vmem>>, %arg4: memref<1x96xf32, #tpu.memory_space<vmem>>, %arg5: memref<32x32xf32, #tpu.memory_space<vmem>>, %arg6: memref<1x32xf32, #tpu.memory_space<vmem>>, %arg7: memref<1x32xf32, #tpu.memory_space<vmem>>, %arg8: memref<1x32xf32, #tpu.memory_space<vmem>>, %arg9: memref<32x64xf32, #tpu.memory_space<vmem>>, %arg10: memref<1x64xf32, #tpu.memory_space<vmem>>, %arg11: memref<64x32xf32, #tpu.memory_space<vmem>>, %arg12: memref<1x32xf32, #tpu.memory_space<vmem>>, %arg13: memref<1x32xf32, #tpu.memory_space<vmem>>, %arg14: memref<1x32xf32, #tpu.memory_space<vmem>>, %arg15: memref<1x12x32xf32, #tpu.memory_space<vmem>>) attributes {dimension_semantics = [#tpu.dimension_semantics<parallel>], iteration_bounds = array<i64: 2>, scalar_prefetch = 0 : i64, scratch_operands = 0 : i64, tpu.core_type = #tpu.core_type<tc>, window_params = [{transform_indices = @transform_0, window_bounds = array<i64: 1, 12, 32>}, {transform_indices = @transform_1, window_bounds = array<i64: 1, 1, 12>}, {pipeline_mode = #tpu.pipeline_mode<synchronous>, transform_indices = @transform_2, window_bounds = array<i64: 32, 96>}, {pipeline_mode = #tpu.pipeline_mode<synchronous>, transform_indices = @transform_3, window_bounds = array<i64: 1, 96>}, {pipeline_mode = #tpu.pipeline_mode<synchronous>, transform_indices = @transform_4, window_bounds = array<i64: 32, 32>}, {pipeline_mode = #tpu.pipeline_mode<synchronous>, transform_indices = @transform_5, window_bounds = array<i64: 1, 32>}, {pipeline_mode = #tpu.pipeline_mode<synchronous>, transform_indices = @transform_6, window_bounds = array<i64: 1, 32>}, {pipeline_mode = #tpu.pipeline_mode<synchronous>, transform_indices = @transform_7, window_bounds = array<i64: 1, 32>}, {pipeline_mode = #tpu.pipeline_mode<synchronous>, transform_indices = @transform_8, window_bounds = array<i64: 32, 64>}, {pipeline_mode = #tpu.pipeline_mode<synchronous>, transform_indices = @transform_9, window_bounds = array<i64: 1, 64>}, {pipeline_mode = #tpu.pipeline_mode<synchronous>, transform_indices = @transform_10, window_bounds = array<i64: 64, 32>}, {pipeline_mode = #tpu.pipeline_mode<synchronous>, transform_indices = @transform_11, window_bounds = array<i64: 1, 32>}, {pipeline_mode = #tpu.pipeline_mode<synchronous>, transform_indices = @transform_12, window_bounds = array<i64: 1, 32>}, {pipeline_mode = #tpu.pipeline_mode<synchronous>, transform_indices = @transform_13, window_bounds = array<i64: 1, 32>}, {transform_indices = @transform_14, window_bounds = array<i64: 1, 12, 32>}]} {
    %c0 = arith.constant 0 : index
    %c0_0 = arith.constant 0 : index
    %c0_1 = arith.constant 0 : index
    %0 = vector.load %arg1[%c0, %c0_0, %c0_1] : memref<1x12x32xf32, #tpu.memory_space<vmem>>, vector<1x12x32xf32>
    %1 = vector.shape_cast %0 : vector<1x12x32xf32> to vector<12x32xf32>
    %c0_2 = arith.constant 0 : index
    %c0_3 = arith.constant 0 : index
    %c0_4 = arith.constant 0 : index
    %2 = vector.load %arg2[%c0_2, %c0_3, %c0_4] : memref<1x1x12xf32, #tpu.memory_space<vmem>>, vector<1x1x12xf32>
    %3 = vector.shape_cast %2 : vector<1x1x12xf32> to vector<1x12xf32>
    %c0_5 = arith.constant 0 : index
    %c0_6 = arith.constant 0 : index
    %4 = vector.load %arg3[%c0_5, %c0_6] : memref<32x96xf32, #tpu.memory_space<vmem>>, vector<32x96xf32>
    %cst = arith.constant dense<0.000000e+00> : vector<12x96xf32>
    %5 = tpu.matmul %1, %4, %cst {dimension_numbers = #tpu.dot_dimension_numbers<[1], [0], [0], [1], [0, 0, 1, 1], [], []>} : vector<12x32xf32>, vector<32x96xf32>, vector<12x96xf32> -> vector<12x96xf32>
    %c0_7 = arith.constant 0 : index
    %c0_8 = arith.constant 0 : index
    %6 = vector.load %arg4[%c0_7, %c0_8] : memref<1x96xf32, #tpu.memory_space<vmem>>, vector<1x96xf32>
    %7 = vector.broadcast %6 : vector<1x96xf32> to vector<12x96xf32>
    %8 = arith.addf %5, %7 : vector<12x96xf32>
    %9 = vector.extract_strided_slice %8 {offsets = [0, 0], sizes = [12, 32], strides = [1, 1]} : vector<12x96xf32> to vector<12x32xf32>
    %10 = vector.extract_strided_slice %8 {offsets = [0, 32], sizes = [12, 32], strides = [1, 1]} : vector<12x96xf32> to vector<12x32xf32>
    %11 = vector.extract_strided_slice %8 {offsets = [0, 64], sizes = [12, 32], strides = [1, 1]} : vector<12x96xf32> to vector<12x32xf32>
    %c0_9 = arith.constant 0 : index
    %c0_10 = arith.constant 0 : index
    %12 = vector.load %arg5[%c0_9, %c0_10] : memref<32x32xf32, #tpu.memory_space<vmem>>, vector<32x32xf32>
    %c0_11 = arith.constant 0 : index
    %c0_12 = arith.constant 0 : index
    %13 = vector.load %arg6[%c0_11, %c0_12] : memref<1x32xf32, #tpu.memory_space<vmem>>, vector<1x32xf32>
    %14 = vector.extract_strided_slice %9 {offsets = [0, 0], sizes = [12, 8], strides = [1, 1]} : vector<12x32xf32> to vector<12x8xf32>
    %15 = vector.extract_strided_slice %10 {offsets = [0, 0], sizes = [12, 8], strides = [1, 1]} : vector<12x32xf32> to vector<12x8xf32>
    %cst_13 = arith.constant dense<0.000000e+00> : vector<12x12xf32>
    %16 = tpu.matmul %14, %15, %cst_13 {dimension_numbers = #tpu.dot_dimension_numbers<[1], [1], [0], [0], [0, 0, 1, 0], [], []>} : vector<12x8xf32>, vector<12x8xf32>, vector<12x12xf32> -> vector<12x12xf32>
    %17 = vector.broadcast %3 : vector<1x12xf32> to vector<12x12xf32>
    %18 = arith.addf %16, %17 : vector<12x12xf32>
    %cst_14 = arith.constant dense<0xFF800000> : vector<12xf32>
    %19 = vector.multi_reduction <maximumf>, %18, %cst_14 [1] : vector<12x12xf32> to vector<12xf32>
    %20 = vector.shape_cast %19 : vector<12xf32> to vector<12x1xf32>
    %21 = vector.broadcast %20 : vector<12x1xf32> to vector<12x12xf32>
    %22 = arith.subf %18, %21 : vector<12x12xf32>
    %23 = math.exp %22 : vector<12x12xf32>
    %cst_15 = arith.constant dense<0.000000e+00> : vector<12xf32>
    %24 = vector.multi_reduction <add>, %23, %cst_15 [1] : vector<12x12xf32> to vector<12xf32>
    %25 = vector.shape_cast %24 : vector<12xf32> to vector<12x1xf32>
    %26 = tpu.reciprocal %25 {approx = true} : vector<12x1xf32> -> vector<12x1xf32>
    %27 = vector.broadcast %26 : vector<12x1xf32> to vector<12x12xf32>
    %28 = arith.mulf %23, %27 : vector<12x12xf32>
    %29 = vector.extract_strided_slice %11 {offsets = [0, 0], sizes = [12, 8], strides = [1, 1]} : vector<12x32xf32> to vector<12x8xf32>
    %cst_16 = arith.constant dense<0.000000e+00> : vector<12x8xf32>
    %30 = tpu.matmul %28, %29, %cst_16 {dimension_numbers = #tpu.dot_dimension_numbers<[1], [0], [0], [1], [0, 0, 1, 1], [], []>} : vector<12x12xf32>, vector<12x8xf32>, vector<12x8xf32> -> vector<12x8xf32>
    %31 = vector.extract_strided_slice %12 {offsets = [0, 0], sizes = [8, 32], strides = [1, 1]} : vector<32x32xf32> to vector<8x32xf32>
    %cst_17 = arith.constant dense<0.000000e+00> : vector<12x32xf32>
    %32 = tpu.matmul %30, %31, %cst_17 {dimension_numbers = #tpu.dot_dimension_numbers<[1], [0], [0], [1], [0, 0, 1, 1], [], []>} : vector<12x8xf32>, vector<8x32xf32>, vector<12x32xf32> -> vector<12x32xf32>
    %33 = vector.extract_strided_slice %9 {offsets = [0, 8], sizes = [12, 8], strides = [1, 1]} : vector<12x32xf32> to vector<12x8xf32>
    %34 = vector.extract_strided_slice %10 {offsets = [0, 8], sizes = [12, 8], strides = [1, 1]} : vector<12x32xf32> to vector<12x8xf32>
    %cst_18 = arith.constant dense<0.000000e+00> : vector<12x12xf32>
    %35 = tpu.matmul %33, %34, %cst_18 {dimension_numbers = #tpu.dot_dimension_numbers<[1], [1], [0], [0], [0, 0, 1, 0], [], []>} : vector<12x8xf32>, vector<12x8xf32>, vector<12x12xf32> -> vector<12x12xf32>
    %36 = vector.broadcast %3 : vector<1x12xf32> to vector<12x12xf32>
    %37 = arith.addf %35, %36 : vector<12x12xf32>
    %cst_19 = arith.constant dense<0xFF800000> : vector<12xf32>
    %38 = vector.multi_reduction <maximumf>, %37, %cst_19 [1] : vector<12x12xf32> to vector<12xf32>
    %39 = vector.shape_cast %38 : vector<12xf32> to vector<12x1xf32>
    %40 = vector.broadcast %39 : vector<12x1xf32> to vector<12x12xf32>
    %41 = arith.subf %37, %40 : vector<12x12xf32>
    %42 = math.exp %41 : vector<12x12xf32>
    %cst_20 = arith.constant dense<0.000000e+00> : vector<12xf32>
    %43 = vector.multi_reduction <add>, %42, %cst_20 [1] : vector<12x12xf32> to vector<12xf32>
    %44 = vector.shape_cast %43 : vector<12xf32> to vector<12x1xf32>
    %45 = tpu.reciprocal %44 {approx = true} : vector<12x1xf32> -> vector<12x1xf32>
    %46 = vector.broadcast %45 : vector<12x1xf32> to vector<12x12xf32>
    %47 = arith.mulf %42, %46 : vector<12x12xf32>
    %48 = vector.extract_strided_slice %11 {offsets = [0, 8], sizes = [12, 8], strides = [1, 1]} : vector<12x32xf32> to vector<12x8xf32>
    %cst_21 = arith.constant dense<0.000000e+00> : vector<12x8xf32>
    %49 = tpu.matmul %47, %48, %cst_21 {dimension_numbers = #tpu.dot_dimension_numbers<[1], [0], [0], [1], [0, 0, 1, 1], [], []>} : vector<12x12xf32>, vector<12x8xf32>, vector<12x8xf32> -> vector<12x8xf32>
    %50 = vector.extract_strided_slice %12 {offsets = [8, 0], sizes = [8, 32], strides = [1, 1]} : vector<32x32xf32> to vector<8x32xf32>
    %cst_22 = arith.constant dense<0.000000e+00> : vector<12x32xf32>
    %51 = tpu.matmul %49, %50, %cst_22 {dimension_numbers = #tpu.dot_dimension_numbers<[1], [0], [0], [1], [0, 0, 1, 1], [], []>} : vector<12x8xf32>, vector<8x32xf32>, vector<12x32xf32> -> vector<12x32xf32>
    %52 = arith.addf %32, %51 : vector<12x32xf32>
    %53 = vector.extract_strided_slice %9 {offsets = [0, 16], sizes = [12, 8], strides = [1, 1]} : vector<12x32xf32> to vector<12x8xf32>
    %54 = vector.extract_strided_slice %10 {offsets = [0, 16], sizes = [12, 8], strides = [1, 1]} : vector<12x32xf32> to vector<12x8xf32>
    %cst_23 = arith.constant dense<0.000000e+00> : vector<12x12xf32>
    %55 = tpu.matmul %53, %54, %cst_23 {dimension_numbers = #tpu.dot_dimension_numbers<[1], [1], [0], [0], [0, 0, 1, 0], [], []>} : vector<12x8xf32>, vector<12x8xf32>, vector<12x12xf32> -> vector<12x12xf32>
    %56 = vector.broadcast %3 : vector<1x12xf32> to vector<12x12xf32>
    %57 = arith.addf %55, %56 : vector<12x12xf32>
    %cst_24 = arith.constant dense<0xFF800000> : vector<12xf32>
    %58 = vector.multi_reduction <maximumf>, %57, %cst_24 [1] : vector<12x12xf32> to vector<12xf32>
    %59 = vector.shape_cast %58 : vector<12xf32> to vector<12x1xf32>
    %60 = vector.broadcast %59 : vector<12x1xf32> to vector<12x12xf32>
    %61 = arith.subf %57, %60 : vector<12x12xf32>
    %62 = math.exp %61 : vector<12x12xf32>
    %cst_25 = arith.constant dense<0.000000e+00> : vector<12xf32>
    %63 = vector.multi_reduction <add>, %62, %cst_25 [1] : vector<12x12xf32> to vector<12xf32>
    %64 = vector.shape_cast %63 : vector<12xf32> to vector<12x1xf32>
    %65 = tpu.reciprocal %64 {approx = true} : vector<12x1xf32> -> vector<12x1xf32>
    %66 = vector.broadcast %65 : vector<12x1xf32> to vector<12x12xf32>
    %67 = arith.mulf %62, %66 : vector<12x12xf32>
    %68 = vector.extract_strided_slice %11 {offsets = [0, 16], sizes = [12, 8], strides = [1, 1]} : vector<12x32xf32> to vector<12x8xf32>
    %cst_26 = arith.constant dense<0.000000e+00> : vector<12x8xf32>
    %69 = tpu.matmul %67, %68, %cst_26 {dimension_numbers = #tpu.dot_dimension_numbers<[1], [0], [0], [1], [0, 0, 1, 1], [], []>} : vector<12x12xf32>, vector<12x8xf32>, vector<12x8xf32> -> vector<12x8xf32>
    %70 = vector.extract_strided_slice %12 {offsets = [16, 0], sizes = [8, 32], strides = [1, 1]} : vector<32x32xf32> to vector<8x32xf32>
    %cst_27 = arith.constant dense<0.000000e+00> : vector<12x32xf32>
    %71 = tpu.matmul %69, %70, %cst_27 {dimension_numbers = #tpu.dot_dimension_numbers<[1], [0], [0], [1], [0, 0, 1, 1], [], []>} : vector<12x8xf32>, vector<8x32xf32>, vector<12x32xf32> -> vector<12x32xf32>
    %72 = arith.addf %52, %71 : vector<12x32xf32>
    %73 = vector.extract_strided_slice %9 {offsets = [0, 24], sizes = [12, 8], strides = [1, 1]} : vector<12x32xf32> to vector<12x8xf32>
    %74 = vector.extract_strided_slice %10 {offsets = [0, 24], sizes = [12, 8], strides = [1, 1]} : vector<12x32xf32> to vector<12x8xf32>
    %cst_28 = arith.constant dense<0.000000e+00> : vector<12x12xf32>
    %75 = tpu.matmul %73, %74, %cst_28 {dimension_numbers = #tpu.dot_dimension_numbers<[1], [1], [0], [0], [0, 0, 1, 0], [], []>} : vector<12x8xf32>, vector<12x8xf32>, vector<12x12xf32> -> vector<12x12xf32>
    %76 = vector.broadcast %3 : vector<1x12xf32> to vector<12x12xf32>
    %77 = arith.addf %75, %76 : vector<12x12xf32>
    %cst_29 = arith.constant dense<0xFF800000> : vector<12xf32>
    %78 = vector.multi_reduction <maximumf>, %77, %cst_29 [1] : vector<12x12xf32> to vector<12xf32>
    %79 = vector.shape_cast %78 : vector<12xf32> to vector<12x1xf32>
    %80 = vector.broadcast %79 : vector<12x1xf32> to vector<12x12xf32>
    %81 = arith.subf %77, %80 : vector<12x12xf32>
    %82 = math.exp %81 : vector<12x12xf32>
    %cst_30 = arith.constant dense<0.000000e+00> : vector<12xf32>
    %83 = vector.multi_reduction <add>, %82, %cst_30 [1] : vector<12x12xf32> to vector<12xf32>
    %84 = vector.shape_cast %83 : vector<12xf32> to vector<12x1xf32>
    %85 = tpu.reciprocal %84 {approx = true} : vector<12x1xf32> -> vector<12x1xf32>
    %86 = vector.broadcast %85 : vector<12x1xf32> to vector<12x12xf32>
    %87 = arith.mulf %82, %86 : vector<12x12xf32>
    %88 = vector.extract_strided_slice %11 {offsets = [0, 24], sizes = [12, 8], strides = [1, 1]} : vector<12x32xf32> to vector<12x8xf32>
    %cst_31 = arith.constant dense<0.000000e+00> : vector<12x8xf32>
    %89 = tpu.matmul %87, %88, %cst_31 {dimension_numbers = #tpu.dot_dimension_numbers<[1], [0], [0], [1], [0, 0, 1, 1], [], []>} : vector<12x12xf32>, vector<12x8xf32>, vector<12x8xf32> -> vector<12x8xf32>
    %90 = vector.extract_strided_slice %12 {offsets = [24, 0], sizes = [8, 32], strides = [1, 1]} : vector<32x32xf32> to vector<8x32xf32>
    %cst_32 = arith.constant dense<0.000000e+00> : vector<12x32xf32>
    %91 = tpu.matmul %89, %90, %cst_32 {dimension_numbers = #tpu.dot_dimension_numbers<[1], [0], [0], [1], [0, 0, 1, 1], [], []>} : vector<12x8xf32>, vector<8x32xf32>, vector<12x32xf32> -> vector<12x32xf32>
    %92 = arith.addf %72, %91 : vector<12x32xf32>
    %93 = vector.broadcast %13 : vector<1x32xf32> to vector<12x32xf32>
    %94 = arith.addf %92, %93 : vector<12x32xf32>
    %95 = arith.addf %1, %94 : vector<12x32xf32>
    %c0_33 = arith.constant 0 : index
    %c0_34 = arith.constant 0 : index
    %96 = vector.load %arg7[%c0_33, %c0_34] : memref<1x32xf32, #tpu.memory_space<vmem>>, vector<1x32xf32>
    %c0_35 = arith.constant 0 : index
    %c0_36 = arith.constant 0 : index
    %97 = vector.load %arg8[%c0_35, %c0_36] : memref<1x32xf32, #tpu.memory_space<vmem>>, vector<1x32xf32>
    %cst_37 = arith.constant dense<0.000000e+00> : vector<12xf32>
    %98 = vector.multi_reduction <add>, %95, %cst_37 [1] : vector<12x32xf32> to vector<12xf32>
    %99 = vector.shape_cast %98 : vector<12xf32> to vector<12x1xf32>
    %cst_38 = arith.constant 3.200000e+01 : f32
    %100 = vector.broadcast %cst_38 : f32 to vector<12x1xf32>
    %101 = arith.divf %99, %100 : vector<12x1xf32>
    %102 = vector.broadcast %101 : vector<12x1xf32> to vector<12x32xf32>
    %103 = arith.subf %95, %102 : vector<12x32xf32>
    %104 = arith.mulf %103, %103 : vector<12x32xf32>
    %cst_39 = arith.constant dense<0.000000e+00> : vector<12xf32>
    %105 = vector.multi_reduction <add>, %104, %cst_39 [1] : vector<12x32xf32> to vector<12xf32>
    %106 = vector.shape_cast %105 : vector<12xf32> to vector<12x1xf32>
    %cst_40 = arith.constant 3.200000e+01 : f32
    %107 = vector.broadcast %cst_40 : f32 to vector<12x1xf32>
    %108 = arith.divf %106, %107 : vector<12x1xf32>
    %cst_41 = arith.constant 9.99999974E-6 : f32
    %109 = vector.broadcast %cst_41 : f32 to vector<12x1xf32>
    %110 = arith.addf %108, %109 : vector<12x1xf32>
    %111 = math.rsqrt %110 : vector<12x1xf32>
    %112 = vector.broadcast %111 : vector<12x1xf32> to vector<12x32xf32>
    %113 = arith.mulf %103, %112 : vector<12x32xf32>
    %114 = vector.broadcast %96 : vector<1x32xf32> to vector<12x32xf32>
    %115 = arith.mulf %113, %114 : vector<12x32xf32>
    %116 = vector.broadcast %97 : vector<1x32xf32> to vector<12x32xf32>
    %117 = arith.addf %115, %116 : vector<12x32xf32>
    %c0_42 = arith.constant 0 : index
    %c0_43 = arith.constant 0 : index
    %118 = vector.load %arg9[%c0_42, %c0_43] : memref<32x64xf32, #tpu.memory_space<vmem>>, vector<32x64xf32>
    %cst_44 = arith.constant dense<0.000000e+00> : vector<12x64xf32>
    %119 = tpu.matmul %117, %118, %cst_44 {dimension_numbers = #tpu.dot_dimension_numbers<[1], [0], [0], [1], [0, 0, 1, 1], [], []>} : vector<12x32xf32>, vector<32x64xf32>, vector<12x64xf32> -> vector<12x64xf32>
    %c0_45 = arith.constant 0 : index
    %c0_46 = arith.constant 0 : index
    %120 = vector.load %arg10[%c0_45, %c0_46] : memref<1x64xf32, #tpu.memory_space<vmem>>, vector<1x64xf32>
    %121 = vector.broadcast %120 : vector<1x64xf32> to vector<12x64xf32>
    %122 = arith.addf %119, %121 : vector<12x64xf32>
    %cst_47 = arith.constant 0.000000e+00 : f32
    %123 = vector.broadcast %cst_47 : f32 to vector<12x64xf32>
    %124 = arith.maximumf %122, %123 : vector<12x64xf32>
    %c0_48 = arith.constant 0 : index
    %c0_49 = arith.constant 0 : index
    %125 = vector.load %arg11[%c0_48, %c0_49] : memref<64x32xf32, #tpu.memory_space<vmem>>, vector<64x32xf32>
    %cst_50 = arith.constant dense<0.000000e+00> : vector<12x32xf32>
    %126 = tpu.matmul %124, %125, %cst_50 {dimension_numbers = #tpu.dot_dimension_numbers<[1], [0], [0], [1], [0, 0, 1, 1], [], []>} : vector<12x64xf32>, vector<64x32xf32>, vector<12x32xf32> -> vector<12x32xf32>
    %c0_51 = arith.constant 0 : index
    %c0_52 = arith.constant 0 : index
    %127 = vector.load %arg12[%c0_51, %c0_52] : memref<1x32xf32, #tpu.memory_space<vmem>>, vector<1x32xf32>
    %128 = vector.broadcast %127 : vector<1x32xf32> to vector<12x32xf32>
    %129 = arith.addf %126, %128 : vector<12x32xf32>
    %130 = arith.addf %117, %129 : vector<12x32xf32>
    %c0_53 = arith.constant 0 : index
    %c0_54 = arith.constant 0 : index
    %131 = vector.load %arg13[%c0_53, %c0_54] : memref<1x32xf32, #tpu.memory_space<vmem>>, vector<1x32xf32>
    %c0_55 = arith.constant 0 : index
    %c0_56 = arith.constant 0 : index
    %132 = vector.load %arg14[%c0_55, %c0_56] : memref<1x32xf32, #tpu.memory_space<vmem>>, vector<1x32xf32>
    %cst_57 = arith.constant dense<0.000000e+00> : vector<12xf32>
    %133 = vector.multi_reduction <add>, %130, %cst_57 [1] : vector<12x32xf32> to vector<12xf32>
    %134 = vector.shape_cast %133 : vector<12xf32> to vector<12x1xf32>
    %cst_58 = arith.constant 3.200000e+01 : f32
    %135 = vector.broadcast %cst_58 : f32 to vector<12x1xf32>
    %136 = arith.divf %134, %135 : vector<12x1xf32>
    %137 = vector.broadcast %136 : vector<12x1xf32> to vector<12x32xf32>
    %138 = arith.subf %130, %137 : vector<12x32xf32>
    %139 = arith.mulf %138, %138 : vector<12x32xf32>
    %cst_59 = arith.constant dense<0.000000e+00> : vector<12xf32>
    %140 = vector.multi_reduction <add>, %139, %cst_59 [1] : vector<12x32xf32> to vector<12xf32>
    %141 = vector.shape_cast %140 : vector<12xf32> to vector<12x1xf32>
    %cst_60 = arith.constant 3.200000e+01 : f32
    %142 = vector.broadcast %cst_60 : f32 to vector<12x1xf32>
    %143 = arith.divf %141, %142 : vector<12x1xf32>
    %cst_61 = arith.constant 9.99999974E-6 : f32
    %144 = vector.broadcast %cst_61 : f32 to vector<12x1xf32>
    %145 = arith.addf %143, %144 : vector<12x1xf32>
    %146 = math.rsqrt %145 : vector<12x1xf32>
    %147 = vector.broadcast %146 : vector<12x1xf32> to vector<12x32xf32>
    %148 = arith.mulf %138, %147 : vector<12x32xf32>
    %149 = vector.broadcast %131 : vector<1x32xf32> to vector<12x32xf32>
    %150 = arith.mulf %148, %149 : vector<12x32xf32>
    %151 = vector.broadcast %132 : vector<1x32xf32> to vector<12x32xf32>
    %152 = arith.addf %150, %151 : vector<12x32xf32>
    %c0_62 = arith.constant 0 : index
    %c0_63 = arith.constant 0 : index
    %c0_64 = arith.constant 0 : index
    %153 = vector.load %arg15[%c0_62, %c0_63, %c0_64] : memref<1x12x32xf32, #tpu.memory_space<vmem>>, vector<1x12x32xf32>
    %154 = vector.shape_cast %153 : vector<1x12x32xf32> to vector<12x32xf32>
    %155 = vector.shape_cast %152 : vector<12x32xf32> to vector<1x12x32xf32>
    tpu.vector_store %arg15[%c0_62, %c0_63, %c0_64], %155 {strides = array<i32>} : memref<1x12x32xf32, #tpu.memory_space<vmem>>, vector<1x12x32xf32>,
    return
  }
  func.func @transform_0(%arg0: i32) -> (i32, i32, i32) {
    %c0_i32 = arith.constant 0 : i32
    %c0_i32_0 = arith.constant 0 : i32
    %c0_i32_1 = arith.constant 0 : i32
    return %arg0, %c0_i32, %c0_i32_0 : i32, i32, i32
  }
  func.func @transform_1(%arg0: i32) -> (i32, i32, i32) {
    %c0_i32 = arith.constant 0 : i32
    %c0_i32_0 = arith.constant 0 : i32
    %c0_i32_1 = arith.constant 0 : i32
    return %arg0, %c0_i32, %c0_i32_0 : i32, i32, i32
  }
  func.func @transform_2(%arg0: i32) -> (i32, i32) {
    %c0_i32 = arith.constant 0 : i32
    %c0_i32_0 = arith.constant 0 : i32
    %c0_i32_1 = arith.constant 0 : i32
    return %c0_i32, %c0_i32_0 : i32, i32
  }
  func.func @transform_3(%arg0: i32) -> (i32, i32) {
    %c0_i32 = arith.constant 0 : i32
    %c0_i32_0 = arith.constant 0 : i32
    %c0_i32_1 = arith.constant 0 : i32
    return %c0_i32, %c0_i32_0 : i32, i32
  }
  func.func @transform_4(%arg0: i32) -> (i32, i32) {
    %c0_i32 = arith.constant 0 : i32
    %c0_i32_0 = arith.constant 0 : i32
    %c0_i32_1 = arith.constant 0 : i32
    return %c0_i32, %c0_i32_0 : i32, i32
  }
  func.func @transform_5(%arg0: i32) -> (i32, i32) {
    %c0_i32 = arith.constant 0 : i32
    %c0_i32_0 = arith.constant 0 : i32
    %c0_i32_1 = arith.constant 0 : i32
    return %c0_i32, %c0_i32_0 : i32, i32
  }
  func.func @transform_6(%arg0: i32) -> (i32, i32) {
    %c0_i32 = arith.constant 0 : i32
    %c0_i32_0 = arith.constant 0 : i32
    %c0_i32_1 = arith.constant 0 : i32
    return %c0_i32, %c0_i32_0 : i32, i32
  }
  func.func @transform_7(%arg0: i32) -> (i32, i32) {
    %c0_i32 = arith.constant 0 : i32
    %c0_i32_0 = arith.constant 0 : i32
    %c0_i32_1 = arith.constant 0 : i32
    return %c0_i32, %c0_i32_0 : i32, i32
  }
  func.func @transform_8(%arg0: i32) -> (i32, i32) {
    %c0_i32 = arith.constant 0 : i32
    %c0_i32_0 = arith.constant 0 : i32
    %c0_i32_1 = arith.constant 0 : i32
    return %c0_i32, %c0_i32_0 : i32, i32
  }
  func.func @transform_9(%arg0: i32) -> (i32, i32) {
    %c0_i32 = arith.constant 0 : i32
    %c0_i32_0 = arith.constant 0 : i32
    %c0_i32_1 = arith.constant 0 : i32
    return %c0_i32, %c0_i32_0 : i32, i32
  }
  func.func @transform_10(%arg0: i32) -> (i32, i32) {
    %c0_i32 = arith.constant 0 : i32
    %c0_i32_0 = arith.constant 0 : i32
    %c0_i32_1 = arith.constant 0 : i32
    return %c0_i32, %c0_i32_0 : i32, i32
  }
  func.func @transform_11(%arg0: i32) -> (i32, i32) {
    %c0_i32 = arith.constant 0 : i32
    %c0_i32_0 = arith.constant 0 : i32
    %c0_i32_1 = arith.constant 0 : i32
    return %c0_i32, %c0_i32_0 : i32, i32
  }
  func.func @transform_12(%arg0: i32) -> (i32, i32) {
    %c0_i32 = arith.constant 0 : i32
    %c0_i32_0 = arith.constant 0 : i32
    %c0_i32_1 = arith.constant 0 : i32
    return %c0_i32, %c0_i32_0 : i32, i32
  }
  func.func @transform_13(%arg0: i32) -> (i32, i32) {
    %c0_i32 = arith.constant 0 : i32
    %c0_i32_0 = arith.constant 0 : i32
    %c0_i32_1 = arith.constant 0 : i32
    return %c0_i32, %c0_i32_0 : i32, i32
  }
  func.func @transform_14(%arg0: i32) -> (i32, i32, i32) {
    %c0_i32 = arith.constant 0 : i32
    %c0_i32_0 = arith.constant 0 : i32
    %c0_i32_1 = arith.constant 0 : i32
    return %arg0, %c0_i32, %c0_i32_0 : i32, i32, i32
  }
}

module attributes {stable_mosaic.version = 11 : i64} {
  func.func @_dec_layer_kernel(%arg0: i32, %arg1: memref<1x8x32xf32, #tpu.memory_space<vmem>>, %arg2: memref<1x12x32xf32, #tpu.memory_space<vmem>>, %arg3: memref<1x8x8xf32, #tpu.memory_space<vmem>>, %arg4: memref<1x1x12xf32, #tpu.memory_space<vmem>>, %arg5: memref<32x96xf32, #tpu.memory_space<vmem>>, %arg6: memref<1x96xf32, #tpu.memory_space<vmem>>, %arg7: memref<32x32xf32, #tpu.memory_space<vmem>>, %arg8: memref<1x32xf32, #tpu.memory_space<vmem>>, %arg9: memref<1x32xf32, #tpu.memory_space<vmem>>, %arg10: memref<1x32xf32, #tpu.memory_space<vmem>>, %arg11: memref<32x32xf32, #tpu.memory_space<vmem>>, %arg12: memref<1x32xf32, #tpu.memory_space<vmem>>, %arg13: memref<32x64xf32, #tpu.memory_space<vmem>>, %arg14: memref<1x64xf32, #tpu.memory_space<vmem>>, %arg15: memref<32x32xf32, #tpu.memory_space<vmem>>, %arg16: memref<1x32xf32, #tpu.memory_space<vmem>>, %arg17: memref<1x32xf32, #tpu.memory_space<vmem>>, %arg18: memref<1x32xf32, #tpu.memory_space<vmem>>, %arg19: memref<32x64xf32, #tpu.memory_space<vmem>>, %arg20: memref<1x64xf32, #tpu.memory_space<vmem>>, %arg21: memref<64x32xf32, #tpu.memory_space<vmem>>, %arg22: memref<1x32xf32, #tpu.memory_space<vmem>>, %arg23: memref<1x32xf32, #tpu.memory_space<vmem>>, %arg24: memref<1x32xf32, #tpu.memory_space<vmem>>, %arg25: memref<1x8x32xf32, #tpu.memory_space<vmem>>) attributes {dimension_semantics = [#tpu.dimension_semantics<parallel>], iteration_bounds = array<i64: 2>, scalar_prefetch = 0 : i64, scratch_operands = 0 : i64, tpu.core_type = #tpu.core_type<tc>, window_params = [{transform_indices = @transform_0, window_bounds = array<i64: 1, 8, 32>}, {transform_indices = @transform_1, window_bounds = array<i64: 1, 12, 32>}, {transform_indices = @transform_2, window_bounds = array<i64: 1, 8, 8>}, {transform_indices = @transform_3, window_bounds = array<i64: 1, 1, 12>}, {pipeline_mode = #tpu.pipeline_mode<synchronous>, transform_indices = @transform_4, window_bounds = array<i64: 32, 96>}, {pipeline_mode = #tpu.pipeline_mode<synchronous>, transform_indices = @transform_5, window_bounds = array<i64: 1, 96>}, {pipeline_mode = #tpu.pipeline_mode<synchronous>, transform_indices = @transform_6, window_bounds = array<i64: 32, 32>}, {pipeline_mode = #tpu.pipeline_mode<synchronous>, transform_indices = @transform_7, window_bounds = array<i64: 1, 32>}, {pipeline_mode = #tpu.pipeline_mode<synchronous>, transform_indices = @transform_8, window_bounds = array<i64: 1, 32>}, {pipeline_mode = #tpu.pipeline_mode<synchronous>, transform_indices = @transform_9, window_bounds = array<i64: 1, 32>}, {pipeline_mode = #tpu.pipeline_mode<synchronous>, transform_indices = @transform_10, window_bounds = array<i64: 32, 32>}, {pipeline_mode = #tpu.pipeline_mode<synchronous>, transform_indices = @transform_11, window_bounds = array<i64: 1, 32>}, {pipeline_mode = #tpu.pipeline_mode<synchronous>, transform_indices = @transform_12, window_bounds = array<i64: 32, 64>}, {pipeline_mode = #tpu.pipeline_mode<synchronous>, transform_indices = @transform_13, window_bounds = array<i64: 1, 64>}, {pipeline_mode = #tpu.pipeline_mode<synchronous>, transform_indices = @transform_14, window_bounds = array<i64: 32, 32>}, {pipeline_mode = #tpu.pipeline_mode<synchronous>, transform_indices = @transform_15, window_bounds = array<i64: 1, 32>}, {pipeline_mode = #tpu.pipeline_mode<synchronous>, transform_indices = @transform_16, window_bounds = array<i64: 1, 32>}, {pipeline_mode = #tpu.pipeline_mode<synchronous>, transform_indices = @transform_17, window_bounds = array<i64: 1, 32>}, {pipeline_mode = #tpu.pipeline_mode<synchronous>, transform_indices = @transform_18, window_bounds = array<i64: 32, 64>}, {pipeline_mode = #tpu.pipeline_mode<synchronous>, transform_indices = @transform_19, window_bounds = array<i64: 1, 64>}, {pipeline_mode = #tpu.pipeline_mode<synchronous>, transform_indices = @transform_20, window_bounds = array<i64: 64, 32>}, {pipeline_mode = #tpu.pipeline_mode<synchronous>, transform_indices = @transform_21, window_bounds = array<i64: 1, 32>}, {pipeline_mode = #tpu.pipeline_mode<synchronous>, transform_indices = @transform_22, window_bounds = array<i64: 1, 32>}, {pipeline_mode = #tpu.pipeline_mode<synchronous>, transform_indices = @transform_23, window_bounds = array<i64: 1, 32>}, {transform_indices = @transform_24, window_bounds = array<i64: 1, 8, 32>}]} {
    %c0 = arith.constant 0 : index
    %c0_0 = arith.constant 0 : index
    %c0_1 = arith.constant 0 : index
    %0 = vector.load %arg1[%c0, %c0_0, %c0_1] : memref<1x8x32xf32, #tpu.memory_space<vmem>>, vector<1x8x32xf32>
    %1 = vector.shape_cast %0 : vector<1x8x32xf32> to vector<8x32xf32>
    %c0_2 = arith.constant 0 : index
    %c0_3 = arith.constant 0 : index
    %c0_4 = arith.constant 0 : index
    %2 = vector.load %arg2[%c0_2, %c0_3, %c0_4] : memref<1x12x32xf32, #tpu.memory_space<vmem>>, vector<1x12x32xf32>
    %3 = vector.shape_cast %2 : vector<1x12x32xf32> to vector<12x32xf32>
    %c0_5 = arith.constant 0 : index
    %c0_6 = arith.constant 0 : index
    %c0_7 = arith.constant 0 : index
    %4 = vector.load %arg3[%c0_5, %c0_6, %c0_7] : memref<1x8x8xf32, #tpu.memory_space<vmem>>, vector<1x8x8xf32>
    %5 = vector.shape_cast %4 : vector<1x8x8xf32> to vector<8x8xf32>
    %c0_8 = arith.constant 0 : index
    %c0_9 = arith.constant 0 : index
    %c0_10 = arith.constant 0 : index
    %6 = vector.load %arg4[%c0_8, %c0_9, %c0_10] : memref<1x1x12xf32, #tpu.memory_space<vmem>>, vector<1x1x12xf32>
    %7 = vector.shape_cast %6 : vector<1x1x12xf32> to vector<1x12xf32>
    %c0_11 = arith.constant 0 : index
    %c0_12 = arith.constant 0 : index
    %8 = vector.load %arg5[%c0_11, %c0_12] : memref<32x96xf32, #tpu.memory_space<vmem>>, vector<32x96xf32>
    %cst = arith.constant dense<0.000000e+00> : vector<8x96xf32>
    %9 = tpu.matmul %1, %8, %cst {dimension_numbers = #tpu.dot_dimension_numbers<[1], [0], [0], [1], [0, 0, 1, 1], [], []>} : vector<8x32xf32>, vector<32x96xf32>, vector<8x96xf32> -> vector<8x96xf32>
    %c0_13 = arith.constant 0 : index
    %c0_14 = arith.constant 0 : index
    %10 = vector.load %arg6[%c0_13, %c0_14] : memref<1x96xf32, #tpu.memory_space<vmem>>, vector<1x96xf32>
    %11 = vector.broadcast %10 : vector<1x96xf32> to vector<8x96xf32>
    %12 = arith.addf %9, %11 : vector<8x96xf32>
    %13 = vector.extract_strided_slice %12 {offsets = [0, 0], sizes = [8, 32], strides = [1, 1]} : vector<8x96xf32> to vector<8x32xf32>
    %14 = vector.extract_strided_slice %12 {offsets = [0, 32], sizes = [8, 32], strides = [1, 1]} : vector<8x96xf32> to vector<8x32xf32>
    %15 = vector.extract_strided_slice %12 {offsets = [0, 64], sizes = [8, 32], strides = [1, 1]} : vector<8x96xf32> to vector<8x32xf32>
    %c0_15 = arith.constant 0 : index
    %c0_16 = arith.constant 0 : index
    %16 = vector.load %arg7[%c0_15, %c0_16] : memref<32x32xf32, #tpu.memory_space<vmem>>, vector<32x32xf32>
    %c0_17 = arith.constant 0 : index
    %c0_18 = arith.constant 0 : index
    %17 = vector.load %arg8[%c0_17, %c0_18] : memref<1x32xf32, #tpu.memory_space<vmem>>, vector<1x32xf32>
    %18 = vector.extract_strided_slice %13 {offsets = [0, 0], sizes = [8, 8], strides = [1, 1]} : vector<8x32xf32> to vector<8x8xf32>
    %19 = vector.extract_strided_slice %14 {offsets = [0, 0], sizes = [8, 8], strides = [1, 1]} : vector<8x32xf32> to vector<8x8xf32>
    %cst_19 = arith.constant dense<0.000000e+00> : vector<8x8xf32>
    %20 = tpu.matmul %18, %19, %cst_19 {dimension_numbers = #tpu.dot_dimension_numbers<[1], [1], [0], [0], [0, 0, 1, 0], [], []>} : vector<8x8xf32>, vector<8x8xf32>, vector<8x8xf32> -> vector<8x8xf32>
    %21 = arith.addf %20, %5 : vector<8x8xf32>
    %cst_20 = arith.constant dense<0xFF800000> : vector<8xf32>
    %22 = vector.multi_reduction <maximumf>, %21, %cst_20 [1] : vector<8x8xf32> to vector<8xf32>
    %23 = vector.shape_cast %22 : vector<8xf32> to vector<8x1xf32>
    %24 = vector.broadcast %23 : vector<8x1xf32> to vector<8x8xf32>
    %25 = arith.subf %21, %24 : vector<8x8xf32>
    %26 = math.exp %25 : vector<8x8xf32>
    %cst_21 = arith.constant dense<0.000000e+00> : vector<8xf32>
    %27 = vector.multi_reduction <add>, %26, %cst_21 [1] : vector<8x8xf32> to vector<8xf32>
    %28 = vector.shape_cast %27 : vector<8xf32> to vector<8x1xf32>
    %29 = tpu.reciprocal %28 {approx = true} : vector<8x1xf32> -> vector<8x1xf32>
    %30 = vector.broadcast %29 : vector<8x1xf32> to vector<8x8xf32>
    %31 = arith.mulf %26, %30 : vector<8x8xf32>
    %32 = vector.extract_strided_slice %15 {offsets = [0, 0], sizes = [8, 8], strides = [1, 1]} : vector<8x32xf32> to vector<8x8xf32>
    %cst_22 = arith.constant dense<0.000000e+00> : vector<8x8xf32>
    %33 = tpu.matmul %31, %32, %cst_22 {dimension_numbers = #tpu.dot_dimension_numbers<[1], [0], [0], [1], [0, 0, 1, 1], [], []>} : vector<8x8xf32>, vector<8x8xf32>, vector<8x8xf32> -> vector<8x8xf32>
    %34 = vector.extract_strided_slice %16 {offsets = [0, 0], sizes = [8, 32], strides = [1, 1]} : vector<32x32xf32> to vector<8x32xf32>
    %cst_23 = arith.constant dense<0.000000e+00> : vector<8x32xf32>
    %35 = tpu.matmul %33, %34, %cst_23 {dimension_numbers = #tpu.dot_dimension_numbers<[1], [0], [0], [1], [0, 0, 1, 1], [], []>} : vector<8x8xf32>, vector<8x32xf32>, vector<8x32xf32> -> vector<8x32xf32>
    %36 = vector.extract_strided_slice %13 {offsets = [0, 8], sizes = [8, 8], strides = [1, 1]} : vector<8x32xf32> to vector<8x8xf32>
    %37 = vector.extract_strided_slice %14 {offsets = [0, 8], sizes = [8, 8], strides = [1, 1]} : vector<8x32xf32> to vector<8x8xf32>
    %cst_24 = arith.constant dense<0.000000e+00> : vector<8x8xf32>
    %38 = tpu.matmul %36, %37, %cst_24 {dimension_numbers = #tpu.dot_dimension_numbers<[1], [1], [0], [0], [0, 0, 1, 0], [], []>} : vector<8x8xf32>, vector<8x8xf32>, vector<8x8xf32> -> vector<8x8xf32>
    %39 = arith.addf %38, %5 : vector<8x8xf32>
    %cst_25 = arith.constant dense<0xFF800000> : vector<8xf32>
    %40 = vector.multi_reduction <maximumf>, %39, %cst_25 [1] : vector<8x8xf32> to vector<8xf32>
    %41 = vector.shape_cast %40 : vector<8xf32> to vector<8x1xf32>
    %42 = vector.broadcast %41 : vector<8x1xf32> to vector<8x8xf32>
    %43 = arith.subf %39, %42 : vector<8x8xf32>
    %44 = math.exp %43 : vector<8x8xf32>
    %cst_26 = arith.constant dense<0.000000e+00> : vector<8xf32>
    %45 = vector.multi_reduction <add>, %44, %cst_26 [1] : vector<8x8xf32> to vector<8xf32>
    %46 = vector.shape_cast %45 : vector<8xf32> to vector<8x1xf32>
    %47 = tpu.reciprocal %46 {approx = true} : vector<8x1xf32> -> vector<8x1xf32>
    %48 = vector.broadcast %47 : vector<8x1xf32> to vector<8x8xf32>
    %49 = arith.mulf %44, %48 : vector<8x8xf32>
    %50 = vector.extract_strided_slice %15 {offsets = [0, 8], sizes = [8, 8], strides = [1, 1]} : vector<8x32xf32> to vector<8x8xf32>
    %cst_27 = arith.constant dense<0.000000e+00> : vector<8x8xf32>
    %51 = tpu.matmul %49, %50, %cst_27 {dimension_numbers = #tpu.dot_dimension_numbers<[1], [0], [0], [1], [0, 0, 1, 1], [], []>} : vector<8x8xf32>, vector<8x8xf32>, vector<8x8xf32> -> vector<8x8xf32>
    %52 = vector.extract_strided_slice %16 {offsets = [8, 0], sizes = [8, 32], strides = [1, 1]} : vector<32x32xf32> to vector<8x32xf32>
    %cst_28 = arith.constant dense<0.000000e+00> : vector<8x32xf32>
    %53 = tpu.matmul %51, %52, %cst_28 {dimension_numbers = #tpu.dot_dimension_numbers<[1], [0], [0], [1], [0, 0, 1, 1], [], []>} : vector<8x8xf32>, vector<8x32xf32>, vector<8x32xf32> -> vector<8x32xf32>
    %54 = arith.addf %35, %53 : vector<8x32xf32>
    %55 = vector.extract_strided_slice %13 {offsets = [0, 16], sizes = [8, 8], strides = [1, 1]} : vector<8x32xf32> to vector<8x8xf32>
    %56 = vector.extract_strided_slice %14 {offsets = [0, 16], sizes = [8, 8], strides = [1, 1]} : vector<8x32xf32> to vector<8x8xf32>
    %cst_29 = arith.constant dense<0.000000e+00> : vector<8x8xf32>
    %57 = tpu.matmul %55, %56, %cst_29 {dimension_numbers = #tpu.dot_dimension_numbers<[1], [1], [0], [0], [0, 0, 1, 0], [], []>} : vector<8x8xf32>, vector<8x8xf32>, vector<8x8xf32> -> vector<8x8xf32>
    %58 = arith.addf %57, %5 : vector<8x8xf32>
    %cst_30 = arith.constant dense<0xFF800000> : vector<8xf32>
    %59 = vector.multi_reduction <maximumf>, %58, %cst_30 [1] : vector<8x8xf32> to vector<8xf32>
    %60 = vector.shape_cast %59 : vector<8xf32> to vector<8x1xf32>
    %61 = vector.broadcast %60 : vector<8x1xf32> to vector<8x8xf32>
    %62 = arith.subf %58, %61 : vector<8x8xf32>
    %63 = math.exp %62 : vector<8x8xf32>
    %cst_31 = arith.constant dense<0.000000e+00> : vector<8xf32>
    %64 = vector.multi_reduction <add>, %63, %cst_31 [1] : vector<8x8xf32> to vector<8xf32>
    %65 = vector.shape_cast %64 : vector<8xf32> to vector<8x1xf32>
    %66 = tpu.reciprocal %65 {approx = true} : vector<8x1xf32> -> vector<8x1xf32>
    %67 = vector.broadcast %66 : vector<8x1xf32> to vector<8x8xf32>
    %68 = arith.mulf %63, %67 : vector<8x8xf32>
    %69 = vector.extract_strided_slice %15 {offsets = [0, 16], sizes = [8, 8], strides = [1, 1]} : vector<8x32xf32> to vector<8x8xf32>
    %cst_32 = arith.constant dense<0.000000e+00> : vector<8x8xf32>
    %70 = tpu.matmul %68, %69, %cst_32 {dimension_numbers = #tpu.dot_dimension_numbers<[1], [0], [0], [1], [0, 0, 1, 1], [], []>} : vector<8x8xf32>, vector<8x8xf32>, vector<8x8xf32> -> vector<8x8xf32>
    %71 = vector.extract_strided_slice %16 {offsets = [16, 0], sizes = [8, 32], strides = [1, 1]} : vector<32x32xf32> to vector<8x32xf32>
    %cst_33 = arith.constant dense<0.000000e+00> : vector<8x32xf32>
    %72 = tpu.matmul %70, %71, %cst_33 {dimension_numbers = #tpu.dot_dimension_numbers<[1], [0], [0], [1], [0, 0, 1, 1], [], []>} : vector<8x8xf32>, vector<8x32xf32>, vector<8x32xf32> -> vector<8x32xf32>
    %73 = arith.addf %54, %72 : vector<8x32xf32>
    %74 = vector.extract_strided_slice %13 {offsets = [0, 24], sizes = [8, 8], strides = [1, 1]} : vector<8x32xf32> to vector<8x8xf32>
    %75 = vector.extract_strided_slice %14 {offsets = [0, 24], sizes = [8, 8], strides = [1, 1]} : vector<8x32xf32> to vector<8x8xf32>
    %cst_34 = arith.constant dense<0.000000e+00> : vector<8x8xf32>
    %76 = tpu.matmul %74, %75, %cst_34 {dimension_numbers = #tpu.dot_dimension_numbers<[1], [1], [0], [0], [0, 0, 1, 0], [], []>} : vector<8x8xf32>, vector<8x8xf32>, vector<8x8xf32> -> vector<8x8xf32>
    %77 = arith.addf %76, %5 : vector<8x8xf32>
    %cst_35 = arith.constant dense<0xFF800000> : vector<8xf32>
    %78 = vector.multi_reduction <maximumf>, %77, %cst_35 [1] : vector<8x8xf32> to vector<8xf32>
    %79 = vector.shape_cast %78 : vector<8xf32> to vector<8x1xf32>
    %80 = vector.broadcast %79 : vector<8x1xf32> to vector<8x8xf32>
    %81 = arith.subf %77, %80 : vector<8x8xf32>
    %82 = math.exp %81 : vector<8x8xf32>
    %cst_36 = arith.constant dense<0.000000e+00> : vector<8xf32>
    %83 = vector.multi_reduction <add>, %82, %cst_36 [1] : vector<8x8xf32> to vector<8xf32>
    %84 = vector.shape_cast %83 : vector<8xf32> to vector<8x1xf32>
    %85 = tpu.reciprocal %84 {approx = true} : vector<8x1xf32> -> vector<8x1xf32>
    %86 = vector.broadcast %85 : vector<8x1xf32> to vector<8x8xf32>
    %87 = arith.mulf %82, %86 : vector<8x8xf32>
    %88 = vector.extract_strided_slice %15 {offsets = [0, 24], sizes = [8, 8], strides = [1, 1]} : vector<8x32xf32> to vector<8x8xf32>
    %cst_37 = arith.constant dense<0.000000e+00> : vector<8x8xf32>
    %89 = tpu.matmul %87, %88, %cst_37 {dimension_numbers = #tpu.dot_dimension_numbers<[1], [0], [0], [1], [0, 0, 1, 1], [], []>} : vector<8x8xf32>, vector<8x8xf32>, vector<8x8xf32> -> vector<8x8xf32>
    %90 = vector.extract_strided_slice %16 {offsets = [24, 0], sizes = [8, 32], strides = [1, 1]} : vector<32x32xf32> to vector<8x32xf32>
    %cst_38 = arith.constant dense<0.000000e+00> : vector<8x32xf32>
    %91 = tpu.matmul %89, %90, %cst_38 {dimension_numbers = #tpu.dot_dimension_numbers<[1], [0], [0], [1], [0, 0, 1, 1], [], []>} : vector<8x8xf32>, vector<8x32xf32>, vector<8x32xf32> -> vector<8x32xf32>
    %92 = arith.addf %73, %91 : vector<8x32xf32>
    %93 = vector.broadcast %17 : vector<1x32xf32> to vector<8x32xf32>
    %94 = arith.addf %92, %93 : vector<8x32xf32>
    %95 = arith.addf %1, %94 : vector<8x32xf32>
    %c0_39 = arith.constant 0 : index
    %c0_40 = arith.constant 0 : index
    %96 = vector.load %arg9[%c0_39, %c0_40] : memref<1x32xf32, #tpu.memory_space<vmem>>, vector<1x32xf32>
    %c0_41 = arith.constant 0 : index
    %c0_42 = arith.constant 0 : index
    %97 = vector.load %arg10[%c0_41, %c0_42] : memref<1x32xf32, #tpu.memory_space<vmem>>, vector<1x32xf32>
    %cst_43 = arith.constant dense<0.000000e+00> : vector<8xf32>
    %98 = vector.multi_reduction <add>, %95, %cst_43 [1] : vector<8x32xf32> to vector<8xf32>
    %99 = vector.shape_cast %98 : vector<8xf32> to vector<8x1xf32>
    %cst_44 = arith.constant 3.200000e+01 : f32
    %100 = vector.broadcast %cst_44 : f32 to vector<8x1xf32>
    %101 = arith.divf %99, %100 : vector<8x1xf32>
    %102 = vector.broadcast %101 : vector<8x1xf32> to vector<8x32xf32>
    %103 = arith.subf %95, %102 : vector<8x32xf32>
    %104 = arith.mulf %103, %103 : vector<8x32xf32>
    %cst_45 = arith.constant dense<0.000000e+00> : vector<8xf32>
    %105 = vector.multi_reduction <add>, %104, %cst_45 [1] : vector<8x32xf32> to vector<8xf32>
    %106 = vector.shape_cast %105 : vector<8xf32> to vector<8x1xf32>
    %cst_46 = arith.constant 3.200000e+01 : f32
    %107 = vector.broadcast %cst_46 : f32 to vector<8x1xf32>
    %108 = arith.divf %106, %107 : vector<8x1xf32>
    %cst_47 = arith.constant 9.99999974E-6 : f32
    %109 = vector.broadcast %cst_47 : f32 to vector<8x1xf32>
    %110 = arith.addf %108, %109 : vector<8x1xf32>
    %111 = math.rsqrt %110 : vector<8x1xf32>
    %112 = vector.broadcast %111 : vector<8x1xf32> to vector<8x32xf32>
    %113 = arith.mulf %103, %112 : vector<8x32xf32>
    %114 = vector.broadcast %96 : vector<1x32xf32> to vector<8x32xf32>
    %115 = arith.mulf %113, %114 : vector<8x32xf32>
    %116 = vector.broadcast %97 : vector<1x32xf32> to vector<8x32xf32>
    %117 = arith.addf %115, %116 : vector<8x32xf32>
    %c0_48 = arith.constant 0 : index
    %c0_49 = arith.constant 0 : index
    %118 = vector.load %arg11[%c0_48, %c0_49] : memref<32x32xf32, #tpu.memory_space<vmem>>, vector<32x32xf32>
    %cst_50 = arith.constant dense<0.000000e+00> : vector<8x32xf32>
    %119 = tpu.matmul %117, %118, %cst_50 {dimension_numbers = #tpu.dot_dimension_numbers<[1], [0], [0], [1], [0, 0, 1, 1], [], []>} : vector<8x32xf32>, vector<32x32xf32>, vector<8x32xf32> -> vector<8x32xf32>
    %c0_51 = arith.constant 0 : index
    %c0_52 = arith.constant 0 : index
    %120 = vector.load %arg12[%c0_51, %c0_52] : memref<1x32xf32, #tpu.memory_space<vmem>>, vector<1x32xf32>
    %121 = vector.broadcast %120 : vector<1x32xf32> to vector<8x32xf32>
    %122 = arith.addf %119, %121 : vector<8x32xf32>
    %c0_53 = arith.constant 0 : index
    %c0_54 = arith.constant 0 : index
    %123 = vector.load %arg13[%c0_53, %c0_54] : memref<32x64xf32, #tpu.memory_space<vmem>>, vector<32x64xf32>
    %cst_55 = arith.constant dense<0.000000e+00> : vector<12x64xf32>
    %124 = tpu.matmul %3, %123, %cst_55 {dimension_numbers = #tpu.dot_dimension_numbers<[1], [0], [0], [1], [0, 0, 1, 1], [], []>} : vector<12x32xf32>, vector<32x64xf32>, vector<12x64xf32> -> vector<12x64xf32>
    %c0_56 = arith.constant 0 : index
    %c0_57 = arith.constant 0 : index
    %125 = vector.load %arg14[%c0_56, %c0_57] : memref<1x64xf32, #tpu.memory_space<vmem>>, vector<1x64xf32>
    %126 = vector.broadcast %125 : vector<1x64xf32> to vector<12x64xf32>
    %127 = arith.addf %124, %126 : vector<12x64xf32>
    %128 = vector.extract_strided_slice %127 {offsets = [0, 0], sizes = [12, 32], strides = [1, 1]} : vector<12x64xf32> to vector<12x32xf32>
    %129 = vector.extract_strided_slice %127 {offsets = [0, 32], sizes = [12, 32], strides = [1, 1]} : vector<12x64xf32> to vector<12x32xf32>
    %c0_58 = arith.constant 0 : index
    %c0_59 = arith.constant 0 : index
    %130 = vector.load %arg15[%c0_58, %c0_59] : memref<32x32xf32, #tpu.memory_space<vmem>>, vector<32x32xf32>
    %c0_60 = arith.constant 0 : index
    %c0_61 = arith.constant 0 : index
    %131 = vector.load %arg16[%c0_60, %c0_61] : memref<1x32xf32, #tpu.memory_space<vmem>>, vector<1x32xf32>
    %132 = vector.extract_strided_slice %122 {offsets = [0, 0], sizes = [8, 8], strides = [1, 1]} : vector<8x32xf32> to vector<8x8xf32>
    %133 = vector.extract_strided_slice %128 {offsets = [0, 0], sizes = [12, 8], strides = [1, 1]} : vector<12x32xf32> to vector<12x8xf32>
    %cst_62 = arith.constant dense<0.000000e+00> : vector<8x12xf32>
    %134 = tpu.matmul %132, %133, %cst_62 {dimension_numbers = #tpu.dot_dimension_numbers<[1], [1], [0], [0], [0, 0, 1, 0], [], []>} : vector<8x8xf32>, vector<12x8xf32>, vector<8x12xf32> -> vector<8x12xf32>
    %135 = vector.broadcast %7 : vector<1x12xf32> to vector<8x12xf32>
    %136 = arith.addf %134, %135 : vector<8x12xf32>
    %cst_63 = arith.constant dense<0xFF800000> : vector<8xf32>
    %137 = vector.multi_reduction <maximumf>, %136, %cst_63 [1] : vector<8x12xf32> to vector<8xf32>
    %138 = vector.shape_cast %137 : vector<8xf32> to vector<8x1xf32>
    %139 = vector.broadcast %138 : vector<8x1xf32> to vector<8x12xf32>
    %140 = arith.subf %136, %139 : vector<8x12xf32>
    %141 = math.exp %140 : vector<8x12xf32>
    %cst_64 = arith.constant dense<0.000000e+00> : vector<8xf32>
    %142 = vector.multi_reduction <add>, %141, %cst_64 [1] : vector<8x12xf32> to vector<8xf32>
    %143 = vector.shape_cast %142 : vector<8xf32> to vector<8x1xf32>
    %144 = tpu.reciprocal %143 {approx = true} : vector<8x1xf32> -> vector<8x1xf32>
    %145 = vector.broadcast %144 : vector<8x1xf32> to vector<8x12xf32>
    %146 = arith.mulf %141, %145 : vector<8x12xf32>
    %147 = vector.extract_strided_slice %129 {offsets = [0, 0], sizes = [12, 8], strides = [1, 1]} : vector<12x32xf32> to vector<12x8xf32>
    %cst_65 = arith.constant dense<0.000000e+00> : vector<8x8xf32>
    %148 = tpu.matmul %146, %147, %cst_65 {dimension_numbers = #tpu.dot_dimension_numbers<[1], [0], [0], [1], [0, 0, 1, 1], [], []>} : vector<8x12xf32>, vector<12x8xf32>, vector<8x8xf32> -> vector<8x8xf32>
    %149 = vector.extract_strided_slice %130 {offsets = [0, 0], sizes = [8, 32], strides = [1, 1]} : vector<32x32xf32> to vector<8x32xf32>
    %cst_66 = arith.constant dense<0.000000e+00> : vector<8x32xf32>
    %150 = tpu.matmul %148, %149, %cst_66 {dimension_numbers = #tpu.dot_dimension_numbers<[1], [0], [0], [1], [0, 0, 1, 1], [], []>} : vector<8x8xf32>, vector<8x32xf32>, vector<8x32xf32> -> vector<8x32xf32>
    %151 = vector.extract_strided_slice %122 {offsets = [0, 8], sizes = [8, 8], strides = [1, 1]} : vector<8x32xf32> to vector<8x8xf32>
    %152 = vector.extract_strided_slice %128 {offsets = [0, 8], sizes = [12, 8], strides = [1, 1]} : vector<12x32xf32> to vector<12x8xf32>
    %cst_67 = arith.constant dense<0.000000e+00> : vector<8x12xf32>
    %153 = tpu.matmul %151, %152, %cst_67 {dimension_numbers = #tpu.dot_dimension_numbers<[1], [1], [0], [0], [0, 0, 1, 0], [], []>} : vector<8x8xf32>, vector<12x8xf32>, vector<8x12xf32> -> vector<8x12xf32>
    %154 = vector.broadcast %7 : vector<1x12xf32> to vector<8x12xf32>
    %155 = arith.addf %153, %154 : vector<8x12xf32>
    %cst_68 = arith.constant dense<0xFF800000> : vector<8xf32>
    %156 = vector.multi_reduction <maximumf>, %155, %cst_68 [1] : vector<8x12xf32> to vector<8xf32>
    %157 = vector.shape_cast %156 : vector<8xf32> to vector<8x1xf32>
    %158 = vector.broadcast %157 : vector<8x1xf32> to vector<8x12xf32>
    %159 = arith.subf %155, %158 : vector<8x12xf32>
    %160 = math.exp %159 : vector<8x12xf32>
    %cst_69 = arith.constant dense<0.000000e+00> : vector<8xf32>
    %161 = vector.multi_reduction <add>, %160, %cst_69 [1] : vector<8x12xf32> to vector<8xf32>
    %162 = vector.shape_cast %161 : vector<8xf32> to vector<8x1xf32>
    %163 = tpu.reciprocal %162 {approx = true} : vector<8x1xf32> -> vector<8x1xf32>
    %164 = vector.broadcast %163 : vector<8x1xf32> to vector<8x12xf32>
    %165 = arith.mulf %160, %164 : vector<8x12xf32>
    %166 = vector.extract_strided_slice %129 {offsets = [0, 8], sizes = [12, 8], strides = [1, 1]} : vector<12x32xf32> to vector<12x8xf32>
    %cst_70 = arith.constant dense<0.000000e+00> : vector<8x8xf32>
    %167 = tpu.matmul %165, %166, %cst_70 {dimension_numbers = #tpu.dot_dimension_numbers<[1], [0], [0], [1], [0, 0, 1, 1], [], []>} : vector<8x12xf32>, vector<12x8xf32>, vector<8x8xf32> -> vector<8x8xf32>
    %168 = vector.extract_strided_slice %130 {offsets = [8, 0], sizes = [8, 32], strides = [1, 1]} : vector<32x32xf32> to vector<8x32xf32>
    %cst_71 = arith.constant dense<0.000000e+00> : vector<8x32xf32>
    %169 = tpu.matmul %167, %168, %cst_71 {dimension_numbers = #tpu.dot_dimension_numbers<[1], [0], [0], [1], [0, 0, 1, 1], [], []>} : vector<8x8xf32>, vector<8x32xf32>, vector<8x32xf32> -> vector<8x32xf32>
    %170 = arith.addf %150, %169 : vector<8x32xf32>
    %171 = vector.extract_strided_slice %122 {offsets = [0, 16], sizes = [8, 8], strides = [1, 1]} : vector<8x32xf32> to vector<8x8xf32>
    %172 = vector.extract_strided_slice %128 {offsets = [0, 16], sizes = [12, 8], strides = [1, 1]} : vector<12x32xf32> to vector<12x8xf32>
    %cst_72 = arith.constant dense<0.000000e+00> : vector<8x12xf32>
    %173 = tpu.matmul %171, %172, %cst_72 {dimension_numbers = #tpu.dot_dimension_numbers<[1], [1], [0], [0], [0, 0, 1, 0], [], []>} : vector<8x8xf32>, vector<12x8xf32>, vector<8x12xf32> -> vector<8x12xf32>
    %174 = vector.broadcast %7 : vector<1x12xf32> to vector<8x12xf32>
    %175 = arith.addf %173, %174 : vector<8x12xf32>
    %cst_73 = arith.constant dense<0xFF800000> : vector<8xf32>
    %176 = vector.multi_reduction <maximumf>, %175, %cst_73 [1] : vector<8x12xf32> to vector<8xf32>
    %177 = vector.shape_cast %176 : vector<8xf32> to vector<8x1xf32>
    %178 = vector.broadcast %177 : vector<8x1xf32> to vector<8x12xf32>
    %179 = arith.subf %175, %178 : vector<8x12xf32>
    %180 = math.exp %179 : vector<8x12xf32>
    %cst_74 = arith.constant dense<0.000000e+00> : vector<8xf32>
    %181 = vector.multi_reduction <add>, %180, %cst_74 [1] : vector<8x12xf32> to vector<8xf32>
    %182 = vector.shape_cast %181 : vector<8xf32> to vector<8x1xf32>
    %183 = tpu.reciprocal %182 {approx = true} : vector<8x1xf32> -> vector<8x1xf32>
    %184 = vector.broadcast %183 : vector<8x1xf32> to vector<8x12xf32>
    %185 = arith.mulf %180, %184 : vector<8x12xf32>
    %186 = vector.extract_strided_slice %129 {offsets = [0, 16], sizes = [12, 8], strides = [1, 1]} : vector<12x32xf32> to vector<12x8xf32>
    %cst_75 = arith.constant dense<0.000000e+00> : vector<8x8xf32>
    %187 = tpu.matmul %185, %186, %cst_75 {dimension_numbers = #tpu.dot_dimension_numbers<[1], [0], [0], [1], [0, 0, 1, 1], [], []>} : vector<8x12xf32>, vector<12x8xf32>, vector<8x8xf32> -> vector<8x8xf32>
    %188 = vector.extract_strided_slice %130 {offsets = [16, 0], sizes = [8, 32], strides = [1, 1]} : vector<32x32xf32> to vector<8x32xf32>
    %cst_76 = arith.constant dense<0.000000e+00> : vector<8x32xf32>
    %189 = tpu.matmul %187, %188, %cst_76 {dimension_numbers = #tpu.dot_dimension_numbers<[1], [0], [0], [1], [0, 0, 1, 1], [], []>} : vector<8x8xf32>, vector<8x32xf32>, vector<8x32xf32> -> vector<8x32xf32>
    %190 = arith.addf %170, %189 : vector<8x32xf32>
    %191 = vector.extract_strided_slice %122 {offsets = [0, 24], sizes = [8, 8], strides = [1, 1]} : vector<8x32xf32> to vector<8x8xf32>
    %192 = vector.extract_strided_slice %128 {offsets = [0, 24], sizes = [12, 8], strides = [1, 1]} : vector<12x32xf32> to vector<12x8xf32>
    %cst_77 = arith.constant dense<0.000000e+00> : vector<8x12xf32>
    %193 = tpu.matmul %191, %192, %cst_77 {dimension_numbers = #tpu.dot_dimension_numbers<[1], [1], [0], [0], [0, 0, 1, 0], [], []>} : vector<8x8xf32>, vector<12x8xf32>, vector<8x12xf32> -> vector<8x12xf32>
    %194 = vector.broadcast %7 : vector<1x12xf32> to vector<8x12xf32>
    %195 = arith.addf %193, %194 : vector<8x12xf32>
    %cst_78 = arith.constant dense<0xFF800000> : vector<8xf32>
    %196 = vector.multi_reduction <maximumf>, %195, %cst_78 [1] : vector<8x12xf32> to vector<8xf32>
    %197 = vector.shape_cast %196 : vector<8xf32> to vector<8x1xf32>
    %198 = vector.broadcast %197 : vector<8x1xf32> to vector<8x12xf32>
    %199 = arith.subf %195, %198 : vector<8x12xf32>
    %200 = math.exp %199 : vector<8x12xf32>
    %cst_79 = arith.constant dense<0.000000e+00> : vector<8xf32>
    %201 = vector.multi_reduction <add>, %200, %cst_79 [1] : vector<8x12xf32> to vector<8xf32>
    %202 = vector.shape_cast %201 : vector<8xf32> to vector<8x1xf32>
    %203 = tpu.reciprocal %202 {approx = true} : vector<8x1xf32> -> vector<8x1xf32>
    %204 = vector.broadcast %203 : vector<8x1xf32> to vector<8x12xf32>
    %205 = arith.mulf %200, %204 : vector<8x12xf32>
    %206 = vector.extract_strided_slice %129 {offsets = [0, 24], sizes = [12, 8], strides = [1, 1]} : vector<12x32xf32> to vector<12x8xf32>
    %cst_80 = arith.constant dense<0.000000e+00> : vector<8x8xf32>
    %207 = tpu.matmul %205, %206, %cst_80 {dimension_numbers = #tpu.dot_dimension_numbers<[1], [0], [0], [1], [0, 0, 1, 1], [], []>} : vector<8x12xf32>, vector<12x8xf32>, vector<8x8xf32> -> vector<8x8xf32>
    %208 = vector.extract_strided_slice %130 {offsets = [24, 0], sizes = [8, 32], strides = [1, 1]} : vector<32x32xf32> to vector<8x32xf32>
    %cst_81 = arith.constant dense<0.000000e+00> : vector<8x32xf32>
    %209 = tpu.matmul %207, %208, %cst_81 {dimension_numbers = #tpu.dot_dimension_numbers<[1], [0], [0], [1], [0, 0, 1, 1], [], []>} : vector<8x8xf32>, vector<8x32xf32>, vector<8x32xf32> -> vector<8x32xf32>
    %210 = arith.addf %190, %209 : vector<8x32xf32>
    %211 = vector.broadcast %131 : vector<1x32xf32> to vector<8x32xf32>
    %212 = arith.addf %210, %211 : vector<8x32xf32>
    %213 = arith.addf %117, %212 : vector<8x32xf32>
    %c0_82 = arith.constant 0 : index
    %c0_83 = arith.constant 0 : index
    %214 = vector.load %arg17[%c0_82, %c0_83] : memref<1x32xf32, #tpu.memory_space<vmem>>, vector<1x32xf32>
    %c0_84 = arith.constant 0 : index
    %c0_85 = arith.constant 0 : index
    %215 = vector.load %arg18[%c0_84, %c0_85] : memref<1x32xf32, #tpu.memory_space<vmem>>, vector<1x32xf32>
    %cst_86 = arith.constant dense<0.000000e+00> : vector<8xf32>
    %216 = vector.multi_reduction <add>, %213, %cst_86 [1] : vector<8x32xf32> to vector<8xf32>
    %217 = vector.shape_cast %216 : vector<8xf32> to vector<8x1xf32>
    %cst_87 = arith.constant 3.200000e+01 : f32
    %218 = vector.broadcast %cst_87 : f32 to vector<8x1xf32>
    %219 = arith.divf %217, %218 : vector<8x1xf32>
    %220 = vector.broadcast %219 : vector<8x1xf32> to vector<8x32xf32>
    %221 = arith.subf %213, %220 : vector<8x32xf32>
    %222 = arith.mulf %221, %221 : vector<8x32xf32>
    %cst_88 = arith.constant dense<0.000000e+00> : vector<8xf32>
    %223 = vector.multi_reduction <add>, %222, %cst_88 [1] : vector<8x32xf32> to vector<8xf32>
    %224 = vector.shape_cast %223 : vector<8xf32> to vector<8x1xf32>
    %cst_89 = arith.constant 3.200000e+01 : f32
    %225 = vector.broadcast %cst_89 : f32 to vector<8x1xf32>
    %226 = arith.divf %224, %225 : vector<8x1xf32>
    %cst_90 = arith.constant 9.99999974E-6 : f32
    %227 = vector.broadcast %cst_90 : f32 to vector<8x1xf32>
    %228 = arith.addf %226, %227 : vector<8x1xf32>
    %229 = math.rsqrt %228 : vector<8x1xf32>
    %230 = vector.broadcast %229 : vector<8x1xf32> to vector<8x32xf32>
    %231 = arith.mulf %221, %230 : vector<8x32xf32>
    %232 = vector.broadcast %214 : vector<1x32xf32> to vector<8x32xf32>
    %233 = arith.mulf %231, %232 : vector<8x32xf32>
    %234 = vector.broadcast %215 : vector<1x32xf32> to vector<8x32xf32>
    %235 = arith.addf %233, %234 : vector<8x32xf32>
    %c0_91 = arith.constant 0 : index
    %c0_92 = arith.constant 0 : index
    %236 = vector.load %arg19[%c0_91, %c0_92] : memref<32x64xf32, #tpu.memory_space<vmem>>, vector<32x64xf32>
    %cst_93 = arith.constant dense<0.000000e+00> : vector<8x64xf32>
    %237 = tpu.matmul %235, %236, %cst_93 {dimension_numbers = #tpu.dot_dimension_numbers<[1], [0], [0], [1], [0, 0, 1, 1], [], []>} : vector<8x32xf32>, vector<32x64xf32>, vector<8x64xf32> -> vector<8x64xf32>
    %c0_94 = arith.constant 0 : index
    %c0_95 = arith.constant 0 : index
    %238 = vector.load %arg20[%c0_94, %c0_95] : memref<1x64xf32, #tpu.memory_space<vmem>>, vector<1x64xf32>
    %239 = vector.broadcast %238 : vector<1x64xf32> to vector<8x64xf32>
    %240 = arith.addf %237, %239 : vector<8x64xf32>
    %cst_96 = arith.constant 0.000000e+00 : f32
    %241 = vector.broadcast %cst_96 : f32 to vector<8x64xf32>
    %242 = arith.maximumf %240, %241 : vector<8x64xf32>
    %c0_97 = arith.constant 0 : index
    %c0_98 = arith.constant 0 : index
    %243 = vector.load %arg21[%c0_97, %c0_98] : memref<64x32xf32, #tpu.memory_space<vmem>>, vector<64x32xf32>
    %cst_99 = arith.constant dense<0.000000e+00> : vector<8x32xf32>
    %244 = tpu.matmul %242, %243, %cst_99 {dimension_numbers = #tpu.dot_dimension_numbers<[1], [0], [0], [1], [0, 0, 1, 1], [], []>} : vector<8x64xf32>, vector<64x32xf32>, vector<8x32xf32> -> vector<8x32xf32>
    %c0_100 = arith.constant 0 : index
    %c0_101 = arith.constant 0 : index
    %245 = vector.load %arg22[%c0_100, %c0_101] : memref<1x32xf32, #tpu.memory_space<vmem>>, vector<1x32xf32>
    %246 = vector.broadcast %245 : vector<1x32xf32> to vector<8x32xf32>
    %247 = arith.addf %244, %246 : vector<8x32xf32>
    %248 = arith.addf %235, %247 : vector<8x32xf32>
    %c0_102 = arith.constant 0 : index
    %c0_103 = arith.constant 0 : index
    %249 = vector.load %arg23[%c0_102, %c0_103] : memref<1x32xf32, #tpu.memory_space<vmem>>, vector<1x32xf32>
    %c0_104 = arith.constant 0 : index
    %c0_105 = arith.constant 0 : index
    %250 = vector.load %arg24[%c0_104, %c0_105] : memref<1x32xf32, #tpu.memory_space<vmem>>, vector<1x32xf32>
    %cst_106 = arith.constant dense<0.000000e+00> : vector<8xf32>
    %251 = vector.multi_reduction <add>, %248, %cst_106 [1] : vector<8x32xf32> to vector<8xf32>
    %252 = vector.shape_cast %251 : vector<8xf32> to vector<8x1xf32>
    %cst_107 = arith.constant 3.200000e+01 : f32
    %253 = vector.broadcast %cst_107 : f32 to vector<8x1xf32>
    %254 = arith.divf %252, %253 : vector<8x1xf32>
    %255 = vector.broadcast %254 : vector<8x1xf32> to vector<8x32xf32>
    %256 = arith.subf %248, %255 : vector<8x32xf32>
    %257 = arith.mulf %256, %256 : vector<8x32xf32>
    %cst_108 = arith.constant dense<0.000000e+00> : vector<8xf32>
    %258 = vector.multi_reduction <add>, %257, %cst_108 [1] : vector<8x32xf32> to vector<8xf32>
    %259 = vector.shape_cast %258 : vector<8xf32> to vector<8x1xf32>
    %cst_109 = arith.constant 3.200000e+01 : f32
    %260 = vector.broadcast %cst_109 : f32 to vector<8x1xf32>
    %261 = arith.divf %259, %260 : vector<8x1xf32>
    %cst_110 = arith.constant 9.99999974E-6 : f32
    %262 = vector.broadcast %cst_110 : f32 to vector<8x1xf32>
    %263 = arith.addf %261, %262 : vector<8x1xf32>
    %264 = math.rsqrt %263 : vector<8x1xf32>
    %265 = vector.broadcast %264 : vector<8x1xf32> to vector<8x32xf32>
    %266 = arith.mulf %256, %265 : vector<8x32xf32>
    %267 = vector.broadcast %249 : vector<1x32xf32> to vector<8x32xf32>
    %268 = arith.mulf %266, %267 : vector<8x32xf32>
    %269 = vector.broadcast %250 : vector<1x32xf32> to vector<8x32xf32>
    %270 = arith.addf %268, %269 : vector<8x32xf32>
    %c0_111 = arith.constant 0 : index
    %c0_112 = arith.constant 0 : index
    %c0_113 = arith.constant 0 : index
    %271 = vector.load %arg25[%c0_111, %c0_112, %c0_113] : memref<1x8x32xf32, #tpu.memory_space<vmem>>, vector<1x8x32xf32>
    %272 = vector.shape_cast %271 : vector<1x8x32xf32> to vector<8x32xf32>
    %273 = vector.shape_cast %270 : vector<8x32xf32> to vector<1x8x32xf32>
    tpu.vector_store %arg25[%c0_111, %c0_112, %c0_113], %273 {strides = array<i32>} : memref<1x8x32xf32, #tpu.memory_space<vmem>>, vector<1x8x32xf32>,
    return
  }
  func.func @transform_0(%arg0: i32) -> (i32, i32, i32) {
    %c0_i32 = arith.constant 0 : i32
    %c0_i32_0 = arith.constant 0 : i32
    %c0_i32_1 = arith.constant 0 : i32
    return %arg0, %c0_i32, %c0_i32_0 : i32, i32, i32
  }
  func.func @transform_1(%arg0: i32) -> (i32, i32, i32) {
    %c0_i32 = arith.constant 0 : i32
    %c0_i32_0 = arith.constant 0 : i32
    %c0_i32_1 = arith.constant 0 : i32
    return %arg0, %c0_i32, %c0_i32_0 : i32, i32, i32
  }
  func.func @transform_2(%arg0: i32) -> (i32, i32, i32) {
    %c0_i32 = arith.constant 0 : i32
    %c0_i32_0 = arith.constant 0 : i32
    %c0_i32_1 = arith.constant 0 : i32
    return %arg0, %c0_i32, %c0_i32_0 : i32, i32, i32
  }
  func.func @transform_3(%arg0: i32) -> (i32, i32, i32) {
    %c0_i32 = arith.constant 0 : i32
    %c0_i32_0 = arith.constant 0 : i32
    %c0_i32_1 = arith.constant 0 : i32
    return %arg0, %c0_i32, %c0_i32_0 : i32, i32, i32
  }
  func.func @transform_4(%arg0: i32) -> (i32, i32) {
    %c0_i32 = arith.constant 0 : i32
    %c0_i32_0 = arith.constant 0 : i32
    %c0_i32_1 = arith.constant 0 : i32
    return %c0_i32, %c0_i32_0 : i32, i32
  }
  func.func @transform_5(%arg0: i32) -> (i32, i32) {
    %c0_i32 = arith.constant 0 : i32
    %c0_i32_0 = arith.constant 0 : i32
    %c0_i32_1 = arith.constant 0 : i32
    return %c0_i32, %c0_i32_0 : i32, i32
  }
  func.func @transform_6(%arg0: i32) -> (i32, i32) {
    %c0_i32 = arith.constant 0 : i32
    %c0_i32_0 = arith.constant 0 : i32
    %c0_i32_1 = arith.constant 0 : i32
    return %c0_i32, %c0_i32_0 : i32, i32
  }
  func.func @transform_7(%arg0: i32) -> (i32, i32) {
    %c0_i32 = arith.constant 0 : i32
    %c0_i32_0 = arith.constant 0 : i32
    %c0_i32_1 = arith.constant 0 : i32
    return %c0_i32, %c0_i32_0 : i32, i32
  }
  func.func @transform_8(%arg0: i32) -> (i32, i32) {
    %c0_i32 = arith.constant 0 : i32
    %c0_i32_0 = arith.constant 0 : i32
    %c0_i32_1 = arith.constant 0 : i32
    return %c0_i32, %c0_i32_0 : i32, i32
  }
  func.func @transform_9(%arg0: i32) -> (i32, i32) {
    %c0_i32 = arith.constant 0 : i32
    %c0_i32_0 = arith.constant 0 : i32
    %c0_i32_1 = arith.constant 0 : i32
    return %c0_i32, %c0_i32_0 : i32, i32
  }
  func.func @transform_10(%arg0: i32) -> (i32, i32) {
    %c0_i32 = arith.constant 0 : i32
    %c0_i32_0 = arith.constant 0 : i32
    %c0_i32_1 = arith.constant 0 : i32
    return %c0_i32, %c0_i32_0 : i32, i32
  }
  func.func @transform_11(%arg0: i32) -> (i32, i32) {
    %c0_i32 = arith.constant 0 : i32
    %c0_i32_0 = arith.constant 0 : i32
    %c0_i32_1 = arith.constant 0 : i32
    return %c0_i32, %c0_i32_0 : i32, i32
  }
  func.func @transform_12(%arg0: i32) -> (i32, i32) {
    %c0_i32 = arith.constant 0 : i32
    %c0_i32_0 = arith.constant 0 : i32
    %c0_i32_1 = arith.constant 0 : i32
    return %c0_i32, %c0_i32_0 : i32, i32
  }
  func.func @transform_13(%arg0: i32) -> (i32, i32) {
    %c0_i32 = arith.constant 0 : i32
    %c0_i32_0 = arith.constant 0 : i32
    %c0_i32_1 = arith.constant 0 : i32
    return %c0_i32, %c0_i32_0 : i32, i32
  }
  func.func @transform_14(%arg0: i32) -> (i32, i32) {
    %c0_i32 = arith.constant 0 : i32
    %c0_i32_0 = arith.constant 0 : i32
    %c0_i32_1 = arith.constant 0 : i32
    return %c0_i32, %c0_i32_0 : i32, i32
  }
  func.func @transform_15(%arg0: i32) -> (i32, i32) {
    %c0_i32 = arith.constant 0 : i32
    %c0_i32_0 = arith.constant 0 : i32
    %c0_i32_1 = arith.constant 0 : i32
    return %c0_i32, %c0_i32_0 : i32, i32
  }
  func.func @transform_16(%arg0: i32) -> (i32, i32) {
    %c0_i32 = arith.constant 0 : i32
    %c0_i32_0 = arith.constant 0 : i32
    %c0_i32_1 = arith.constant 0 : i32
    return %c0_i32, %c0_i32_0 : i32, i32
  }
  func.func @transform_17(%arg0: i32) -> (i32, i32) {
    %c0_i32 = arith.constant 0 : i32
    %c0_i32_0 = arith.constant 0 : i32
    %c0_i32_1 = arith.constant 0 : i32
    return %c0_i32, %c0_i32_0 : i32, i32
  }
  func.func @transform_18(%arg0: i32) -> (i32, i32) {
    %c0_i32 = arith.constant 0 : i32
    %c0_i32_0 = arith.constant 0 : i32
    %c0_i32_1 = arith.constant 0 : i32
    return %c0_i32, %c0_i32_0 : i32, i32
  }
  func.func @transform_19(%arg0: i32) -> (i32, i32) {
    %c0_i32 = arith.constant 0 : i32
    %c0_i32_0 = arith.constant 0 : i32
    %c0_i32_1 = arith.constant 0 : i32
    return %c0_i32, %c0_i32_0 : i32, i32
  }
  func.func @transform_20(%arg0: i32) -> (i32, i32) {
    %c0_i32 = arith.constant 0 : i32
    %c0_i32_0 = arith.constant 0 : i32
    %c0_i32_1 = arith.constant 0 : i32
    return %c0_i32, %c0_i32_0 : i32, i32
  }
  func.func @transform_21(%arg0: i32) -> (i32, i32) {
    %c0_i32 = arith.constant 0 : i32
    %c0_i32_0 = arith.constant 0 : i32
    %c0_i32_1 = arith.constant 0 : i32
    return %c0_i32, %c0_i32_0 : i32, i32
  }
  func.func @transform_22(%arg0: i32) -> (i32, i32) {
    %c0_i32 = arith.constant 0 : i32
    %c0_i32_0 = arith.constant 0 : i32
    %c0_i32_1 = arith.constant 0 : i32
    return %c0_i32, %c0_i32_0 : i32, i32
  }
  func.func @transform_23(%arg0: i32) -> (i32, i32) {
    %c0_i32 = arith.constant 0 : i32
    %c0_i32_0 = arith.constant 0 : i32
    %c0_i32_1 = arith.constant 0 : i32
    return %c0_i32, %c0_i32_0 : i32, i32
  }
  func.func @transform_24(%arg0: i32) -> (i32, i32, i32) {
    %c0_i32 = arith.constant 0 : i32
    %c0_i32_0 = arith.constant 0 : i32
    %c0_i32_1 = arith.constant 0 : i32
    return %arg0, %c0_i32, %c0_i32_0 : i32, i32, i32
  }
}

module attributes {stable_mosaic.version = 11 : i64} {
  func.func @_dec_layer_kernel(%arg0: i32, %arg1: memref<1x8x32xf32, #tpu.memory_space<vmem>>, %arg2: memref<1x12x32xf32, #tpu.memory_space<vmem>>, %arg3: memref<1x8x8xf32, #tpu.memory_space<vmem>>, %arg4: memref<1x1x12xf32, #tpu.memory_space<vmem>>, %arg5: memref<32x96xf32, #tpu.memory_space<vmem>>, %arg6: memref<1x96xf32, #tpu.memory_space<vmem>>, %arg7: memref<32x32xf32, #tpu.memory_space<vmem>>, %arg8: memref<1x32xf32, #tpu.memory_space<vmem>>, %arg9: memref<1x32xf32, #tpu.memory_space<vmem>>, %arg10: memref<1x32xf32, #tpu.memory_space<vmem>>, %arg11: memref<32x32xf32, #tpu.memory_space<vmem>>, %arg12: memref<1x32xf32, #tpu.memory_space<vmem>>, %arg13: memref<32x64xf32, #tpu.memory_space<vmem>>, %arg14: memref<1x64xf32, #tpu.memory_space<vmem>>, %arg15: memref<32x32xf32, #tpu.memory_space<vmem>>, %arg16: memref<1x32xf32, #tpu.memory_space<vmem>>, %arg17: memref<1x32xf32, #tpu.memory_space<vmem>>, %arg18: memref<1x32xf32, #tpu.memory_space<vmem>>, %arg19: memref<32x64xf32, #tpu.memory_space<vmem>>, %arg20: memref<1x64xf32, #tpu.memory_space<vmem>>, %arg21: memref<64x32xf32, #tpu.memory_space<vmem>>, %arg22: memref<1x32xf32, #tpu.memory_space<vmem>>, %arg23: memref<1x32xf32, #tpu.memory_space<vmem>>, %arg24: memref<1x32xf32, #tpu.memory_space<vmem>>, %arg25: memref<1x8x32xf32, #tpu.memory_space<vmem>>) attributes {dimension_semantics = [#tpu.dimension_semantics<parallel>], iteration_bounds = array<i64: 2>, scalar_prefetch = 0 : i64, scratch_operands = 0 : i64, tpu.core_type = #tpu.core_type<tc>, window_params = [{transform_indices = @transform_0, window_bounds = array<i64: 1, 8, 32>}, {transform_indices = @transform_1, window_bounds = array<i64: 1, 12, 32>}, {transform_indices = @transform_2, window_bounds = array<i64: 1, 8, 8>}, {transform_indices = @transform_3, window_bounds = array<i64: 1, 1, 12>}, {pipeline_mode = #tpu.pipeline_mode<synchronous>, transform_indices = @transform_4, window_bounds = array<i64: 32, 96>}, {pipeline_mode = #tpu.pipeline_mode<synchronous>, transform_indices = @transform_5, window_bounds = array<i64: 1, 96>}, {pipeline_mode = #tpu.pipeline_mode<synchronous>, transform_indices = @transform_6, window_bounds = array<i64: 32, 32>}, {pipeline_mode = #tpu.pipeline_mode<synchronous>, transform_indices = @transform_7, window_bounds = array<i64: 1, 32>}, {pipeline_mode = #tpu.pipeline_mode<synchronous>, transform_indices = @transform_8, window_bounds = array<i64: 1, 32>}, {pipeline_mode = #tpu.pipeline_mode<synchronous>, transform_indices = @transform_9, window_bounds = array<i64: 1, 32>}, {pipeline_mode = #tpu.pipeline_mode<synchronous>, transform_indices = @transform_10, window_bounds = array<i64: 32, 32>}, {pipeline_mode = #tpu.pipeline_mode<synchronous>, transform_indices = @transform_11, window_bounds = array<i64: 1, 32>}, {pipeline_mode = #tpu.pipeline_mode<synchronous>, transform_indices = @transform_12, window_bounds = array<i64: 32, 64>}, {pipeline_mode = #tpu.pipeline_mode<synchronous>, transform_indices = @transform_13, window_bounds = array<i64: 1, 64>}, {pipeline_mode = #tpu.pipeline_mode<synchronous>, transform_indices = @transform_14, window_bounds = array<i64: 32, 32>}, {pipeline_mode = #tpu.pipeline_mode<synchronous>, transform_indices = @transform_15, window_bounds = array<i64: 1, 32>}, {pipeline_mode = #tpu.pipeline_mode<synchronous>, transform_indices = @transform_16, window_bounds = array<i64: 1, 32>}, {pipeline_mode = #tpu.pipeline_mode<synchronous>, transform_indices = @transform_17, window_bounds = array<i64: 1, 32>}, {pipeline_mode = #tpu.pipeline_mode<synchronous>, transform_indices = @transform_18, window_bounds = array<i64: 32, 64>}, {pipeline_mode = #tpu.pipeline_mode<synchronous>, transform_indices = @transform_19, window_bounds = array<i64: 1, 64>}, {pipeline_mode = #tpu.pipeline_mode<synchronous>, transform_indices = @transform_20, window_bounds = array<i64: 64, 32>}, {pipeline_mode = #tpu.pipeline_mode<synchronous>, transform_indices = @transform_21, window_bounds = array<i64: 1, 32>}, {pipeline_mode = #tpu.pipeline_mode<synchronous>, transform_indices = @transform_22, window_bounds = array<i64: 1, 32>}, {pipeline_mode = #tpu.pipeline_mode<synchronous>, transform_indices = @transform_23, window_bounds = array<i64: 1, 32>}, {transform_indices = @transform_24, window_bounds = array<i64: 1, 8, 32>}]} {
    %c0 = arith.constant 0 : index
    %c0_0 = arith.constant 0 : index
    %c0_1 = arith.constant 0 : index
    %0 = vector.load %arg1[%c0, %c0_0, %c0_1] : memref<1x8x32xf32, #tpu.memory_space<vmem>>, vector<1x8x32xf32>
    %1 = vector.shape_cast %0 : vector<1x8x32xf32> to vector<8x32xf32>
    %c0_2 = arith.constant 0 : index
    %c0_3 = arith.constant 0 : index
    %c0_4 = arith.constant 0 : index
    %2 = vector.load %arg2[%c0_2, %c0_3, %c0_4] : memref<1x12x32xf32, #tpu.memory_space<vmem>>, vector<1x12x32xf32>
    %3 = vector.shape_cast %2 : vector<1x12x32xf32> to vector<12x32xf32>
    %c0_5 = arith.constant 0 : index
    %c0_6 = arith.constant 0 : index
    %c0_7 = arith.constant 0 : index
    %4 = vector.load %arg3[%c0_5, %c0_6, %c0_7] : memref<1x8x8xf32, #tpu.memory_space<vmem>>, vector<1x8x8xf32>
    %5 = vector.shape_cast %4 : vector<1x8x8xf32> to vector<8x8xf32>
    %c0_8 = arith.constant 0 : index
    %c0_9 = arith.constant 0 : index
    %c0_10 = arith.constant 0 : index
    %6 = vector.load %arg4[%c0_8, %c0_9, %c0_10] : memref<1x1x12xf32, #tpu.memory_space<vmem>>, vector<1x1x12xf32>
    %7 = vector.shape_cast %6 : vector<1x1x12xf32> to vector<1x12xf32>
    %c0_11 = arith.constant 0 : index
    %c0_12 = arith.constant 0 : index
    %8 = vector.load %arg5[%c0_11, %c0_12] : memref<32x96xf32, #tpu.memory_space<vmem>>, vector<32x96xf32>
    %cst = arith.constant dense<0.000000e+00> : vector<8x96xf32>
    %9 = tpu.matmul %1, %8, %cst {dimension_numbers = #tpu.dot_dimension_numbers<[1], [0], [0], [1], [0, 0, 1, 1], [], []>} : vector<8x32xf32>, vector<32x96xf32>, vector<8x96xf32> -> vector<8x96xf32>
    %c0_13 = arith.constant 0 : index
    %c0_14 = arith.constant 0 : index
    %10 = vector.load %arg6[%c0_13, %c0_14] : memref<1x96xf32, #tpu.memory_space<vmem>>, vector<1x96xf32>
    %11 = vector.broadcast %10 : vector<1x96xf32> to vector<8x96xf32>
    %12 = arith.addf %9, %11 : vector<8x96xf32>
    %13 = vector.extract_strided_slice %12 {offsets = [0, 0], sizes = [8, 32], strides = [1, 1]} : vector<8x96xf32> to vector<8x32xf32>
    %14 = vector.extract_strided_slice %12 {offsets = [0, 32], sizes = [8, 32], strides = [1, 1]} : vector<8x96xf32> to vector<8x32xf32>
    %15 = vector.extract_strided_slice %12 {offsets = [0, 64], sizes = [8, 32], strides = [1, 1]} : vector<8x96xf32> to vector<8x32xf32>
    %c0_15 = arith.constant 0 : index
    %c0_16 = arith.constant 0 : index
    %16 = vector.load %arg7[%c0_15, %c0_16] : memref<32x32xf32, #tpu.memory_space<vmem>>, vector<32x32xf32>
    %c0_17 = arith.constant 0 : index
    %c0_18 = arith.constant 0 : index
    %17 = vector.load %arg8[%c0_17, %c0_18] : memref<1x32xf32, #tpu.memory_space<vmem>>, vector<1x32xf32>
    %18 = vector.extract_strided_slice %13 {offsets = [0, 0], sizes = [8, 8], strides = [1, 1]} : vector<8x32xf32> to vector<8x8xf32>
    %19 = vector.extract_strided_slice %14 {offsets = [0, 0], sizes = [8, 8], strides = [1, 1]} : vector<8x32xf32> to vector<8x8xf32>
    %cst_19 = arith.constant dense<0.000000e+00> : vector<8x8xf32>
    %20 = tpu.matmul %18, %19, %cst_19 {dimension_numbers = #tpu.dot_dimension_numbers<[1], [1], [0], [0], [0, 0, 1, 0], [], []>} : vector<8x8xf32>, vector<8x8xf32>, vector<8x8xf32> -> vector<8x8xf32>
    %21 = arith.addf %20, %5 : vector<8x8xf32>
    %cst_20 = arith.constant dense<0xFF800000> : vector<8xf32>
    %22 = vector.multi_reduction <maximumf>, %21, %cst_20 [1] : vector<8x8xf32> to vector<8xf32>
    %23 = vector.shape_cast %22 : vector<8xf32> to vector<8x1xf32>
    %24 = vector.broadcast %23 : vector<8x1xf32> to vector<8x8xf32>
    %25 = arith.subf %21, %24 : vector<8x8xf32>
    %26 = math.exp %25 : vector<8x8xf32>
    %cst_21 = arith.constant dense<0.000000e+00> : vector<8xf32>
    %27 = vector.multi_reduction <add>, %26, %cst_21 [1] : vector<8x8xf32> to vector<8xf32>
    %28 = vector.shape_cast %27 : vector<8xf32> to vector<8x1xf32>
    %29 = tpu.reciprocal %28 {approx = true} : vector<8x1xf32> -> vector<8x1xf32>
    %30 = vector.broadcast %29 : vector<8x1xf32> to vector<8x8xf32>
    %31 = arith.mulf %26, %30 : vector<8x8xf32>
    %32 = vector.extract_strided_slice %15 {offsets = [0, 0], sizes = [8, 8], strides = [1, 1]} : vector<8x32xf32> to vector<8x8xf32>
    %cst_22 = arith.constant dense<0.000000e+00> : vector<8x8xf32>
    %33 = tpu.matmul %31, %32, %cst_22 {dimension_numbers = #tpu.dot_dimension_numbers<[1], [0], [0], [1], [0, 0, 1, 1], [], []>} : vector<8x8xf32>, vector<8x8xf32>, vector<8x8xf32> -> vector<8x8xf32>
    %34 = vector.extract_strided_slice %16 {offsets = [0, 0], sizes = [8, 32], strides = [1, 1]} : vector<32x32xf32> to vector<8x32xf32>
    %cst_23 = arith.constant dense<0.000000e+00> : vector<8x32xf32>
    %35 = tpu.matmul %33, %34, %cst_23 {dimension_numbers = #tpu.dot_dimension_numbers<[1], [0], [0], [1], [0, 0, 1, 1], [], []>} : vector<8x8xf32>, vector<8x32xf32>, vector<8x32xf32> -> vector<8x32xf32>
    %36 = vector.extract_strided_slice %13 {offsets = [0, 8], sizes = [8, 8], strides = [1, 1]} : vector<8x32xf32> to vector<8x8xf32>
    %37 = vector.extract_strided_slice %14 {offsets = [0, 8], sizes = [8, 8], strides = [1, 1]} : vector<8x32xf32> to vector<8x8xf32>
    %cst_24 = arith.constant dense<0.000000e+00> : vector<8x8xf32>
    %38 = tpu.matmul %36, %37, %cst_24 {dimension_numbers = #tpu.dot_dimension_numbers<[1], [1], [0], [0], [0, 0, 1, 0], [], []>} : vector<8x8xf32>, vector<8x8xf32>, vector<8x8xf32> -> vector<8x8xf32>
    %39 = arith.addf %38, %5 : vector<8x8xf32>
    %cst_25 = arith.constant dense<0xFF800000> : vector<8xf32>
    %40 = vector.multi_reduction <maximumf>, %39, %cst_25 [1] : vector<8x8xf32> to vector<8xf32>
    %41 = vector.shape_cast %40 : vector<8xf32> to vector<8x1xf32>
    %42 = vector.broadcast %41 : vector<8x1xf32> to vector<8x8xf32>
    %43 = arith.subf %39, %42 : vector<8x8xf32>
    %44 = math.exp %43 : vector<8x8xf32>
    %cst_26 = arith.constant dense<0.000000e+00> : vector<8xf32>
    %45 = vector.multi_reduction <add>, %44, %cst_26 [1] : vector<8x8xf32> to vector<8xf32>
    %46 = vector.shape_cast %45 : vector<8xf32> to vector<8x1xf32>
    %47 = tpu.reciprocal %46 {approx = true} : vector<8x1xf32> -> vector<8x1xf32>
    %48 = vector.broadcast %47 : vector<8x1xf32> to vector<8x8xf32>
    %49 = arith.mulf %44, %48 : vector<8x8xf32>
    %50 = vector.extract_strided_slice %15 {offsets = [0, 8], sizes = [8, 8], strides = [1, 1]} : vector<8x32xf32> to vector<8x8xf32>
    %cst_27 = arith.constant dense<0.000000e+00> : vector<8x8xf32>
    %51 = tpu.matmul %49, %50, %cst_27 {dimension_numbers = #tpu.dot_dimension_numbers<[1], [0], [0], [1], [0, 0, 1, 1], [], []>} : vector<8x8xf32>, vector<8x8xf32>, vector<8x8xf32> -> vector<8x8xf32>
    %52 = vector.extract_strided_slice %16 {offsets = [8, 0], sizes = [8, 32], strides = [1, 1]} : vector<32x32xf32> to vector<8x32xf32>
    %cst_28 = arith.constant dense<0.000000e+00> : vector<8x32xf32>
    %53 = tpu.matmul %51, %52, %cst_28 {dimension_numbers = #tpu.dot_dimension_numbers<[1], [0], [0], [1], [0, 0, 1, 1], [], []>} : vector<8x8xf32>, vector<8x32xf32>, vector<8x32xf32> -> vector<8x32xf32>
    %54 = arith.addf %35, %53 : vector<8x32xf32>
    %55 = vector.extract_strided_slice %13 {offsets = [0, 16], sizes = [8, 8], strides = [1, 1]} : vector<8x32xf32> to vector<8x8xf32>
    %56 = vector.extract_strided_slice %14 {offsets = [0, 16], sizes = [8, 8], strides = [1, 1]} : vector<8x32xf32> to vector<8x8xf32>
    %cst_29 = arith.constant dense<0.000000e+00> : vector<8x8xf32>
    %57 = tpu.matmul %55, %56, %cst_29 {dimension_numbers = #tpu.dot_dimension_numbers<[1], [1], [0], [0], [0, 0, 1, 0], [], []>} : vector<8x8xf32>, vector<8x8xf32>, vector<8x8xf32> -> vector<8x8xf32>
    %58 = arith.addf %57, %5 : vector<8x8xf32>
    %cst_30 = arith.constant dense<0xFF800000> : vector<8xf32>
    %59 = vector.multi_reduction <maximumf>, %58, %cst_30 [1] : vector<8x8xf32> to vector<8xf32>
    %60 = vector.shape_cast %59 : vector<8xf32> to vector<8x1xf32>
    %61 = vector.broadcast %60 : vector<8x1xf32> to vector<8x8xf32>
    %62 = arith.subf %58, %61 : vector<8x8xf32>
    %63 = math.exp %62 : vector<8x8xf32>
    %cst_31 = arith.constant dense<0.000000e+00> : vector<8xf32>
    %64 = vector.multi_reduction <add>, %63, %cst_31 [1] : vector<8x8xf32> to vector<8xf32>
    %65 = vector.shape_cast %64 : vector<8xf32> to vector<8x1xf32>
    %66 = tpu.reciprocal %65 {approx = true} : vector<8x1xf32> -> vector<8x1xf32>
    %67 = vector.broadcast %66 : vector<8x1xf32> to vector<8x8xf32>
    %68 = arith.mulf %63, %67 : vector<8x8xf32>
    %69 = vector.extract_strided_slice %15 {offsets = [0, 16], sizes = [8, 8], strides = [1, 1]} : vector<8x32xf32> to vector<8x8xf32>
    %cst_32 = arith.constant dense<0.000000e+00> : vector<8x8xf32>
    %70 = tpu.matmul %68, %69, %cst_32 {dimension_numbers = #tpu.dot_dimension_numbers<[1], [0], [0], [1], [0, 0, 1, 1], [], []>} : vector<8x8xf32>, vector<8x8xf32>, vector<8x8xf32> -> vector<8x8xf32>
    %71 = vector.extract_strided_slice %16 {offsets = [16, 0], sizes = [8, 32], strides = [1, 1]} : vector<32x32xf32> to vector<8x32xf32>
    %cst_33 = arith.constant dense<0.000000e+00> : vector<8x32xf32>
    %72 = tpu.matmul %70, %71, %cst_33 {dimension_numbers = #tpu.dot_dimension_numbers<[1], [0], [0], [1], [0, 0, 1, 1], [], []>} : vector<8x8xf32>, vector<8x32xf32>, vector<8x32xf32> -> vector<8x32xf32>
    %73 = arith.addf %54, %72 : vector<8x32xf32>
    %74 = vector.extract_strided_slice %13 {offsets = [0, 24], sizes = [8, 8], strides = [1, 1]} : vector<8x32xf32> to vector<8x8xf32>
    %75 = vector.extract_strided_slice %14 {offsets = [0, 24], sizes = [8, 8], strides = [1, 1]} : vector<8x32xf32> to vector<8x8xf32>
    %cst_34 = arith.constant dense<0.000000e+00> : vector<8x8xf32>
    %76 = tpu.matmul %74, %75, %cst_34 {dimension_numbers = #tpu.dot_dimension_numbers<[1], [1], [0], [0], [0, 0, 1, 0], [], []>} : vector<8x8xf32>, vector<8x8xf32>, vector<8x8xf32> -> vector<8x8xf32>
    %77 = arith.addf %76, %5 : vector<8x8xf32>
    %cst_35 = arith.constant dense<0xFF800000> : vector<8xf32>
    %78 = vector.multi_reduction <maximumf>, %77, %cst_35 [1] : vector<8x8xf32> to vector<8xf32>
    %79 = vector.shape_cast %78 : vector<8xf32> to vector<8x1xf32>
    %80 = vector.broadcast %79 : vector<8x1xf32> to vector<8x8xf32>
    %81 = arith.subf %77, %80 : vector<8x8xf32>
    %82 = math.exp %81 : vector<8x8xf32>
    %cst_36 = arith.constant dense<0.000000e+00> : vector<8xf32>
    %83 = vector.multi_reduction <add>, %82, %cst_36 [1] : vector<8x8xf32> to vector<8xf32>
    %84 = vector.shape_cast %83 : vector<8xf32> to vector<8x1xf32>
    %85 = tpu.reciprocal %84 {approx = true} : vector<8x1xf32> -> vector<8x1xf32>
    %86 = vector.broadcast %85 : vector<8x1xf32> to vector<8x8xf32>
    %87 = arith.mulf %82, %86 : vector<8x8xf32>
    %88 = vector.extract_strided_slice %15 {offsets = [0, 24], sizes = [8, 8], strides = [1, 1]} : vector<8x32xf32> to vector<8x8xf32>
    %cst_37 = arith.constant dense<0.000000e+00> : vector<8x8xf32>
    %89 = tpu.matmul %87, %88, %cst_37 {dimension_numbers = #tpu.dot_dimension_numbers<[1], [0], [0], [1], [0, 0, 1, 1], [], []>} : vector<8x8xf32>, vector<8x8xf32>, vector<8x8xf32> -> vector<8x8xf32>
    %90 = vector.extract_strided_slice %16 {offsets = [24, 0], sizes = [8, 32], strides = [1, 1]} : vector<32x32xf32> to vector<8x32xf32>
    %cst_38 = arith.constant dense<0.000000e+00> : vector<8x32xf32>
    %91 = tpu.matmul %89, %90, %cst_38 {dimension_numbers = #tpu.dot_dimension_numbers<[1], [0], [0], [1], [0, 0, 1, 1], [], []>} : vector<8x8xf32>, vector<8x32xf32>, vector<8x32xf32> -> vector<8x32xf32>
    %92 = arith.addf %73, %91 : vector<8x32xf32>
    %93 = vector.broadcast %17 : vector<1x32xf32> to vector<8x32xf32>
    %94 = arith.addf %92, %93 : vector<8x32xf32>
    %95 = arith.addf %1, %94 : vector<8x32xf32>
    %c0_39 = arith.constant 0 : index
    %c0_40 = arith.constant 0 : index
    %96 = vector.load %arg9[%c0_39, %c0_40] : memref<1x32xf32, #tpu.memory_space<vmem>>, vector<1x32xf32>
    %c0_41 = arith.constant 0 : index
    %c0_42 = arith.constant 0 : index
    %97 = vector.load %arg10[%c0_41, %c0_42] : memref<1x32xf32, #tpu.memory_space<vmem>>, vector<1x32xf32>
    %cst_43 = arith.constant dense<0.000000e+00> : vector<8xf32>
    %98 = vector.multi_reduction <add>, %95, %cst_43 [1] : vector<8x32xf32> to vector<8xf32>
    %99 = vector.shape_cast %98 : vector<8xf32> to vector<8x1xf32>
    %cst_44 = arith.constant 3.200000e+01 : f32
    %100 = vector.broadcast %cst_44 : f32 to vector<8x1xf32>
    %101 = arith.divf %99, %100 : vector<8x1xf32>
    %102 = vector.broadcast %101 : vector<8x1xf32> to vector<8x32xf32>
    %103 = arith.subf %95, %102 : vector<8x32xf32>
    %104 = arith.mulf %103, %103 : vector<8x32xf32>
    %cst_45 = arith.constant dense<0.000000e+00> : vector<8xf32>
    %105 = vector.multi_reduction <add>, %104, %cst_45 [1] : vector<8x32xf32> to vector<8xf32>
    %106 = vector.shape_cast %105 : vector<8xf32> to vector<8x1xf32>
    %cst_46 = arith.constant 3.200000e+01 : f32
    %107 = vector.broadcast %cst_46 : f32 to vector<8x1xf32>
    %108 = arith.divf %106, %107 : vector<8x1xf32>
    %cst_47 = arith.constant 9.99999974E-6 : f32
    %109 = vector.broadcast %cst_47 : f32 to vector<8x1xf32>
    %110 = arith.addf %108, %109 : vector<8x1xf32>
    %111 = math.rsqrt %110 : vector<8x1xf32>
    %112 = vector.broadcast %111 : vector<8x1xf32> to vector<8x32xf32>
    %113 = arith.mulf %103, %112 : vector<8x32xf32>
    %114 = vector.broadcast %96 : vector<1x32xf32> to vector<8x32xf32>
    %115 = arith.mulf %113, %114 : vector<8x32xf32>
    %116 = vector.broadcast %97 : vector<1x32xf32> to vector<8x32xf32>
    %117 = arith.addf %115, %116 : vector<8x32xf32>
    %c0_48 = arith.constant 0 : index
    %c0_49 = arith.constant 0 : index
    %118 = vector.load %arg11[%c0_48, %c0_49] : memref<32x32xf32, #tpu.memory_space<vmem>>, vector<32x32xf32>
    %cst_50 = arith.constant dense<0.000000e+00> : vector<8x32xf32>
    %119 = tpu.matmul %117, %118, %cst_50 {dimension_numbers = #tpu.dot_dimension_numbers<[1], [0], [0], [1], [0, 0, 1, 1], [], []>} : vector<8x32xf32>, vector<32x32xf32>, vector<8x32xf32> -> vector<8x32xf32>
    %c0_51 = arith.constant 0 : index
    %c0_52 = arith.constant 0 : index
    %120 = vector.load %arg12[%c0_51, %c0_52] : memref<1x32xf32, #tpu.memory_space<vmem>>, vector<1x32xf32>
    %121 = vector.broadcast %120 : vector<1x32xf32> to vector<8x32xf32>
    %122 = arith.addf %119, %121 : vector<8x32xf32>
    %c0_53 = arith.constant 0 : index
    %c0_54 = arith.constant 0 : index
    %123 = vector.load %arg13[%c0_53, %c0_54] : memref<32x64xf32, #tpu.memory_space<vmem>>, vector<32x64xf32>
    %cst_55 = arith.constant dense<0.000000e+00> : vector<12x64xf32>
    %124 = tpu.matmul %3, %123, %cst_55 {dimension_numbers = #tpu.dot_dimension_numbers<[1], [0], [0], [1], [0, 0, 1, 1], [], []>} : vector<12x32xf32>, vector<32x64xf32>, vector<12x64xf32> -> vector<12x64xf32>
    %c0_56 = arith.constant 0 : index
    %c0_57 = arith.constant 0 : index
    %125 = vector.load %arg14[%c0_56, %c0_57] : memref<1x64xf32, #tpu.memory_space<vmem>>, vector<1x64xf32>
    %126 = vector.broadcast %125 : vector<1x64xf32> to vector<12x64xf32>
    %127 = arith.addf %124, %126 : vector<12x64xf32>
    %128 = vector.extract_strided_slice %127 {offsets = [0, 0], sizes = [12, 32], strides = [1, 1]} : vector<12x64xf32> to vector<12x32xf32>
    %129 = vector.extract_strided_slice %127 {offsets = [0, 32], sizes = [12, 32], strides = [1, 1]} : vector<12x64xf32> to vector<12x32xf32>
    %c0_58 = arith.constant 0 : index
    %c0_59 = arith.constant 0 : index
    %130 = vector.load %arg15[%c0_58, %c0_59] : memref<32x32xf32, #tpu.memory_space<vmem>>, vector<32x32xf32>
    %c0_60 = arith.constant 0 : index
    %c0_61 = arith.constant 0 : index
    %131 = vector.load %arg16[%c0_60, %c0_61] : memref<1x32xf32, #tpu.memory_space<vmem>>, vector<1x32xf32>
    %132 = vector.extract_strided_slice %122 {offsets = [0, 0], sizes = [8, 8], strides = [1, 1]} : vector<8x32xf32> to vector<8x8xf32>
    %133 = vector.extract_strided_slice %128 {offsets = [0, 0], sizes = [12, 8], strides = [1, 1]} : vector<12x32xf32> to vector<12x8xf32>
    %cst_62 = arith.constant dense<0.000000e+00> : vector<8x12xf32>
    %134 = tpu.matmul %132, %133, %cst_62 {dimension_numbers = #tpu.dot_dimension_numbers<[1], [1], [0], [0], [0, 0, 1, 0], [], []>} : vector<8x8xf32>, vector<12x8xf32>, vector<8x12xf32> -> vector<8x12xf32>
    %135 = vector.broadcast %7 : vector<1x12xf32> to vector<8x12xf32>
    %136 = arith.addf %134, %135 : vector<8x12xf32>
    %cst_63 = arith.constant dense<0xFF800000> : vector<8xf32>
    %137 = vector.multi_reduction <maximumf>, %136, %cst_63 [1] : vector<8x12xf32> to vector<8xf32>
    %138 = vector.shape_cast %137 : vector<8xf32> to vector<8x1xf32>
    %139 = vector.broadcast %138 : vector<8x1xf32> to vector<8x12xf32>
    %140 = arith.subf %136, %139 : vector<8x12xf32>
    %141 = math.exp %140 : vector<8x12xf32>
    %cst_64 = arith.constant dense<0.000000e+00> : vector<8xf32>
    %142 = vector.multi_reduction <add>, %141, %cst_64 [1] : vector<8x12xf32> to vector<8xf32>
    %143 = vector.shape_cast %142 : vector<8xf32> to vector<8x1xf32>
    %144 = tpu.reciprocal %143 {approx = true} : vector<8x1xf32> -> vector<8x1xf32>
    %145 = vector.broadcast %144 : vector<8x1xf32> to vector<8x12xf32>
    %146 = arith.mulf %141, %145 : vector<8x12xf32>
    %147 = vector.extract_strided_slice %129 {offsets = [0, 0], sizes = [12, 8], strides = [1, 1]} : vector<12x32xf32> to vector<12x8xf32>
    %cst_65 = arith.constant dense<0.000000e+00> : vector<8x8xf32>
    %148 = tpu.matmul %146, %147, %cst_65 {dimension_numbers = #tpu.dot_dimension_numbers<[1], [0], [0], [1], [0, 0, 1, 1], [], []>} : vector<8x12xf32>, vector<12x8xf32>, vector<8x8xf32> -> vector<8x8xf32>
    %149 = vector.extract_strided_slice %130 {offsets = [0, 0], sizes = [8, 32], strides = [1, 1]} : vector<32x32xf32> to vector<8x32xf32>
    %cst_66 = arith.constant dense<0.000000e+00> : vector<8x32xf32>
    %150 = tpu.matmul %148, %149, %cst_66 {dimension_numbers = #tpu.dot_dimension_numbers<[1], [0], [0], [1], [0, 0, 1, 1], [], []>} : vector<8x8xf32>, vector<8x32xf32>, vector<8x32xf32> -> vector<8x32xf32>
    %151 = vector.extract_strided_slice %122 {offsets = [0, 8], sizes = [8, 8], strides = [1, 1]} : vector<8x32xf32> to vector<8x8xf32>
    %152 = vector.extract_strided_slice %128 {offsets = [0, 8], sizes = [12, 8], strides = [1, 1]} : vector<12x32xf32> to vector<12x8xf32>
    %cst_67 = arith.constant dense<0.000000e+00> : vector<8x12xf32>
    %153 = tpu.matmul %151, %152, %cst_67 {dimension_numbers = #tpu.dot_dimension_numbers<[1], [1], [0], [0], [0, 0, 1, 0], [], []>} : vector<8x8xf32>, vector<12x8xf32>, vector<8x12xf32> -> vector<8x12xf32>
    %154 = vector.broadcast %7 : vector<1x12xf32> to vector<8x12xf32>
    %155 = arith.addf %153, %154 : vector<8x12xf32>
    %cst_68 = arith.constant dense<0xFF800000> : vector<8xf32>
    %156 = vector.multi_reduction <maximumf>, %155, %cst_68 [1] : vector<8x12xf32> to vector<8xf32>
    %157 = vector.shape_cast %156 : vector<8xf32> to vector<8x1xf32>
    %158 = vector.broadcast %157 : vector<8x1xf32> to vector<8x12xf32>
    %159 = arith.subf %155, %158 : vector<8x12xf32>
    %160 = math.exp %159 : vector<8x12xf32>
    %cst_69 = arith.constant dense<0.000000e+00> : vector<8xf32>
    %161 = vector.multi_reduction <add>, %160, %cst_69 [1] : vector<8x12xf32> to vector<8xf32>
    %162 = vector.shape_cast %161 : vector<8xf32> to vector<8x1xf32>
    %163 = tpu.reciprocal %162 {approx = true} : vector<8x1xf32> -> vector<8x1xf32>
    %164 = vector.broadcast %163 : vector<8x1xf32> to vector<8x12xf32>
    %165 = arith.mulf %160, %164 : vector<8x12xf32>
    %166 = vector.extract_strided_slice %129 {offsets = [0, 8], sizes = [12, 8], strides = [1, 1]} : vector<12x32xf32> to vector<12x8xf32>
    %cst_70 = arith.constant dense<0.000000e+00> : vector<8x8xf32>
    %167 = tpu.matmul %165, %166, %cst_70 {dimension_numbers = #tpu.dot_dimension_numbers<[1], [0], [0], [1], [0, 0, 1, 1], [], []>} : vector<8x12xf32>, vector<12x8xf32>, vector<8x8xf32> -> vector<8x8xf32>
    %168 = vector.extract_strided_slice %130 {offsets = [8, 0], sizes = [8, 32], strides = [1, 1]} : vector<32x32xf32> to vector<8x32xf32>
    %cst_71 = arith.constant dense<0.000000e+00> : vector<8x32xf32>
    %169 = tpu.matmul %167, %168, %cst_71 {dimension_numbers = #tpu.dot_dimension_numbers<[1], [0], [0], [1], [0, 0, 1, 1], [], []>} : vector<8x8xf32>, vector<8x32xf32>, vector<8x32xf32> -> vector<8x32xf32>
    %170 = arith.addf %150, %169 : vector<8x32xf32>
    %171 = vector.extract_strided_slice %122 {offsets = [0, 16], sizes = [8, 8], strides = [1, 1]} : vector<8x32xf32> to vector<8x8xf32>
    %172 = vector.extract_strided_slice %128 {offsets = [0, 16], sizes = [12, 8], strides = [1, 1]} : vector<12x32xf32> to vector<12x8xf32>
    %cst_72 = arith.constant dense<0.000000e+00> : vector<8x12xf32>
    %173 = tpu.matmul %171, %172, %cst_72 {dimension_numbers = #tpu.dot_dimension_numbers<[1], [1], [0], [0], [0, 0, 1, 0], [], []>} : vector<8x8xf32>, vector<12x8xf32>, vector<8x12xf32> -> vector<8x12xf32>
    %174 = vector.broadcast %7 : vector<1x12xf32> to vector<8x12xf32>
    %175 = arith.addf %173, %174 : vector<8x12xf32>
    %cst_73 = arith.constant dense<0xFF800000> : vector<8xf32>
    %176 = vector.multi_reduction <maximumf>, %175, %cst_73 [1] : vector<8x12xf32> to vector<8xf32>
    %177 = vector.shape_cast %176 : vector<8xf32> to vector<8x1xf32>
    %178 = vector.broadcast %177 : vector<8x1xf32> to vector<8x12xf32>
    %179 = arith.subf %175, %178 : vector<8x12xf32>
    %180 = math.exp %179 : vector<8x12xf32>
    %cst_74 = arith.constant dense<0.000000e+00> : vector<8xf32>
    %181 = vector.multi_reduction <add>, %180, %cst_74 [1] : vector<8x12xf32> to vector<8xf32>
    %182 = vector.shape_cast %181 : vector<8xf32> to vector<8x1xf32>
    %183 = tpu.reciprocal %182 {approx = true} : vector<8x1xf32> -> vector<8x1xf32>
    %184 = vector.broadcast %183 : vector<8x1xf32> to vector<8x12xf32>
    %185 = arith.mulf %180, %184 : vector<8x12xf32>
    %186 = vector.extract_strided_slice %129 {offsets = [0, 16], sizes = [12, 8], strides = [1, 1]} : vector<12x32xf32> to vector<12x8xf32>
    %cst_75 = arith.constant dense<0.000000e+00> : vector<8x8xf32>
    %187 = tpu.matmul %185, %186, %cst_75 {dimension_numbers = #tpu.dot_dimension_numbers<[1], [0], [0], [1], [0, 0, 1, 1], [], []>} : vector<8x12xf32>, vector<12x8xf32>, vector<8x8xf32> -> vector<8x8xf32>
    %188 = vector.extract_strided_slice %130 {offsets = [16, 0], sizes = [8, 32], strides = [1, 1]} : vector<32x32xf32> to vector<8x32xf32>
    %cst_76 = arith.constant dense<0.000000e+00> : vector<8x32xf32>
    %189 = tpu.matmul %187, %188, %cst_76 {dimension_numbers = #tpu.dot_dimension_numbers<[1], [0], [0], [1], [0, 0, 1, 1], [], []>} : vector<8x8xf32>, vector<8x32xf32>, vector<8x32xf32> -> vector<8x32xf32>
    %190 = arith.addf %170, %189 : vector<8x32xf32>
    %191 = vector.extract_strided_slice %122 {offsets = [0, 24], sizes = [8, 8], strides = [1, 1]} : vector<8x32xf32> to vector<8x8xf32>
    %192 = vector.extract_strided_slice %128 {offsets = [0, 24], sizes = [12, 8], strides = [1, 1]} : vector<12x32xf32> to vector<12x8xf32>
    %cst_77 = arith.constant dense<0.000000e+00> : vector<8x12xf32>
    %193 = tpu.matmul %191, %192, %cst_77 {dimension_numbers = #tpu.dot_dimension_numbers<[1], [1], [0], [0], [0, 0, 1, 0], [], []>} : vector<8x8xf32>, vector<12x8xf32>, vector<8x12xf32> -> vector<8x12xf32>
    %194 = vector.broadcast %7 : vector<1x12xf32> to vector<8x12xf32>
    %195 = arith.addf %193, %194 : vector<8x12xf32>
    %cst_78 = arith.constant dense<0xFF800000> : vector<8xf32>
    %196 = vector.multi_reduction <maximumf>, %195, %cst_78 [1] : vector<8x12xf32> to vector<8xf32>
    %197 = vector.shape_cast %196 : vector<8xf32> to vector<8x1xf32>
    %198 = vector.broadcast %197 : vector<8x1xf32> to vector<8x12xf32>
    %199 = arith.subf %195, %198 : vector<8x12xf32>
    %200 = math.exp %199 : vector<8x12xf32>
    %cst_79 = arith.constant dense<0.000000e+00> : vector<8xf32>
    %201 = vector.multi_reduction <add>, %200, %cst_79 [1] : vector<8x12xf32> to vector<8xf32>
    %202 = vector.shape_cast %201 : vector<8xf32> to vector<8x1xf32>
    %203 = tpu.reciprocal %202 {approx = true} : vector<8x1xf32> -> vector<8x1xf32>
    %204 = vector.broadcast %203 : vector<8x1xf32> to vector<8x12xf32>
    %205 = arith.mulf %200, %204 : vector<8x12xf32>
    %206 = vector.extract_strided_slice %129 {offsets = [0, 24], sizes = [12, 8], strides = [1, 1]} : vector<12x32xf32> to vector<12x8xf32>
    %cst_80 = arith.constant dense<0.000000e+00> : vector<8x8xf32>
    %207 = tpu.matmul %205, %206, %cst_80 {dimension_numbers = #tpu.dot_dimension_numbers<[1], [0], [0], [1], [0, 0, 1, 1], [], []>} : vector<8x12xf32>, vector<12x8xf32>, vector<8x8xf32> -> vector<8x8xf32>
    %208 = vector.extract_strided_slice %130 {offsets = [24, 0], sizes = [8, 32], strides = [1, 1]} : vector<32x32xf32> to vector<8x32xf32>
    %cst_81 = arith.constant dense<0.000000e+00> : vector<8x32xf32>
    %209 = tpu.matmul %207, %208, %cst_81 {dimension_numbers = #tpu.dot_dimension_numbers<[1], [0], [0], [1], [0, 0, 1, 1], [], []>} : vector<8x8xf32>, vector<8x32xf32>, vector<8x32xf32> -> vector<8x32xf32>
    %210 = arith.addf %190, %209 : vector<8x32xf32>
    %211 = vector.broadcast %131 : vector<1x32xf32> to vector<8x32xf32>
    %212 = arith.addf %210, %211 : vector<8x32xf32>
    %213 = arith.addf %117, %212 : vector<8x32xf32>
    %c0_82 = arith.constant 0 : index
    %c0_83 = arith.constant 0 : index
    %214 = vector.load %arg17[%c0_82, %c0_83] : memref<1x32xf32, #tpu.memory_space<vmem>>, vector<1x32xf32>
    %c0_84 = arith.constant 0 : index
    %c0_85 = arith.constant 0 : index
    %215 = vector.load %arg18[%c0_84, %c0_85] : memref<1x32xf32, #tpu.memory_space<vmem>>, vector<1x32xf32>
    %cst_86 = arith.constant dense<0.000000e+00> : vector<8xf32>
    %216 = vector.multi_reduction <add>, %213, %cst_86 [1] : vector<8x32xf32> to vector<8xf32>
    %217 = vector.shape_cast %216 : vector<8xf32> to vector<8x1xf32>
    %cst_87 = arith.constant 3.200000e+01 : f32
    %218 = vector.broadcast %cst_87 : f32 to vector<8x1xf32>
    %219 = arith.divf %217, %218 : vector<8x1xf32>
    %220 = vector.broadcast %219 : vector<8x1xf32> to vector<8x32xf32>
    %221 = arith.subf %213, %220 : vector<8x32xf32>
    %222 = arith.mulf %221, %221 : vector<8x32xf32>
    %cst_88 = arith.constant dense<0.000000e+00> : vector<8xf32>
    %223 = vector.multi_reduction <add>, %222, %cst_88 [1] : vector<8x32xf32> to vector<8xf32>
    %224 = vector.shape_cast %223 : vector<8xf32> to vector<8x1xf32>
    %cst_89 = arith.constant 3.200000e+01 : f32
    %225 = vector.broadcast %cst_89 : f32 to vector<8x1xf32>
    %226 = arith.divf %224, %225 : vector<8x1xf32>
    %cst_90 = arith.constant 9.99999974E-6 : f32
    %227 = vector.broadcast %cst_90 : f32 to vector<8x1xf32>
    %228 = arith.addf %226, %227 : vector<8x1xf32>
    %229 = math.rsqrt %228 : vector<8x1xf32>
    %230 = vector.broadcast %229 : vector<8x1xf32> to vector<8x32xf32>
    %231 = arith.mulf %221, %230 : vector<8x32xf32>
    %232 = vector.broadcast %214 : vector<1x32xf32> to vector<8x32xf32>
    %233 = arith.mulf %231, %232 : vector<8x32xf32>
    %234 = vector.broadcast %215 : vector<1x32xf32> to vector<8x32xf32>
    %235 = arith.addf %233, %234 : vector<8x32xf32>
    %c0_91 = arith.constant 0 : index
    %c0_92 = arith.constant 0 : index
    %236 = vector.load %arg19[%c0_91, %c0_92] : memref<32x64xf32, #tpu.memory_space<vmem>>, vector<32x64xf32>
    %cst_93 = arith.constant dense<0.000000e+00> : vector<8x64xf32>
    %237 = tpu.matmul %235, %236, %cst_93 {dimension_numbers = #tpu.dot_dimension_numbers<[1], [0], [0], [1], [0, 0, 1, 1], [], []>} : vector<8x32xf32>, vector<32x64xf32>, vector<8x64xf32> -> vector<8x64xf32>
    %c0_94 = arith.constant 0 : index
    %c0_95 = arith.constant 0 : index
    %238 = vector.load %arg20[%c0_94, %c0_95] : memref<1x64xf32, #tpu.memory_space<vmem>>, vector<1x64xf32>
    %239 = vector.broadcast %238 : vector<1x64xf32> to vector<8x64xf32>
    %240 = arith.addf %237, %239 : vector<8x64xf32>
    %cst_96 = arith.constant 0.000000e+00 : f32
    %241 = vector.broadcast %cst_96 : f32 to vector<8x64xf32>
    %242 = arith.maximumf %240, %241 : vector<8x64xf32>
    %c0_97 = arith.constant 0 : index
    %c0_98 = arith.constant 0 : index
    %243 = vector.load %arg21[%c0_97, %c0_98] : memref<64x32xf32, #tpu.memory_space<vmem>>, vector<64x32xf32>
    %cst_99 = arith.constant dense<0.000000e+00> : vector<8x32xf32>
    %244 = tpu.matmul %242, %243, %cst_99 {dimension_numbers = #tpu.dot_dimension_numbers<[1], [0], [0], [1], [0, 0, 1, 1], [], []>} : vector<8x64xf32>, vector<64x32xf32>, vector<8x32xf32> -> vector<8x32xf32>
    %c0_100 = arith.constant 0 : index
    %c0_101 = arith.constant 0 : index
    %245 = vector.load %arg22[%c0_100, %c0_101] : memref<1x32xf32, #tpu.memory_space<vmem>>, vector<1x32xf32>
    %246 = vector.broadcast %245 : vector<1x32xf32> to vector<8x32xf32>
    %247 = arith.addf %244, %246 : vector<8x32xf32>
    %248 = arith.addf %235, %247 : vector<8x32xf32>
    %c0_102 = arith.constant 0 : index
    %c0_103 = arith.constant 0 : index
    %249 = vector.load %arg23[%c0_102, %c0_103] : memref<1x32xf32, #tpu.memory_space<vmem>>, vector<1x32xf32>
    %c0_104 = arith.constant 0 : index
    %c0_105 = arith.constant 0 : index
    %250 = vector.load %arg24[%c0_104, %c0_105] : memref<1x32xf32, #tpu.memory_space<vmem>>, vector<1x32xf32>
    %cst_106 = arith.constant dense<0.000000e+00> : vector<8xf32>
    %251 = vector.multi_reduction <add>, %248, %cst_106 [1] : vector<8x32xf32> to vector<8xf32>
    %252 = vector.shape_cast %251 : vector<8xf32> to vector<8x1xf32>
    %cst_107 = arith.constant 3.200000e+01 : f32
    %253 = vector.broadcast %cst_107 : f32 to vector<8x1xf32>
    %254 = arith.divf %252, %253 : vector<8x1xf32>
    %255 = vector.broadcast %254 : vector<8x1xf32> to vector<8x32xf32>
    %256 = arith.subf %248, %255 : vector<8x32xf32>
    %257 = arith.mulf %256, %256 : vector<8x32xf32>
    %cst_108 = arith.constant dense<0.000000e+00> : vector<8xf32>
    %258 = vector.multi_reduction <add>, %257, %cst_108 [1] : vector<8x32xf32> to vector<8xf32>
    %259 = vector.shape_cast %258 : vector<8xf32> to vector<8x1xf32>
    %cst_109 = arith.constant 3.200000e+01 : f32
    %260 = vector.broadcast %cst_109 : f32 to vector<8x1xf32>
    %261 = arith.divf %259, %260 : vector<8x1xf32>
    %cst_110 = arith.constant 9.99999974E-6 : f32
    %262 = vector.broadcast %cst_110 : f32 to vector<8x1xf32>
    %263 = arith.addf %261, %262 : vector<8x1xf32>
    %264 = math.rsqrt %263 : vector<8x1xf32>
    %265 = vector.broadcast %264 : vector<8x1xf32> to vector<8x32xf32>
    %266 = arith.mulf %256, %265 : vector<8x32xf32>
    %267 = vector.broadcast %249 : vector<1x32xf32> to vector<8x32xf32>
    %268 = arith.mulf %266, %267 : vector<8x32xf32>
    %269 = vector.broadcast %250 : vector<1x32xf32> to vector<8x32xf32>
    %270 = arith.addf %268, %269 : vector<8x32xf32>
    %c0_111 = arith.constant 0 : index
    %c0_112 = arith.constant 0 : index
    %c0_113 = arith.constant 0 : index
    %271 = vector.load %arg25[%c0_111, %c0_112, %c0_113] : memref<1x8x32xf32, #tpu.memory_space<vmem>>, vector<1x8x32xf32>
    %272 = vector.shape_cast %271 : vector<1x8x32xf32> to vector<8x32xf32>
    %273 = vector.shape_cast %270 : vector<8x32xf32> to vector<1x8x32xf32>
    tpu.vector_store %arg25[%c0_111, %c0_112, %c0_113], %273 {strides = array<i32>} : memref<1x8x32xf32, #tpu.memory_space<vmem>>, vector<1x8x32xf32>,
    return
  }
  func.func @transform_0(%arg0: i32) -> (i32, i32, i32) {
    %c0_i32 = arith.constant 0 : i32
    %c0_i32_0 = arith.constant 0 : i32
    %c0_i32_1 = arith.constant 0 : i32
    return %arg0, %c0_i32, %c0_i32_0 : i32, i32, i32
  }
  func.func @transform_1(%arg0: i32) -> (i32, i32, i32) {
    %c0_i32 = arith.constant 0 : i32
    %c0_i32_0 = arith.constant 0 : i32
    %c0_i32_1 = arith.constant 0 : i32
    return %arg0, %c0_i32, %c0_i32_0 : i32, i32, i32
  }
  func.func @transform_2(%arg0: i32) -> (i32, i32, i32) {
    %c0_i32 = arith.constant 0 : i32
    %c0_i32_0 = arith.constant 0 : i32
    %c0_i32_1 = arith.constant 0 : i32
    return %arg0, %c0_i32, %c0_i32_0 : i32, i32, i32
  }
  func.func @transform_3(%arg0: i32) -> (i32, i32, i32) {
    %c0_i32 = arith.constant 0 : i32
    %c0_i32_0 = arith.constant 0 : i32
    %c0_i32_1 = arith.constant 0 : i32
    return %arg0, %c0_i32, %c0_i32_0 : i32, i32, i32
  }
  func.func @transform_4(%arg0: i32) -> (i32, i32) {
    %c0_i32 = arith.constant 0 : i32
    %c0_i32_0 = arith.constant 0 : i32
    %c0_i32_1 = arith.constant 0 : i32
    return %c0_i32, %c0_i32_0 : i32, i32
  }
  func.func @transform_5(%arg0: i32) -> (i32, i32) {
    %c0_i32 = arith.constant 0 : i32
    %c0_i32_0 = arith.constant 0 : i32
    %c0_i32_1 = arith.constant 0 : i32
    return %c0_i32, %c0_i32_0 : i32, i32
  }
  func.func @transform_6(%arg0: i32) -> (i32, i32) {
    %c0_i32 = arith.constant 0 : i32
    %c0_i32_0 = arith.constant 0 : i32
    %c0_i32_1 = arith.constant 0 : i32
    return %c0_i32, %c0_i32_0 : i32, i32
  }
  func.func @transform_7(%arg0: i32) -> (i32, i32) {
    %c0_i32 = arith.constant 0 : i32
    %c0_i32_0 = arith.constant 0 : i32
    %c0_i32_1 = arith.constant 0 : i32
    return %c0_i32, %c0_i32_0 : i32, i32
  }
  func.func @transform_8(%arg0: i32) -> (i32, i32) {
    %c0_i32 = arith.constant 0 : i32
    %c0_i32_0 = arith.constant 0 : i32
    %c0_i32_1 = arith.constant 0 : i32
    return %c0_i32, %c0_i32_0 : i32, i32
  }
  func.func @transform_9(%arg0: i32) -> (i32, i32) {
    %c0_i32 = arith.constant 0 : i32
    %c0_i32_0 = arith.constant 0 : i32
    %c0_i32_1 = arith.constant 0 : i32
    return %c0_i32, %c0_i32_0 : i32, i32
  }
  func.func @transform_10(%arg0: i32) -> (i32, i32) {
    %c0_i32 = arith.constant 0 : i32
    %c0_i32_0 = arith.constant 0 : i32
    %c0_i32_1 = arith.constant 0 : i32
    return %c0_i32, %c0_i32_0 : i32, i32
  }
  func.func @transform_11(%arg0: i32) -> (i32, i32) {
    %c0_i32 = arith.constant 0 : i32
    %c0_i32_0 = arith.constant 0 : i32
    %c0_i32_1 = arith.constant 0 : i32
    return %c0_i32, %c0_i32_0 : i32, i32
  }
  func.func @transform_12(%arg0: i32) -> (i32, i32) {
    %c0_i32 = arith.constant 0 : i32
    %c0_i32_0 = arith.constant 0 : i32
    %c0_i32_1 = arith.constant 0 : i32
    return %c0_i32, %c0_i32_0 : i32, i32
  }
  func.func @transform_13(%arg0: i32) -> (i32, i32) {
    %c0_i32 = arith.constant 0 : i32
    %c0_i32_0 = arith.constant 0 : i32
    %c0_i32_1 = arith.constant 0 : i32
    return %c0_i32, %c0_i32_0 : i32, i32
  }
  func.func @transform_14(%arg0: i32) -> (i32, i32) {
    %c0_i32 = arith.constant 0 : i32
    %c0_i32_0 = arith.constant 0 : i32
    %c0_i32_1 = arith.constant 0 : i32
    return %c0_i32, %c0_i32_0 : i32, i32
  }
  func.func @transform_15(%arg0: i32) -> (i32, i32) {
    %c0_i32 = arith.constant 0 : i32
    %c0_i32_0 = arith.constant 0 : i32
    %c0_i32_1 = arith.constant 0 : i32
    return %c0_i32, %c0_i32_0 : i32, i32
  }
  func.func @transform_16(%arg0: i32) -> (i32, i32) {
    %c0_i32 = arith.constant 0 : i32
    %c0_i32_0 = arith.constant 0 : i32
    %c0_i32_1 = arith.constant 0 : i32
    return %c0_i32, %c0_i32_0 : i32, i32
  }
  func.func @transform_17(%arg0: i32) -> (i32, i32) {
    %c0_i32 = arith.constant 0 : i32
    %c0_i32_0 = arith.constant 0 : i32
    %c0_i32_1 = arith.constant 0 : i32
    return %c0_i32, %c0_i32_0 : i32, i32
  }
  func.func @transform_18(%arg0: i32) -> (i32, i32) {
    %c0_i32 = arith.constant 0 : i32
    %c0_i32_0 = arith.constant 0 : i32
    %c0_i32_1 = arith.constant 0 : i32
    return %c0_i32, %c0_i32_0 : i32, i32
  }
  func.func @transform_19(%arg0: i32) -> (i32, i32) {
    %c0_i32 = arith.constant 0 : i32
    %c0_i32_0 = arith.constant 0 : i32
    %c0_i32_1 = arith.constant 0 : i32
    return %c0_i32, %c0_i32_0 : i32, i32
  }
  func.func @transform_20(%arg0: i32) -> (i32, i32) {
    %c0_i32 = arith.constant 0 : i32
    %c0_i32_0 = arith.constant 0 : i32
    %c0_i32_1 = arith.constant 0 : i32
    return %c0_i32, %c0_i32_0 : i32, i32
  }
  func.func @transform_21(%arg0: i32) -> (i32, i32) {
    %c0_i32 = arith.constant 0 : i32
    %c0_i32_0 = arith.constant 0 : i32
    %c0_i32_1 = arith.constant 0 : i32
    return %c0_i32, %c0_i32_0 : i32, i32
  }
  func.func @transform_22(%arg0: i32) -> (i32, i32) {
    %c0_i32 = arith.constant 0 : i32
    %c0_i32_0 = arith.constant 0 : i32
    %c0_i32_1 = arith.constant 0 : i32
    return %c0_i32, %c0_i32_0 : i32, i32
  }
  func.func @transform_23(%arg0: i32) -> (i32, i32) {
    %c0_i32 = arith.constant 0 : i32
    %c0_i32_0 = arith.constant 0 : i32
    %c0_i32_1 = arith.constant 0 : i32
    return %c0_i32, %c0_i32_0 : i32, i32
  }
  func.func @transform_24(%arg0: i32) -> (i32, i32, i32) {
    %c0_i32 = arith.constant 0 : i32
    %c0_i32_0 = arith.constant 0 : i32
    %c0_i32_1 = arith.constant 0 : i32
    return %arg0, %c0_i32, %c0_i32_0 : i32, i32, i32
  }
}

module attributes {stable_mosaic.version = 11 : i64} {
  func.func @_ln_linear_kernel(%arg0: i32, %arg1: memref<16x32xf32, #tpu.memory_space<vmem>>, %arg2: memref<1x32xf32, #tpu.memory_space<vmem>>, %arg3: memref<1x32xf32, #tpu.memory_space<vmem>>, %arg4: memref<32x56xf32, #tpu.memory_space<vmem>>, %arg5: memref<1x56xf32, #tpu.memory_space<vmem>>, %arg6: memref<16x56xf32, #tpu.memory_space<vmem>>) attributes {dimension_semantics = [#tpu.dimension_semantics<arbitrary>], iteration_bounds = array<i64: 1>, scalar_prefetch = 0 : i64, scratch_operands = 0 : i64, tpu.core_type = #tpu.core_type<tc>, window_params = [{pipeline_mode = #tpu.pipeline_mode<synchronous>, transform_indices = @transform_0, window_bounds = array<i64: 16, 32>}, {pipeline_mode = #tpu.pipeline_mode<synchronous>, transform_indices = @transform_1, window_bounds = array<i64: 1, 32>}, {pipeline_mode = #tpu.pipeline_mode<synchronous>, transform_indices = @transform_2, window_bounds = array<i64: 1, 32>}, {pipeline_mode = #tpu.pipeline_mode<synchronous>, transform_indices = @transform_3, window_bounds = array<i64: 32, 56>}, {pipeline_mode = #tpu.pipeline_mode<synchronous>, transform_indices = @transform_4, window_bounds = array<i64: 1, 56>}, {pipeline_mode = #tpu.pipeline_mode<synchronous>, transform_indices = @transform_5, window_bounds = array<i64: 16, 56>}]} {
    %c0 = arith.constant 0 : index
    %c0_0 = arith.constant 0 : index
    %0 = vector.load %arg1[%c0, %c0_0] : memref<16x32xf32, #tpu.memory_space<vmem>>, vector<16x32xf32>
    %c0_1 = arith.constant 0 : index
    %c0_2 = arith.constant 0 : index
    %1 = vector.load %arg2[%c0_1, %c0_2] : memref<1x32xf32, #tpu.memory_space<vmem>>, vector<1x32xf32>
    %c0_3 = arith.constant 0 : index
    %c0_4 = arith.constant 0 : index
    %2 = vector.load %arg3[%c0_3, %c0_4] : memref<1x32xf32, #tpu.memory_space<vmem>>, vector<1x32xf32>
    %cst = arith.constant dense<0.000000e+00> : vector<16xf32>
    %3 = vector.multi_reduction <add>, %0, %cst [1] : vector<16x32xf32> to vector<16xf32>
    %4 = vector.shape_cast %3 : vector<16xf32> to vector<16x1xf32>
    %cst_5 = arith.constant 3.200000e+01 : f32
    %5 = vector.broadcast %cst_5 : f32 to vector<16x1xf32>
    %6 = arith.divf %4, %5 : vector<16x1xf32>
    %7 = vector.broadcast %6 : vector<16x1xf32> to vector<16x32xf32>
    %8 = arith.subf %0, %7 : vector<16x32xf32>
    %9 = arith.mulf %8, %8 : vector<16x32xf32>
    %cst_6 = arith.constant dense<0.000000e+00> : vector<16xf32>
    %10 = vector.multi_reduction <add>, %9, %cst_6 [1] : vector<16x32xf32> to vector<16xf32>
    %11 = vector.shape_cast %10 : vector<16xf32> to vector<16x1xf32>
    %cst_7 = arith.constant 3.200000e+01 : f32
    %12 = vector.broadcast %cst_7 : f32 to vector<16x1xf32>
    %13 = arith.divf %11, %12 : vector<16x1xf32>
    %cst_8 = arith.constant 9.99999974E-6 : f32
    %14 = vector.broadcast %cst_8 : f32 to vector<16x1xf32>
    %15 = arith.addf %13, %14 : vector<16x1xf32>
    %16 = math.rsqrt %15 : vector<16x1xf32>
    %17 = vector.broadcast %16 : vector<16x1xf32> to vector<16x32xf32>
    %18 = arith.mulf %8, %17 : vector<16x32xf32>
    %19 = vector.broadcast %1 : vector<1x32xf32> to vector<16x32xf32>
    %20 = arith.mulf %18, %19 : vector<16x32xf32>
    %21 = vector.broadcast %2 : vector<1x32xf32> to vector<16x32xf32>
    %22 = arith.addf %20, %21 : vector<16x32xf32>
    %c0_9 = arith.constant 0 : index
    %c0_10 = arith.constant 0 : index
    %23 = vector.load %arg4[%c0_9, %c0_10] : memref<32x56xf32, #tpu.memory_space<vmem>>, vector<32x56xf32>
    %cst_11 = arith.constant dense<0.000000e+00> : vector<16x56xf32>
    %24 = tpu.matmul %22, %23, %cst_11 {dimension_numbers = #tpu.dot_dimension_numbers<[1], [0], [0], [1], [0, 0, 1, 1], [], []>} : vector<16x32xf32>, vector<32x56xf32>, vector<16x56xf32> -> vector<16x56xf32>
    %c0_12 = arith.constant 0 : index
    %c0_13 = arith.constant 0 : index
    %25 = vector.load %arg5[%c0_12, %c0_13] : memref<1x56xf32, #tpu.memory_space<vmem>>, vector<1x56xf32>
    %26 = vector.broadcast %25 : vector<1x56xf32> to vector<16x56xf32>
    %27 = arith.addf %24, %26 : vector<16x56xf32>
    %c0_14 = arith.constant 0 : index
    %c0_15 = arith.constant 0 : index
    %28 = vector.load %arg6[%c0_14, %c0_15] : memref<16x56xf32, #tpu.memory_space<vmem>>, vector<16x56xf32>
    tpu.vector_store %arg6[%c0_14, %c0_15], %27 {strides = array<i32>} : memref<16x56xf32, #tpu.memory_space<vmem>>, vector<16x56xf32>,
    return
  }
  func.func @transform_0(%arg0: i32) -> (i32, i32) {
    %c0_i32 = arith.constant 0 : i32
    %c0_i32_0 = arith.constant 0 : i32
    %c0_i32_1 = arith.constant 0 : i32
    return %c0_i32, %c0_i32_0 : i32, i32
  }
  func.func @transform_1(%arg0: i32) -> (i32, i32) {
    %c0_i32 = arith.constant 0 : i32
    %c0_i32_0 = arith.constant 0 : i32
    %c0_i32_1 = arith.constant 0 : i32
    return %c0_i32, %c0_i32_0 : i32, i32
  }
  func.func @transform_2(%arg0: i32) -> (i32, i32) {
    %c0_i32 = arith.constant 0 : i32
    %c0_i32_0 = arith.constant 0 : i32
    %c0_i32_1 = arith.constant 0 : i32
    return %c0_i32, %c0_i32_0 : i32, i32
  }
  func.func @transform_3(%arg0: i32) -> (i32, i32) {
    %c0_i32 = arith.constant 0 : i32
    %c0_i32_0 = arith.constant 0 : i32
    %c0_i32_1 = arith.constant 0 : i32
    return %c0_i32, %c0_i32_0 : i32, i32
  }
  func.func @transform_4(%arg0: i32) -> (i32, i32) {
    %c0_i32 = arith.constant 0 : i32
    %c0_i32_0 = arith.constant 0 : i32
    %c0_i32_1 = arith.constant 0 : i32
    return %c0_i32, %c0_i32_0 : i32, i32
  }
  func.func @transform_5(%arg0: i32) -> (i32, i32) {
    %c0_i32 = arith.constant 0 : i32
    %c0_i32_0 = arith.constant 0 : i32
    %c0_i32_1 = arith.constant 0 : i32
    return %c0_i32, %c0_i32_0 : i32, i32
  }
}

</mosaic_0001>

<bundles_post_ra>
// kernel: seq2seq_forward.8
= control target key start
LH: loop header
LB: loop body
LE: loop exit
PB: predicated region body
PF: predicated region fallthrough
CT: control target
= control target key end

     0   :  { %vm19_vm0 = vcmask 261120   ;;  %s146_s0 = inlined_call_operand.vmem [shape: f32[24,32], index: 0, kind: input, shape index: {}]   ;;  %s147_s1 = inlined_call_operand.vmem [shape: f32[1,32], index: 1, kind: input, shape index: {}]   ;;  %s148_s2 = inlined_call_operand.vmem [shape: f32[1,32], index: 2, kind: input, shape index: {}]   ;;  %s149_s3 = inlined_call_operand.vmem [shape: f32[24,32], index: 3, kind: output, shape index: {}]  }
   0x1   :  { %v14_v0 = vld [vmem:[%s146_s0] sm:$0xff]  ;;  %v16_v1 = vld [vmem:[%s146_s0 + $0x10] sm:$0xff]  ;;  %v15_v2 = vld [vmem:[%s146_s0 + $0x8] sm:$0xff] }
   0x2   :  { %v20_v3 = vsel %vm19_vm0, %v14_v0, 0.0  ;;  %v26_v4 = vsel %vm19_vm0, %v16_v1, 0.0  ;;  %v23_v5 = vsel %vm19_vm0, %v15_v2, 0.0  ;;  %v85_v31 = vld [vmem:[%s147_s1] ss:$0 sm:$0xff] }
   0x3   :  { %21 = vadd.xlane.f32.xlu0 %v20_v3  ;;  %27 = vadd.xlane.f32.xlu1 %v26_v4  ;;  %v86_v33 = vld [vmem:[%s148_s2] ss:$0 sm:$0xff] }
   0x7   :  { %24 = vadd.xlane.f32.xlu0 %v23_v5 }
  0x90   :  { %v22_v6 = vpop.xlane.xlu0 %21  ;;  %v28_v7 = vpop.xlane.xlu1 %27 }
  0x91   :  { %v30_v8 = vmul.f32 0.03125, %v22_v6  ;;  %v32_v9 = vmul.f32 0.03125, %v28_v7 }
  0x93   :  { %v33_v10 = vsub.f32 %v14_v0, %v30_v8  ;;  %v35_v11 = vsub.f32 %v16_v1, %v32_v9 }
  0x94   :  { %v25_v12 = vpop.xlane.xlu0 %24 }
  0x95   :  { %v31_v13 = vmul.f32 0.03125, %v25_v12  ;;  %v36_v14 = vmul.f32 %v33_v10, %v33_v10  ;;  %v38_v15 = vmul.f32 %v35_v11, %v35_v11 }
  0x97   :  { %v34_v16 = vsub.f32 %v15_v2, %v31_v13  ;;  %v39_v17 = vsel %vm19_vm0, %v36_v14, 0.0  ;;  %v45_v18 = vsel %vm19_vm0, %v38_v15, 0.0 }
  0x98   :  { %40 = vadd.xlane.f32.xlu1 %v39_v17 }
  0x99   :  { %v37_v19 = vmul.f32 %v34_v16, %v34_v16 }
  0x9b   :  { %v42_v20 = vsel %vm19_vm0, %v37_v19, 0.0 }
  0x9c   :  { %46 = vadd.xlane.f32.xlu1 %v45_v18  ;;  %43 = vadd.xlane.f32.xlu0 %v42_v20 }
 0x125   :  { %v41_v21 = vpop.xlane.xlu1 %40 }
 0x126   :  { %v48_v22 = vmul.f32 0.03125, %v41_v21 }
 0x128   :  { %v51_v23 = vadd.f32 1e-05, %v48_v22 }
 0x129   :  { %v47_v24 = vpop.xlane.xlu1 %46  ;;  %v44_v25 = vpop.xlane.xlu0 %43 }
 0x12a   :  { %87 = vrsqrt.f32 %v51_v23  ;;  %v50_v26 = vmul.f32 0.03125, %v47_v24  ;;  %v49_v27 = vmul.f32 0.03125, %v44_v25 }
 0x12c   :  { %v53_v28 = vadd.f32 1e-05, %v50_v26  ;;  %v52_v29 = vadd.f32 1e-05, %v49_v27 }
 0x12e   :  { %89 = vrsqrt.f32 %v53_v28 }
 0x12f   :  { %91 = vrsqrt.f32 %v52_v29 }
 0x134   :  { %v88_v30 = vpop.eup %87 }
 0x135   :  { %v57_v32 = vmul.f32 %v88_v30, %v33_v10 }
 0x137   :  { %v66_v34 = vmul.f32 %v85_v31, %v57_v32 }
 0x138   :  { %v90_v35 = vpop.eup %89 }
 0x139   :  { %v92_v36 = vpop.eup %91  ;;  %v75_v37 = vadd.f32 %v86_v33, %v66_v34  ;;  %v59_v38 = vmul.f32 %v90_v35, %v35_v11 }
 0x13a   :  { %v58_v39 = vmul.f32 %v92_v36, %v34_v16 }
 0x13b   :  { %78 = vst.msk [vmem:[%s149_s3] sm:$0xff] %vm19_vm0, %v75_v37  ;;  %v68_v40 = vmul.f32 %v85_v31, %v59_v38 }
 0x13c   :  { %v67_v41 = vmul.f32 %v85_v31, %v58_v39 }
 0x13d   :  { %v77_v42 = vadd.f32 %v86_v33, %v68_v40 }
 0x13e   :  { %v76_v43 = vadd.f32 %v86_v33, %v67_v41 }
 0x13f   :  { %80 = vst.msk [vmem:[%s149_s3 + $0x10] sm:$0xff] %vm19_vm0, %v77_v42 }
 0x140   :  { %79 = vst.msk [vmem:[%s149_s3 + $0x8] sm:$0xff] %vm19_vm0, %v76_v43 }

// kernel: seq2seq_forward.6
= control target key start
LH: loop header
LB: loop body
LE: loop exit
PB: predicated region body
PF: predicated region fallthrough
CT: control target
= control target key end

     0   :  { %s2610_s29 = smov 0   ;;  %s2868_s0 = inlined_call_operand.vmem [shape: f32[2,12,32], index: 0, kind: input, shape index: {}]   ;;  %s2869_s1 = inlined_call_operand.vmem [shape: f32[2,1,12], index: 1, kind: input, shape index: {}]   ;;  %s2870_s2 = inlined_call_operand.vmem [shape: f32[32,96], index: 2, kind: input, shape index: {}]   ;;  %s2871_s3 = inlined_call_operand.vmem [shape: f32[1,96], index: 3, kind: input, shape index: {}]   ;;  %s2872_s4 = inlined_call_operand.vmem [shape: f32[32,32], index: 4, kind: input, shape index: {}]   ;;  %s2873_s5 = inlined_call_operand.vmem [shape: f32[1,32], index: 5, kind: input, shape index: {}]   ;;  %s2874_s6 = inlined_call_operand.vmem [shape: f32[1,32], index: 6, kind: input, shape index: {}]   ;;  %s2875_s7 = inlined_call_operand.vmem [shape: f32[1,32], index: 7, kind: input, shape index: {}]   ;;  %s2876_s8 = inlined_call_operand.vmem [shape: f32[32,64], index: 8, kind: input, shape index: {}]   ;;  %s2877_s9 = inlined_call_operand.vmem [shape: f32[1,64], index: 9, kind: input, shape index: {}]   ;;  %s2878_s10 = inlined_call_operand.vmem [shape: f32[64,32], index: 10, kind: input, shape index: {}]   ;;  %s2879_s11 = inlined_call_operand.vmem [shape: f32[1,32], index: 11, kind: input, shape index: {}]   ;;  %s2880_s12 = inlined_call_operand.vmem [shape: f32[1,32], index: 12, kind: input, shape index: {}]   ;;  %s2881_s13 = inlined_call_operand.vmem [shape: f32[1,32], index: 13, kind: input, shape index: {}]   ;;  %s2882_s14 = inlined_call_operand.vmem [shape: f32[2,12,32], index: 14, kind: output, shape index: {}]  }
   0x1 LB: > { %s2082_s30 = sadd.s32 4294967295, %s2521_s29   ;;  %p2086_p0 = scmp.ge.s32.totalorder %s2521_s29, 1  ;;  %s2521_s29 = sphi %s2610_s29, %s24_s29  }
   0x2   : > { %p420_p1 = scmp.lt.s32.totalorder %s2521_s29, 3 }
   0x4   : > { %p421_p2 = pnand %p2086_p0, %p420_p1 }
   0x5   : > { %v485_v0 = vld [vmem:[%s2870_s2] sm:$0xff] (!%p421_p2)  ;;  %v486_v1 = vld [vmem:[%s2870_s2 + $0x8] sm:$0xff] (!%p421_p2)  ;;  %v487_v2 = vld [vmem:[%s2870_s2 + $0x10] sm:$0xff] (!%p421_p2)  ;;  %p469_p3 = scmp.lt.s32.totalorder (!%p421_p2), %s2082_s30, 1  ;;  %vm496_vm0 = vcmask (!%p421_p2), 261120   ;;  %vm595_vm1 = vcmask (!%p421_p2), 64512  }
   0x6   : > { %424 = sbr.rel (%p421_p2) target bundleno = 2939 (0xb7b), region = 76  ;;  %v2329_v3 = vpack.c.bf16 (!%p421_p2), %v486_v1, %v485_v0  ;;  %v488_v4 = vld [vmem:[%s2870_s2 + $0x18] sm:$0xff] (!%p421_p2)  ;;  %v2091_v8 = vld [vmem:[%s2871_s3] ss:$0 sm:$0xff] (!%p421_p2)  ;;  %s2523_s15 = smov (!%p421_p2), 120   ;;  %vm2668_vm2 = vmpackc.low (!%p421_p2), %vm595_vm1, %vm595_vm1  ;;  %vm683_vm3 = vcmask (!%p421_p2), 93184  }
   0x7   : > { %v2333_v5 = vpack.c.bf16 (!%p421_p2), %v488_v4, %v487_v2  ;;  %s2524_s16 = smov (!%p421_p2), 96   ;;  %s2525_s17 = smov (!%p421_p2), 88   ;;  %vm679_vm4 = vcmask (!%p421_p2), 97280   ;;  %vm714_vm5 = vcmask (!%p421_p2), 1043456   ;;  %vm2534_vm6 = vmmov (!%p421_p2), 1  }
   0x8   : > { %2330 = vmatprep.subr.bf16.mxu1 (!%p421_p2), %v2329_v3  ;;  %s2526_s18 = smov (!%p421_p2), 112   ;;  %s2527_s19 = smov (!%p421_p2), 80   ;;  %vm2726_vm7 = vmpackc.low (!%p421_p2), %vm714_vm5, %vm2534_vm6  ;;  %vm1738_vm8 = vcmask (!%p421_p2), 257024   ;;  %vm1888_vm9 = vcmask (!%p421_p2), 523264  }
   0x9   : > { %2332 = vmatpush3.bf16.msra.mxu1 (!%p421_p2), %v2329_v3  ;;  %s2528_s24 = smov (!%p421_p2), 56   ;;  %s2529_s25 = smov (!%p421_p2), 72  }
   0xa   : > { %2334 = vmatprep.subr.bf16.mxu1 (!%p421_p2), %v2333_v5  ;;  %s2531_s27 = smov (!%p421_p2), 104   ;;  %s2532_s28 = smov (!%p421_p2), 48  }
   0xd   : > { %s2888_s30 = smov (!%p469_p3, %s2082_s30), 1  ;;  %2336 = vmatpush3.bf16.msra.mxu1 %v2333_v5 }
   0xe   : > { %s2144_s23 = sshll.u32 %s2888_s30, 4  ;;  %s476_s22 = scalar_lea.vmem %s2869_s1, %s2888_s30 }
   0xf   : > { %s473_s26 = scalar_lea.vmem %s2868_s0, %s2144_s23  ;;  %v2694_v31 = vld [vmem:[%s476_s22] ss:$0 sm:$0xff] }
  0x10   : > { %v2638_v6 = vld [vmem:[%s473_s26] sm:$0xff]  ;;  %v2642_v7 = vld [vmem:[%s473_s26 + $0x8] sm:$0xf]  ;;  %s2530_s26 = smov 64  }
  0x11   : > { %2220 = vmatprep.mubr.msk.f32.mxu1 %vm496_vm0, %v2638_v6 }
  0x12   : > { %2221 = vmatmul.mubr.msk.f32.vlgmr.msra.gmra.mrb[0].mxu1 %vm496_vm0, %v2642_v7 }
  0xe5   : > { %v2222_v9 = vpop.f32.mrb[0].mxu1 }
  0xe6   : > { %v2649_v10 = vadd.f32 %v2222_v9, %v2091_v8  ;;  %v569_v11 = vpop.f32.mrb[1].mxu1 }
  0xe7   : > { %v2651_v12 = vadd.f32 %v2091_v8, %v569_v11 }
  0xe9   : > { %792 = vrot.lane.b32.xlu1 %v2651_v12, %s2523_s15  ;;  %2227 = vmatprep.mubr.msk.f32.mxu1 %vm595_vm1, %v2651_v12  ;;  %v2658_v13 = vpack.i.bf16 %v2649_v10, %v2651_v12 }
  0xeb   : > { %2436 = vrot.lane.b32.xlu0 %v2658_v13, %s2524_s16 }
  0xed   : > { %794 = vrot.lane.b32.xlu1 %v2649_v10, %s2523_s15  ;;  %s2533_s15 = smov 40  }
  0xef   : > { %2441 = vrot.lane.b32.xlu0 %v2658_v13, %s2525_s17 }
  0xf1   : > { %1155 = vrot.lane.b32.xlu1 %v2651_v12, %s2526_s18 }
  0xf3   : > { %2446 = vrot.lane.b32.xlu0 %v2658_v13, %s2527_s19 }
  0xf7   : > { %1157 = vrot.lane.b32.xlu0 %v2649_v10, %s2526_s18 }
 0x15b   : > { %v793_v24 = vpop.permute.xlu1 %792 }
 0x15d   : > { %v2437_v14 = vpop.permute.xlu0 %2436 }
 0x15e   : > { %v2439_v15 = vunpack.i.h.bf16 %v2437_v14  ;;  %v2438_v16 = vunpack.i.l.bf16 %v2437_v14 }
 0x15f   : > { %v795_v28 = vpop.permute.xlu1 %794 }
 0x160   : > { %v2337_v18 = vpack.c.bf16 %v2439_v15, %v2438_v16 }
 0x161   : > { %v2442_v19 = vpop.permute.xlu0 %2441 }
 0x162   : > { %v2444_v20 = vunpack.i.h.bf16 %v2442_v19  ;;  %v2443_v21 = vunpack.i.l.bf16 %v2442_v19  ;;  %2339 = vmatprep.subr.msk.bf16.mxu1 %vm2668_vm2, %v2337_v18 }
 0x163   : > { %2342 = vmatpush3.bf16.xpose.msk.msra.mxu1 %vm2668_vm2, %v2337_v18  ;;  %v1156_v29 = vpop.permute.xlu1 %1155 }
 0x164   : > { %v2349_v22 = vpack.c.bf16 %v2444_v20, %v2443_v21 }
 0x165   : > { %v2447_v23 = vpop.permute.xlu0 %2446 }
 0x166   : > { %v2449_v25 = vunpack.i.h.bf16 %v2447_v23  ;;  %v2448_v26 = vunpack.i.l.bf16 %v2447_v23  ;;  %2351 = vmatprep.subr.msk.bf16.mxu1 %vm2668_vm2, %v2349_v22 }
 0x168   : > { %v2361_v27 = vpack.c.bf16 %v2449_v25, %v2448_v26 }
 0x169   : > { %v1158_v30 = vpop.permute.xlu0 %1157 }
 0x16a   : > { %2228 = vmatmul.mubr.msk.f32.vlgmr.msra.gmra.mrb[2].mxu1 %vm595_vm1, %v2649_v10 }
 0x16b   : > { %2354 = vmatpush3.bf16.xpose.msk.msra.mxu1 %vm2668_vm2, %v2349_v22  ;;  %2241 = vmatprep.mubr.msk.f32.mxu1 %vm595_vm1, %v793_v24 }
 0x16c   : > { %2363 = vmatprep.subr.msk.bf16.mxu1 %vm2668_vm2, %v2361_v27 }
 0x172   : > { %2242 = vmatmul.mubr.msk.f32.vlgmr.msra.gmra.mrb[4].mxu1 %vm595_vm1, %v795_v28 }
 0x173   : > { %2366 = vmatpush3.bf16.xpose.msk.msra.mxu1 %vm2668_vm2, %v2361_v27  ;;  %2265 = vmatprep.mubr.msk.f32.mxu1 %vm595_vm1, %v1156_v29 }
 0x17a   : > { %2266 = vmatmul.mubr.msk.f32.vlgmr.msra.gmra.mrb[6].mxu1 %vm595_vm1, %v1158_v30 }
 0x23d   : > { %v2229_v32 = vpop.f32.mrb[2].mxu1 }
 0x23e   : > { %v676_v33 = vadd.f32 %v2229_v32, %v2694_v31  ;;  %v670_v34 = vpop.f32.mrb[3].mxu1 }
 0x23f   : > { %v671_v35 = vadd.f32 %v2694_v31, %v670_v34 }
 0x240   : > { %v684_v36 = vsel %vm683_vm3, %v676_v33, -inf }
 0x241   : > { %685 = vmax.xlane.f32.xlu0 %v684_v36  ;;  %v680_v37 = vsel %vm679_vm4, %v671_v35, -inf }
 0x242   : > { %681 = vmax.xlane.f32.xlu1 %v680_v37 }
 0x245   : > { %v2243_v38 = vpop.f32.mrb[4].mxu1 }
 0x246   : > { %v880_v39 = vadd.f32 %v2243_v38, %v2694_v31  ;;  %v874_v40 = vpop.f32.mrb[5].mxu1 }
 0x247   : > { %v875_v41 = vadd.f32 %v2694_v31, %v874_v40 }
 0x248   : > { %v886_v42 = vsel %vm683_vm3, %v880_v39, -inf }
 0x249   : > { %887 = vmax.xlane.f32.xlu1 %v886_v42  ;;  %v883_v43 = vsel %vm679_vm4, %v875_v41, -inf }
 0x24a   : > { %884 = vmax.xlane.f32.xlu0 %v883_v43 }
 0x24d   : > { %v2267_v44 = vpop.f32.mrb[6].mxu1 }
 0x24e   : > { %v1237_v45 = vpop.f32.mrb[7].mxu1  ;;  %v1243_v3 = vadd.f32 %v2267_v44, %v2694_v31 }
 0x24f   : > { %v1238_v2 = vadd.f32 %v2694_v31, %v1237_v45 }
 0x250   : > { %v1249_v5 = vsel %vm683_vm3, %v1243_v3, -inf }
 0x251   : > { %v1246_v4 = vsel %vm679_vm4, %v1238_v2, -inf }
 0x2ce   : > { %v686_v46 = vpop.xlane.xlu0 %685 }
 0x2cf   : > { %v688_v47 = vsub.f32 %v676_v33, %v686_v46  ;;  %v682_v48 = vpop.xlane.xlu1 %681  ;;  %v579_v46 = vld [vmem:[%s2872_s4 + $0x8] sm:$0xff] }
 0x2d0   : > { %v687_v49 = vsub.f32 %v671_v35, %v682_v48 }
 0x2d1   : > { %v691_v50 = vmul.f32 1.442695, %v688_v47  ;;  %v578_v47 = vld [vmem:[%s2872_s4] sm:$0xff] }
 0x2d2   : > { %v689_v51 = vmul.f32 1.442695, %v687_v49 }
 0x2d3   : > { %2475 = vpow2.f32 %v691_v50 }
 0x2d4   : > { %2477 = vpow2.f32 %v689_v51 }
 0x2d6   : > { %v888_v52 = vpop.xlane.xlu1 %887 }
 0x2d7   : > { %v890_v53 = vsub.f32 %v880_v39, %v888_v52  ;;  %v885_v54 = vpop.xlane.xlu0 %884 }
 0x2d8   : > { %v889_v55 = vsub.f32 %v875_v41, %v885_v54 }
 0x2d9   : > { %v893_v56 = vmul.f32 1.442695, %v890_v53 }
 0x2da   : > { %v891_v57 = vmul.f32 1.442695, %v889_v55 }
 0x2db   : > { %2479 = vpow2.f32 %v893_v56 }
 0x2dc   : > { %2481 = vpow2.f32 %v891_v57 }
 0x2dd   : > { %v2704_v58 = vpop.eup %2475 }
 0x2de   : > { %v2478_v59 = vpop.eup %2477  ;;  %v696_v60 = vsel %vm683_vm3, %v2704_v58, 0.0 }
 0x2df   : > { %697 = vadd.xlane.f32.xlu1 %v696_v60  ;;  %v693_v61 = vsel %vm679_vm4, %v2478_v59, 0.0 }
 0x2e0   : > { %694 = vadd.xlane.f32.xlu0 %v693_v61 }
 0x2e5   : > { %v2709_v62 = vpop.eup %2479 }
 0x2e6   : > { %v2482_v63 = vpop.eup %2481  ;;  %v898_v0 = vsel %vm683_vm3, %v2709_v62, 0.0 }
 0x2e7   : > { %899 = vadd.xlane.f32.xlu1 %v898_v0  ;;  %v895_v1 = vsel %vm679_vm4, %v2482_v63, 0.0 }
 0x2e8   : > { %896 = vadd.xlane.f32.xlu0 %v895_v1 }
 0x2f8   : > { %2456 = vrot.lane.b32.xlu1 %v2658_v13, %s2528_s24 }
 0x2fc   : > { %2461 = vrot.lane.b32.xlu1 %v2658_v13, %s2529_s25 }
 0x2fe   : > { %2451 = vrot.lane.b32.xlu0 %v2658_v13, %s2530_s26  ;;  %s481_s26 = scalar_lea.vmem %s2882_s14, %s2144_s23 }
 0x300   : > { %1441 = vrot.lane.b32.xlu1 %v2649_v10, %s2531_s27 }
 0x302   : > { %1439 = vrot.lane.b32.xlu0 %v2651_v12, %s2531_s27 }
 0x321   : > { %1247 = vmax.xlane.f32.xlu0 %v1246_v4 }
 0x324   : > { %1250 = vmax.xlane.f32.xlu1 %v1249_v5 }
 0x335   : > { %2466 = vrot.lane.b32.xlu1 %v2658_v13, %s2532_s28 }
 0x339   : > { %2471 = vrot.lane.b32.xlu1 %v2658_v13, %s2533_s15  ;;  %v2131_v13 = vld [vmem:[%s2873_s5] ss:$0 sm:$0xff] }
 0x36c   : > { %v698_v9 = vpop.xlane.xlu1 %697 }
 0x36d   : > { %v695_v8 = vpop.xlane.xlu0 %694 }
 0x36e   : > { %2483 = vrcp.f32 %v695_v8 }
 0x36f   : > { %2485 = vrcp.f32 %v698_v9 }
 0x374   : > { %v900_v10 = vpop.xlane.xlu1 %899 }
 0x375   : > { %v897_v11 = vpop.xlane.xlu0 %896 }
 0x376   : > { %2487 = vrcp.f32 %v897_v11 }
 0x377   : > { %2489 = vrcp.f32 %v900_v10 }
 0x378   : > { %v2484_v12 = vpop.eup %2483  ;;  %v2457_v14 = vpop.permute.xlu1 %2456 }
 0x379   : > { %v2452_v15 = vpop.permute.xlu0 %2451  ;;  %v701_v16 = vmul.f32 %v2484_v12, %v2478_v59  ;;  %v2459_v18 = vunpack.i.h.bf16 %v2457_v14  ;;  %v2458_v19 = vunpack.i.l.bf16 %v2457_v14  ;;  %v2486_v24 = vpop.eup %2485 }
 0x37a   : > { %v2454_v20 = vunpack.i.h.bf16 %v2452_v15  ;;  %v2453_v21 = vunpack.i.l.bf16 %v2452_v15  ;;  %v702_v32 = vmul.f32 %v2486_v24, %v2704_v58  ;;  %v581_v24 = vld [vmem:[%s2872_s4 + $0x18] sm:$0xff] }
 0x37b   : > { %2234 = vmatprep.mubr.msk.f32.mxu0 %vm679_vm4, %v701_v16  ;;  %v2355_v28 = vpack.c.bf16 %v2459_v18, %v2458_v19 }
 0x37c   : > { %v2462_v22 = vpop.permute.xlu1 %2461  ;;  %v2343_v23 = vpack.c.bf16 %v2454_v20, %v2453_v21 }
 0x37d   : > { %v2464_v25 = vunpack.i.h.bf16 %v2462_v22  ;;  %v2463_v26 = vunpack.i.l.bf16 %v2462_v22  ;;  %v1440_v27 = vpop.permute.xlu0 %1439 }
 0x37e   : > { %2345 = vmatprep.subr.msk.bf16.mxu0 %vm2726_vm7, %v2343_v23  ;;  %2284 = vmatprep.mubr.msk.f32.mxu1 %vm595_vm1, %v1440_v27 }
 0x37f   : > { %v2373_v29 = vpack.c.bf16 %v2464_v25, %v2463_v26  ;;  %2348 = vmatpush3.bf16.msk.msra.mxu0 %vm2726_vm7, %v2343_v23 }
 0x380   : > { %v2488_v30 = vpop.eup %2487  ;;  %2357 = vmatprep.subr.msk.bf16.mxu0 %vm2726_vm7, %v2355_v28  ;;  %v1442_v36 = vpop.permute.xlu1 %1441 }
 0x381   : > { %v2490_v33 = vpop.eup %2489  ;;  %2375 = vmatprep.subr.msk.bf16.mxu1 %vm2668_vm2, %v2373_v29  ;;  %v903_v34 = vmul.f32 %v2488_v30, %v2482_v63 }
 0x382   : > { %2235 = vmatmul.mubr.msk.f32.vlgmr.msra.gmra.mrb[0].mxu0 %vm679_vm4, %v702_v32  ;;  %2378 = vmatpush3.bf16.xpose.msk.msra.mxu1 %vm2668_vm2, %v2373_v29  ;;  %v904_v35 = vmul.f32 %v2490_v33, %v2709_v62 }
 0x383   : > { %2360 = vmatpush3.bf16.msk.msra.mxu0 %vm2726_vm7, %v2355_v28  ;;  %2248 = vmatprep.mubr.msk.f32.mxu0 %vm679_vm4, %v903_v34 }
 0x384   : > { %2251 = vmatprep.subr.mxu0 %v579_v46 }
 0x386   : > { %2249 = vmatmul.mubr.msk.f32.vlgmr.msra.gmra.mrb[2].mxu0 %vm679_vm4, %v904_v35 }
 0x387   : > { %2252 = vmatpush3.msra.mxu0 %v579_v46 }
 0x388   : > { %2256 = vmatprep.subr.mxu0 %v578_v47 }
 0x389   : > { %2285 = vmatmul.mubr.msk.f32.vlgmr.msra.gmra.mrb[8].mxu1 %vm595_vm1, %v1442_v36 }
 0x3ae   : > { %v1248_v37 = vpop.xlane.xlu0 %1247 }
 0x3af   : > { %v1252_v38 = vsub.f32 %v1238_v2, %v1248_v37  ;;  %v580_v2 = vld [vmem:[%s2872_s4 + $0x10] sm:$0xff] }
 0x3b1   : > { %v1254_v39 = vmul.f32 1.442695, %v1252_v38  ;;  %v1251_v40 = vpop.xlane.xlu1 %1250 }
 0x3b2   : > { %v1253_v41 = vsub.f32 %v1243_v3, %v1251_v40 }
 0x3b3   : > { %2491 = vpow2.f32 %v1254_v39 }
 0x3b4   : > { %v1256_v17 = vmul.f32 1.442695, %v1253_v41 }
 0x3b5   : > { %v2467_v49 = vpop.permute.xlu1 %2466 }
 0x3b6   : > { %2493 = vpow2.f32 %v1256_v17  ;;  %v2469_v53 = vunpack.i.h.bf16 %v2467_v49  ;;  %v2468_v54 = vunpack.i.l.bf16 %v2467_v49 }
 0x3b8   : > { %v2367_v57 = vpack.c.bf16 %v2469_v53, %v2468_v54  ;;  %v1782_v53 = vld [vmem:[%s2876_s8 + $0x18] sm:$0xff] }
 0x3b9   : > { %v2472_v0 = vpop.permute.xlu1 %2471 }
 0x3ba   : > { %v2474_v3 = vunpack.i.h.bf16 %v2472_v0  ;;  %v2473_v4 = vunpack.i.l.bf16 %v2472_v0 }
 0x3bc   : > { %v2379_v9 = vpack.c.bf16 %v2474_v3, %v2473_v4 }
 0x3bd   : > { %v2492_v42 = vpop.eup %2491 }
 0x3be   : > { %v1258_v43 = vsel %vm679_vm4, %v2492_v42, 0.0 }
 0x3bf   : > { %1259 = vadd.xlane.f32.xlu0 %v1258_v43 }
 0x3c0   : > { %v2494_v44 = vpop.eup %2493 }
 0x3c1   : > { %v1261_v45 = vsel %vm683_vm3, %v2494_v44, 0.0 }
 0x3c3   : > { %1262 = vadd.xlane.f32.xlu0 %v1261_v45 }
 0x44c   : > { %v1260_v48 = vpop.xlane.xlu0 %1259 }
 0x44d   : > { %2495 = vrcp.f32 %v1260_v48 }
 0x450   : > { %v1263_v51 = vpop.xlane.xlu0 %1262 }
 0x451   : > { %2497 = vrcp.f32 %v1263_v51 }
 0x455   : > { %v2236_v50 = vpop.f32.mrb[0].mxu0 }
 0x456   : > { %v783_v52 = vpop.f32.mrb[1].mxu0 }
 0x457   : > { %v2496_v63 = vpop.eup %2495 }
 0x458   : > { %v1266_v8 = vmul.f32 %v2496_v63, %v2492_v42 }
 0x459   : > { %v2250_v55 = vpop.f32.mrb[2].mxu0 }
 0x45a   : > { %v984_v56 = vpop.f32.mrb[3].mxu0 }
 0x45b   : > { %2253 = vmatprep.mubr.msk.f32.mxu0 %vm595_vm1, %v984_v56  ;;  %v2498_v1 = vpop.eup %2497  ;;  %v1874_v56 = vld [vmem:[%s2878_s10 + $0x8] sm:$0xff] }
 0x45c   : > { %2254 = vmatmul.mubr.msk.f32.vlgmr.msra.gmra.mrb[4].mxu0 %vm595_vm1, %v2250_v55  ;;  %v2286_v58 = vpop.f32.mrb[8].mxu1  ;;  %v1873_v55 = vld [vmem:[%s2878_s10] sm:$0xff] }
 0x45d   : > { %2257 = vmatpush3.msra.mxu0 %v578_v47  ;;  %2258 = vmatprep.mubr.msk.f32.mxu0 %vm595_vm1, %v783_v52  ;;  %v1521_v59 = vpop.f32.mrb[9].mxu1  ;;  %v1527_v61 = vadd.f32 %v2286_v58, %v2694_v31  ;;  %v1781_v52 = vld [vmem:[%s2876_s8 + $0x10] sm:$0xff]  ;;  %v2393_v58 = vpack.c.bf16 %v1874_v56, %v1873_v55 }
 0x45e   : > { %2369 = vmatprep.subr.msk.bf16.mxu0 %vm2726_vm7, %v2367_v57  ;;  %v1522_v60 = vadd.f32 %v2694_v31, %v1521_v59  ;;  %v1267_v31 = vmul.f32 %v2498_v1, %v2494_v44  ;;  %v2389_v54 = vpack.c.bf16 %v1782_v53, %v1781_v52  ;;  %v1876_v59 = vld [vmem:[%s2878_s10 + $0x18] sm:$0xff]  ;;  %v2140_v52 = vld [vmem:[%s2880_s12] ss:$0 sm:$0xff] }
 0x45f   : > { %v1533_v5 = vsel %vm683_vm3, %v1527_v61, -inf }
 0x460   : > { %v1530_v62 = vsel %vm679_vm4, %v1522_v60, -inf }
 0x461   : > { %1531 = vmax.xlane.f32.xlu0 %v1530_v62  ;;  %v1878_v62 = vld [vmem:[%s2878_s10 + $0x28] sm:$0xff] }
 0x464   : > { %2259 = vmatmul.mubr.msk.f32.vlgmr.msra.gmra.mrb[4].mxu0 %vm595_vm1, %v2236_v50  ;;  %v1780_v50 = vld [vmem:[%s2876_s8 + $0x8] sm:$0xff] }
 0x465   : > { %2372 = vmatpush3.bf16.msk.msra.mxu0 %vm2726_vm7, %v2367_v57  ;;  %1534 = vmax.xlane.f32.xlu0 %v1533_v5  ;;  %v1875_v57 = vld [vmem:[%s2878_s10 + $0x10] sm:$0xff] }
 0x466   : > { %2272 = vmatprep.mubr.msk.f32.mxu0 %vm679_vm4, %v1266_v8  ;;  %2275 = vmatprep.subr.mxu0 %v580_v2 }
 0x468   : > { %2273 = vmatmul.mubr.msk.f32.vlgmr.msra.gmra.mrb[6].mxu0 %vm679_vm4, %v1267_v31  ;;  %v2132_v31 = vld [vmem:[%s2874_s6] ss:$0 sm:$0xff] }
 0x469   : > { %2276 = vmatpush3.msra.mxu0 %v580_v2 }
 0x46a   : > { %2381 = vmatprep.subr.msk.bf16.mxu0 %vm2726_vm7, %v2379_v9 }
 0x4ee   : > { %v1532_v10 = vpop.xlane.xlu0 %1531 }
 0x4ef   : > { %v1536_v11 = vsub.f32 %v1522_v60, %v1532_v10  ;;  %v2397_v60 = vpack.c.bf16 %v1876_v59, %v1875_v57  ;;  %v2133_v10 = vld [vmem:[%s2875_s7] ss:$0 sm:$0xff] }
 0x4f1   : > { %v1538_v12 = vmul.f32 1.442695, %v1536_v11 }
 0x4f2   : > { %v1535_v14 = vpop.xlane.xlu0 %1534 }
 0x4f3   : > { %2499 = vpow2.f32 %v1538_v12  ;;  %v1537_v15 = vsub.f32 %v1527_v61, %v1535_v14  ;;  %v1877_v61 = vld [vmem:[%s2878_s10 + $0x20] sm:$0xff] }
 0x4f4   : > { %v2401_v63 = vpack.c.bf16 %v1878_v62, %v1877_v61 }
 0x4f5   : > { %v1540_v16 = vmul.f32 1.442695, %v1537_v15 }
 0x4f7   : > { %2501 = vpow2.f32 %v1540_v16 }
 0x4fd   : > { %v2500_v18 = vpop.eup %2499 }
 0x4fe   : > { %v1542_v19 = vsel %vm679_vm4, %v2500_v18, 0.0 }
 0x4ff   : > { %1543 = vadd.xlane.f32.xlu0 %v1542_v19  ;;  %v1879_v19 = vld [vmem:[%s2878_s10 + $0x30] sm:$0xff] }
 0x501   : > { %v2502_v20 = vpop.eup %2501 }
 0x502   : > { %v1545_v21 = vsel %vm683_vm3, %v2502_v20, 0.0 }
 0x503   : > { %1546 = vadd.xlane.f32.xlu0 %v1545_v21 }
 0x53b   : > { %v2274_v22 = vpop.f32.mrb[6].mxu0 }
 0x53c   : > { %v1347_v23 = vpop.f32.mrb[7].mxu0 }
 0x53d   : > { %2277 = vmatprep.mubr.msk.f32.mxu0 %vm595_vm1, %v1347_v23 }
 0x53e   : > { %2278 = vmatmul.mubr.msk.f32.vlgmr.msra.gmra.mrb[4].mxu0 %vm595_vm1, %v2274_v22  ;;  %v2134_v22 = vld [vmem:[%s2877_s9] ss:$0 sm:$0xff] }
 0x53f   : > { %2384 = vmatpush3.bf16.msk.msra.mxu0 %vm2726_vm7, %v2379_v9 }
 0x540   : > { %2294 = vmatprep.subr.mxu0 %v581_v24 }
 0x58c   : > { %v1544_v25 = vpop.xlane.xlu0 %1543 }
 0x58d   : > { %2503 = vrcp.f32 %v1544_v25 }
 0x590   : > { %v1547_v26 = vpop.xlane.xlu0 %1546 }
 0x591   : > { %2505 = vrcp.f32 %v1547_v26 }
 0x597   : > { %v2504_v27 = vpop.eup %2503 }
 0x598   : > { %v1550_v28 = vmul.f32 %v2504_v27, %v2500_v18 }
 0x59a   : > { %2291 = vmatprep.mubr.msk.f32.mxu0 %vm679_vm4, %v1550_v28 }
 0x59b   : > { %v2506_v29 = vpop.eup %2505 }
 0x59c   : > { %v1551_v30 = vmul.f32 %v2506_v29, %v2502_v20  ;;  %v1880_v20 = vld [vmem:[%s2878_s10 + $0x38] sm:$0xff]  ;;  %v2137_v29 = vld [vmem:[%s2879_s11] ss:$0 sm:$0xff] }
 0x59d   : > { %v2405_v21 = vpack.c.bf16 %v1880_v20, %v1879_v19 }
 0x59e   : > { %2292 = vmatmul.mubr.msk.f32.vlgmr.msra.gmra.mrb[8].mxu0 %vm679_vm4, %v1551_v30 }
 0x59f   : > { %2295 = vmatpush3.msra.mxu0 %v581_v24 }
 0x5a0   : > { %2394 = vmatprep.subr.bf16.mxu0 %v2393_v58 }
 0x671   : > { %v2293_v32 = vpop.f32.mrb[8].mxu0 }
 0x672   : > { %v1631_v33 = vpop.f32.mrb[9].mxu0 }
 0x673   : > { %2296 = vmatprep.mubr.msk.f32.mxu0 %vm595_vm1, %v1631_v33 }
 0x674   : > { %2297 = vmatmul.mubr.msk.f32.vlgmr.msra.gmra.mrb[4].mxu0 %vm595_vm1, %v2293_v32 }
 0x675   : > { %2396 = vmatpush3.bf16.msra.mxu0 %v2393_v58 }
 0x676   : > { %2398 = vmatprep.subr.bf16.mxu0 %v2397_v60 }
 0x679   : > { %2400 = vmatpush3.bf16.msra.mxu0 %v2397_v60 }
 0x67a   : > { %2402 = vmatprep.subr.bf16.mxu0 %v2401_v63 }
 0x67d   : > { %2404 = vmatpush3.bf16.msra.mxu0 %v2401_v63 }
 0x67e   : > { %2406 = vmatprep.subr.bf16.mxu0 %v2405_v21 }
 0x681   : > { %2408 = vmatpush3.bf16.msra.mxu0 %v2405_v21 }
 0x747   : > { %v2298_v34 = vpop.f32.mrb[4].mxu0 }
 0x748   : > { %v1730_v35 = vadd.f32 %v2298_v34, %v2131_v13  ;;  %v1712_v36 = vpop.f32.mrb[5].mxu0 }
 0x749   : > { %v1729_v37 = vadd.f32 %v2131_v13, %v1712_v36 }
 0x74a   : > { %v1732_v38 = vadd.f32 %v1730_v35, %v2642_v7 }
 0x74b   : > { %v1731_v39 = vadd.f32 %v1729_v37, %v2638_v6  ;;  %v1779_v6 = vld [vmem:[%s2876_s8] sm:$0xff] }
 0x74c   : > { %v1739_v40 = vsel %vm1738_vm8, %v1732_v38, 0.0  ;;  %v2385_v51 = vpack.c.bf16 %v1780_v50, %v1779_v6 }
 0x74d   : > { %1740 = vadd.xlane.f32.xlu1 %v1739_v40  ;;  %v1735_v41 = vsel %vm496_vm0, %v1731_v39, 0.0 }
 0x74e   : > { %1736 = vadd.xlane.f32.xlu0 %v1735_v41  ;;  %2386 = vmatprep.subr.bf16.mxu1 %v2385_v51 }
 0x74f   : > { %2388 = vmatpush3.bf16.msra.mxu1 %v2385_v51 }
 0x750   : > { %2390 = vmatprep.subr.bf16.mxu1 %v2389_v54 }
 0x753   : > { %2392 = vmatpush3.bf16.msra.mxu1 %v2389_v54  ;;  %v2141_v54 = vld [vmem:[%s2881_s13] ss:$0 sm:$0xff] }
 0x7da   : > { %v1741_v17 = vpop.xlane.xlu1 %1740 }
 0x7db   : > { %v1744_v42 = vmul.f32 0.03125, %v1741_v17  ;;  %v1737_v43 = vpop.xlane.xlu0 %1736 }
 0x7dc   : > { %v1743_v44 = vmul.f32 0.03125, %v1737_v43 }
 0x7dd   : > { %v1746_v45 = vsub.f32 %v1732_v38, %v1744_v42 }
 0x7de   : > { %v1745_v46 = vsub.f32 %v1731_v39, %v1743_v44 }
 0x7df   : > { %v1748_v49 = vmul.f32 %v1746_v45, %v1746_v45 }
 0x7e0   : > { %v1747_v47 = vmul.f32 %v1745_v46, %v1745_v46 }
 0x7e1   : > { %v1752_v7 = vsel %vm1738_vm8, %v1748_v49, 0.0 }
 0x7e2   : > { %v1749_v48 = vsel %vm496_vm0, %v1747_v47, 0.0 }
 0x7e3   : > { %1750 = vadd.xlane.f32.xlu0 %v1749_v48 }
 0x7e7   : > { %1753 = vadd.xlane.f32.xlu0 %v1752_v7 }
 0x870   : > { %v1751_v0 = vpop.xlane.xlu0 %1750 }
 0x871   : > { %v1755_v1 = vmul.f32 0.03125, %v1751_v0 }
 0x873   : > { %v1757_v2 = vadd.f32 1e-05, %v1755_v1 }
 0x874   : > { %v1754_v3 = vpop.xlane.xlu0 %1753 }
 0x875   : > { %2507 = vrsqrt.f32 %v1757_v2  ;;  %v1756_v4 = vmul.f32 0.03125, %v1754_v3 }
 0x877   : > { %v1758_v5 = vadd.f32 1e-05, %v1756_v4 }
 0x879   : > { %2509 = vrsqrt.f32 %v1758_v5 }
 0x87f   : > { %v2508_v8 = vpop.eup %2507 }
 0x880   : > { %v1761_v9 = vmul.f32 %v2508_v8, %v1745_v46 }
 0x882   : > { %v1769_v11 = vmul.f32 %v2132_v31, %v1761_v9 }
 0x883   : > { %v2510_v12 = vpop.eup %2509 }
 0x884   : > { %v1762_v14 = vmul.f32 %v2510_v12, %v1746_v45  ;;  %v1777_v15 = vadd.f32 %v2133_v10, %v1769_v11 }
 0x886   : > { %v1770_v16 = vmul.f32 %v2132_v31, %v1762_v14  ;;  %2307 = vmatprep.mubr.msk.f32.mxu1 %vm496_vm0, %v1777_v15 }
 0x888   : > { %v1778_v18 = vadd.f32 %v2133_v10, %v1770_v16 }
 0x88a   : > { %2308 = vmatmul.mubr.msk.f32.vlgmr.msra.gmra.mrb[10].mxu1 %vm496_vm0, %v1778_v18 }
 0x95d   : > { %v2309_v23 = vpop.f32.mrb[10].mxu1 }
 0x95e   : > { %v1868_v24 = vadd.f32 %v2309_v23, %v2134_v22  ;;  %v1862_v25 = vpop.f32.mrb[11].mxu1 }
 0x95f   : > { %v1863_v26 = vadd.f32 %v2134_v22, %v1862_v25 }
 0x960   : > { %v1872_v28 = vmax.f32 %v1868_v24, 0.0 }
 0x961   : > { %v1871_v27 = vmax.f32 %v1863_v26, 0.0 }
 0x963   : > { %2326 = vmatprep.mubr.msk.f32.mxu0 %vm1888_vm9, %v1871_v27 }
 0x964   : > { %2327 = vmatmul.mubr.msk.f32.vlgmr.msra.gmra.mrb[10].mxu0 %vm1888_vm9, %v1872_v28 }
 0xa37   : > { %v2328_v30 = vpop.f32.mrb[10].mxu0 }
 0xa38   : > { %v1961_v32 = vpop.f32.mrb[11].mxu0  ;;  %v1967_v33 = vadd.f32 %v2328_v30, %v2137_v29 }
 0xa39   : > { %v1962_v13 = vadd.f32 %v2137_v29, %v1961_v32 }
 0xa3a   : > { %v1971_v36 = vadd.f32 %v1967_v33, %v1778_v18 }
 0xa3b   : > { %v1970_v34 = vadd.f32 %v1962_v13, %v1777_v15 }
 0xa3c   : > { %v1977_v37 = vsel %vm1738_vm8, %v1971_v36, 0.0 }
 0xa3d   : > { %v1974_v35 = vsel %vm496_vm0, %v1970_v34, 0.0 }
 0xa3e   : > { %1975 = vadd.xlane.f32.xlu0 %v1974_v35 }
 0xa42   : > { %1978 = vadd.xlane.f32.xlu0 %v1977_v37 }
 0xacb   : > { %v1976_v38 = vpop.xlane.xlu0 %1975 }
 0xacc   : > { %v1980_v39 = vmul.f32 0.03125, %v1976_v38 }
 0xace   : > { %v1982_v40 = vsub.f32 %v1970_v34, %v1980_v39 }
 0xacf   : > { %v1979_v41 = vpop.xlane.xlu0 %1978 }
 0xad0   : > { %v1981_v17 = vmul.f32 0.03125, %v1979_v41  ;;  %v1984_v42 = vmul.f32 %v1982_v40, %v1982_v40 }
 0xad2   : > { %v1983_v43 = vsub.f32 %v1971_v36, %v1981_v17  ;;  %v1986_v44 = vsel %vm496_vm0, %v1984_v42, 0.0 }
 0xad3   : > { %1987 = vadd.xlane.f32.xlu0 %v1986_v44 }
 0xad4   : > { %v1985_v45 = vmul.f32 %v1983_v43, %v1983_v43 }
 0xad6   : > { %v1989_v46 = vsel %vm1738_vm8, %v1985_v45, 0.0 }
 0xad7   : > { %1990 = vadd.xlane.f32.xlu0 %v1989_v46 }
 0xb60   : > { %v1988_v47 = vpop.xlane.xlu0 %1987 }
 0xb61   : > { %v1992_v48 = vmul.f32 0.03125, %v1988_v47 }
 0xb63   : > { %v1994_v49 = vadd.f32 1e-05, %v1992_v48 }
 0xb64   : > { %v1991_v7 = vpop.xlane.xlu0 %1990 }
 0xb65   : > { %2511 = vrsqrt.f32 %v1994_v49  ;;  %v1993_v6 = vmul.f32 0.03125, %v1991_v7 }
 0xb67   : > { %v1995_v50 = vadd.f32 1e-05, %v1993_v6 }
 0xb69   : > { %2513 = vrsqrt.f32 %v1995_v50 }
 0xb6f   : > { %v2512_v51 = vpop.eup %2511 }
 0xb70   : > { %v1998_v53 = vmul.f32 %v2512_v51, %v1982_v40 }
 0xb72   : > { %v2006_v55 = vmul.f32 %v2140_v52, %v1998_v53 }
 0xb73   : > { %v2514_v56 = vpop.eup %2513 }
 0xb74   : > { %v2014_v57 = vadd.f32 %v2141_v54, %v2006_v55  ;;  %v1999_v58 = vmul.f32 %v2514_v56, %v1983_v43 }
 0xb76   : > { %2016 = vst.msk [vmem:[%s481_s26] sm:$0xff] %vm496_vm0, %v2014_v57  ;;  %v2007_v59 = vmul.f32 %v2140_v52, %v1999_v58 }
 0xb78   : > { %v2015_v60 = vadd.f32 %v2141_v54, %v2007_v59 }
 0xb7a   : > { %2017 = vst.msk [vmem:[%s481_s26 + $0x8] sm:$0xf] %vm1738_vm8, %v2015_v60 }
 0xb7b PF: > { %s24_s29 = sadd.s32 1, %s2521_s29  }
 0xb7c   : > { %p21_p4 = scmp.ge.s32.totalorder %s24_s29, 4  }
 0xb7e   :  { %23 = sbr.rel (!%p21_p4) target bundleno = 1 (0x1), region = 109 }

// kernel: seq2seq_forward.11
= control target key start
LH: loop header
LB: loop body
LE: loop exit
PB: predicated region body
PF: predicated region fallthrough
CT: control target
= control target key end

     0   :  { %vm25_vm0 = vcmask 261120   ;;  %s319_s0 = inlined_call_operand.vmem [shape: f32[16,32], index: 0, kind: input, shape index: {}]   ;;  %s320_s1 = inlined_call_operand.vmem [shape: f32[1,32], index: 1, kind: input, shape index: {}]   ;;  %s321_s2 = inlined_call_operand.vmem [shape: f32[1,32], index: 2, kind: input, shape index: {}]   ;;  %s322_s3 = inlined_call_operand.vmem [shape: f32[32,56], index: 3, kind: input, shape index: {}]   ;;  %s323_s4 = inlined_call_operand.vmem [shape: f32[1,56], index: 4, kind: input, shape index: {}]   ;;  %s324_s5 = inlined_call_operand.hbm [shape: f32[16,56], index: 5, kind: output, shape index: {}]  }
   0x1   :  { %v21_v0 = vld [vmem:[%s319_s0] sm:$0xff]  ;;  %v22_v1 = vld [vmem:[%s319_s0 + $0x8] sm:$0xff] }
   0x2   :  { %10 = vsyncpa [#allocation3], 0  ;;  %v26_v2 = vsel %vm25_vm0, %v21_v0, 0.0  ;;  %v29_v3 = vsel %vm25_vm0, %v22_v1, 0.0  ;;  %v69_v14 = vld [vmem:[%s322_s3] sm:$0xff]  ;;  %v70_v15 = vld [vmem:[%s322_s3 + $0x8] sm:$0xff] }
   0x3   :  { %27 = vadd.xlane.f32.xlu0 %v26_v2  ;;  %v71_v16 = vld [vmem:[%s322_s3 + $0x10] sm:$0xff]  ;;  %v202_v17 = vpack.c.bf16 %v70_v15, %v69_v14  ;;  %v72_v18 = vld [vmem:[%s322_s3 + $0x18] sm:$0xff]  ;;  %v180_v27 = vld [vmem:[%s320_s1] ss:$0 sm:$0xff]  ;;  %s241_s1 = smov [#allocation2]   ;;  %vm161_vm1 = vcmask 457728  }
   0x4   :  { %v206_v19 = vpack.c.bf16 %v72_v18, %v71_v16  ;;  %v181_v29 = vld [vmem:[%s321_s2] ss:$0 sm:$0xff]  ;;  %s169_s9 = sshll.u32 %s241_s1, 4  ;;  %s170_s9 = int_to_ptr.vmem [resolvable:$true] %s169_s9 }
   0x5   :  { %203 = vmatprep.subr.bf16.mxu0 %v202_v17  ;;  %v182_v36 = vld [vmem:[%s323_s4] ss:$0 sm:$0xff]  ;;  %s217_s2 = scalar_lea.vmem %s170_s9, 256  ;;  %p222_p1 = scmp.lt.s32.totalorder %s170_s9, %s170_s9 }
   0x6   :  { %205 = vmatpush3.bf16.msra.mxu0 %v202_v17  ;;  %p218_p0 = scmp.ne.s32.totalorder %s170_s9, %s217_s2  ;;  %p223_p2 = scmp.lt.s32.totalorder %s217_s2, %s217_s2 }
   0x7   :  { %30 = vadd.xlane.f32.xlu0 %v29_v3  ;;  %207 = vmatprep.subr.bf16.mxu0 %v206_v19 }
   0x8   :  { %p224_p3 = por %p223_p2, %p222_p1 }
   0xa   :  { %209 = vmatpush3.bf16.msra.mxu0 %v206_v19  ;;  %p225_p4 = pnand %p224_p3, %p218_p0 }
  0x90   :  { %v28_v4 = vpop.xlane.xlu0 %27 }
  0x91   :  { %v33_v5 = vmul.f32 0.03125, %v28_v4 }
  0x93   :  { %v35_v6 = vsub.f32 %v21_v0, %v33_v5 }
  0x94   :  { %v31_v7 = vpop.xlane.xlu0 %30 }
  0x95   :  { %v34_v8 = vmul.f32 0.03125, %v31_v7  ;;  %v37_v9 = vmul.f32 %v35_v6, %v35_v6 }
  0x97   :  { %v36_v10 = vsub.f32 %v22_v1, %v34_v8  ;;  %v39_v11 = vsel %vm25_vm0, %v37_v9, 0.0 }
  0x98   :  { %40 = vadd.xlane.f32.xlu1 %v39_v11 }
  0x99   :  { %v38_v12 = vmul.f32 %v36_v10, %v36_v10 }
  0x9b   :  { %v42_v13 = vsel %vm25_vm0, %v38_v12, 0.0 }
  0x9c   :  { %43 = vadd.xlane.f32.xlu1 %v42_v13 }
 0x125   :  { %v41_v20 = vpop.xlane.xlu1 %40 }
 0x126   :  { %v45_v21 = vmul.f32 0.03125, %v41_v20 }
 0x128   :  { %v47_v22 = vadd.f32 1e-05, %v45_v21 }
 0x129   :  { %v44_v23 = vpop.xlane.xlu1 %43 }
 0x12a   :  { %213 = vrsqrt.f32 %v47_v22  ;;  %v46_v24 = vmul.f32 0.03125, %v44_v23 }
 0x12c   :  { %v48_v25 = vadd.f32 1e-05, %v46_v24 }
 0x12e   :  { %215 = vrsqrt.f32 %v48_v25 }
 0x134   :  { %v214_v26 = vpop.eup %213 }
 0x135   :  { %v51_v28 = vmul.f32 %v214_v26, %v35_v6 }
 0x137   :  { %v59_v30 = vmul.f32 %v180_v27, %v51_v28 }
 0x138   :  { %v216_v31 = vpop.eup %215 }
 0x139   :  { %v52_v32 = vmul.f32 %v216_v31, %v36_v10  ;;  %v67_v33 = vadd.f32 %v181_v29, %v59_v30 }
 0x13b   :  { %v60_v34 = vmul.f32 %v180_v27, %v52_v32  ;;  %199 = vmatprep.mubr.msk.f32.mxu0 %vm25_vm0, %v67_v33 }
 0x13d   :  { %v68_v35 = vadd.f32 %v181_v29, %v60_v34 }
 0x13f   :  { %200 = vmatmul.mubr.msk.f32.vlgmr.msra.gmra.mrb[0].mxu0 %vm25_vm0, %v68_v35 }
 0x212   :  { %v201_v37 = vpop.f32.mrb[0].mxu0 }
 0x213   :  { %v158_v38 = vadd.f32 %v201_v37, %v182_v36  ;;  %v152_v39 = vpop.f32.mrb[1].mxu0 }
 0x214   :  { %v153_v40 = vadd.f32 %v182_v36, %v152_v39 }
 0x215   :  { %163 = vst.msk [vmem:[#allocation2 + $0x8] sm:$0xff] %vm161_vm1, %v158_v38 }
 0x216   :  { %162 = vst.msk [vmem:[#allocation2] sm:$0xff] %vm161_vm1, %v153_v40 }
 0x217   :  { %228 = shalt.err (!%p225_p4)
}
 0x218   :  { %s229_s4 = scalar_lea.hbm %s324_s5, 256 }
 0x219   :  { %p230_p5 = scmp.ne.s32.totalorder %s324_s5, %s229_s4  ;;  %p233_p6 = scmp.lt.u32.totalorder %s229_s4, %s324_s5 }
 0x21b   :  { %p235_p7 = pnand %p233_p6, %p230_p5 }
 0x21d   :  { %238 = shalt.err (!%p235_p7)
}
 0x21e   :  { %s242_s16 = smov 128   ;;  %s243_s17 = smov 8  }
 0x21f   :  { %175 = dma.vmem_to_hbm [thread:$0]  %s170_s9, 256, %s324_s5, [#allocation3], %s242_s16, %s242_s16, %s243_s17  }
 0x220   :  { %239 = dma.done.wait [#allocation3], 256  }
 0x221   :  { %240 = vsyncadd [#allocation3], 4294967040 }
 0x222   :  { %179 = vsyncpa [#allocation3], 1 }

// kernel: seq2seq_forward.10
= control target key start
LH: loop header
LB: loop body
LE: loop exit
PB: predicated region body
PF: predicated region fallthrough
CT: control target
= control target key end

     0   :  { %s4556_s0 = inlined_call_operand.vmem [shape: f32[2,8,32], index: 0, kind: input, shape index: {}]   ;;  %s4557_s1 = inlined_call_operand.vmem [shape: f32[2,12,32], index: 1, kind: input, shape index: {}]   ;;  %s4558_s2 = inlined_call_operand.vmem [shape: f32[2,8,8], index: 2, kind: input, shape index: {}]   ;;  %s4559_s3 = inlined_call_operand.vmem [shape: f32[2,1,12], index: 3, kind: input, shape index: {}]   ;;  %s4560_s4 = inlined_call_operand.vmem [shape: f32[32,96], index: 4, kind: input, shape index: {}]   ;;  %s4561_s5 = inlined_call_operand.vmem [shape: f32[1,96], index: 5, kind: input, shape index: {}]   ;;  %s4562_s6 = inlined_call_operand.vmem [shape: f32[32,32], index: 6, kind: input, shape index: {}]   ;;  %s4563_s7 = inlined_call_operand.vmem [shape: f32[1,32], index: 7, kind: input, shape index: {}]   ;;  %s4564_s8 = inlined_call_operand.vmem [shape: f32[1,32], index: 8, kind: input, shape index: {}]   ;;  %s4565_s9 = inlined_call_operand.vmem [shape: f32[1,32], index: 9, kind: input, shape index: {}]   ;;  %s4566_s10 = inlined_call_operand.vmem [shape: f32[32,32], index: 10, kind: input, shape index: {}]   ;;  %s4567_s11 = inlined_call_operand.vmem [shape: f32[1,32], index: 11, kind: input, shape index: {}]   ;;  %s4568_s12 = inlined_call_operand.vmem [shape: f32[32,64], index: 12, kind: input, shape index: {}]   ;;  %s4569_s13 = inlined_call_operand.vmem [shape: f32[1,64], index: 13, kind: input, shape index: {}]   ;;  %s4570_s14 = inlined_call_operand.vmem [shape: f32[32,32], index: 14, kind: input, shape index: {}]   ;;  %s4571_s15 = inlined_call_operand.vmem [shape: f32[1,32], index: 15, kind: input, shape index: {}]   ;;  %s4572_s16 = inlined_call_operand.vmem [shape: f32[1,32], index: 16, kind: input, shape index: {}]   ;;  %s4573_s17 = inlined_call_operand.vmem [shape: f32[1,32], index: 17, kind: input, shape index: {}]   ;;  %s4574_s18 = inlined_call_operand.vmem [shape: f32[32,64], index: 18, kind: input, shape index: {}]   ;;  %s4575_s19 = inlined_call_operand.vmem [shape: f32[1,64], index: 19, kind: input, shape index: {}]   ;;  %s4576_s20 = inlined_call_operand.vmem [shape: f32[64,32], index: 20, kind: input, shape index: {}]   ;;  %s4577_s21 = inlined_call_operand.vmem [shape: f32[1,32], index: 21, kind: input, shape index: {}]   ;;  %s4578_s22 = inlined_call_operand.vmem [shape: f32[1,32], index: 22, kind: input, shape index: {}]   ;;  %s4579_s23 = inlined_call_operand.hbm [shape: f32[1,32], index: 23, kind: input, shape index: {}]   ;;  %s4580_s24 = inlined_call_operand.vmem [shape: f32[2,8,32], index: 24, kind: output, shape index: {}]  }
   0x1   :  { %4595 = sst [smem:[#allocation5_spill]] %s4556_s0 }
   0x2   :  { %4596 = sst [smem:[#allocation6_spill]] %s4557_s1 }
   0x3   :  { %4597 = sst [smem:[#allocation7_spill]] %s4558_s2 }
   0x4   :  { %4598 = sst [smem:[#allocation8_spill]] %s4559_s3 }
   0x5   :  { %4599 = sst [smem:[#allocation9_spill]] %s4560_s4 }
   0x6   :  { %4600 = sst [smem:[#allocation10_spill]] %s4561_s5 }
   0x7   :  { %4601 = sst [smem:[#allocation11_spill]] %s4562_s6 }
   0x8   :  { %4602 = sst [smem:[#allocation12_spill]] %s4563_s7 }
   0x9   :  { %4603 = sst [smem:[#allocation13_spill]] %s4564_s8 }
   0xa   :  { %29 = vsyncpa [#allocation3], 0  ;;  %s4114_s5 = smov 0  }
   0xb LB: > { %s4120_s26 = sadd.s32 4294967295, %s3971_s5   ;;  %p3398_p0 = scmp.ge.s32.totalorder %s3971_s5, 1  ;;  %s3971_s5 = sphi %s4114_s5, %s35_s5  }
   0xc   : > { %p590_p1 = scmp.lt.s32.totalorder %s3971_s5, 3  ;;  %p4583_p3 = scmp.eq.s32.totalorder %s4120_s26, 0 }
   0xd   : > { %s3973_s28 = smov [#allocation2]   ;;  %s3933_s7 = scalar_lea.hbm %s4579_s23, 16 }
   0xe   : > { %p4124_p2 = pnand %p3398_p0, %p590_p1  ;;  %s660_s6 = sshll.u32 %s3973_s28, 4  ;;  %s661_s6 = int_to_ptr.vmem [resolvable:$true] %s660_s6 }
   0xf   : > { %p3934_p6 = scmp.ne.s32.totalorder %s4579_s23, %s3933_s7  ;;  %p3940_p10 = scmp.lt.u32.totalorder %s3933_s7, %s4579_s23 }
  0x10   : > { %s4604_s27 = scalar_select %p4124_p2, 1, 0 }
  0x11   : > { %p3830_p4 = pneg %p4124_p2 }
  0x13   : > { %p4133_p5 = pnand %p4583_p3, %p3830_p4 }
  0x15   : > { %p3935_p7 = pneg %p4133_p5 }
  0x17   : > { %p3936_p8 = pnand %p3935_p7, %p3934_p6 }
  0x19   : > { %p3937_p9 = pneg %p3936_p8 }
  0x1b   : > { %p3942_p11 = pnand %p3940_p10, %p3937_p9 }
  0x1d   : > { %3945 = shalt.err (!%p3942_p11)
}
  0x1e   : > { %s3946_s4 = scalar_lea.vmem %s661_s6, 16  ;;  %s3953_s1 = scalar_lea.vmem %s661_s6, 32 }
  0x1f   : > { %p3947_p12 = scmp.ne.s32.totalorder %s661_s6, %s3946_s4  ;;  %p3954_p1 = scmp.lt.s32.totalorder %s661_s6, %s661_s6 }
  0x20   : > { %p3955_p4 = scmp.lt.s32.totalorder %s3953_s1, %s3946_s4 }
  0x21   : > { %p3949_p13 = pnand %p3947_p12, %p3935_p7 }
  0x22   : > { %p3956_p3 = por %p3955_p4, %p3954_p1 }
  0x23   : > { %p3950_p0 = pneg %p3949_p13 }
  0x25   : > { %p3957_p2 = pnand %p3956_p3, %p3950_p0 }
  0x27   : > { %3960 = shalt.err (!%p3957_p2)
}
  0x28   : > { %3833 = dma.hbm_to_vmem [thread:$0]  (!%p4133_p5), %s4579_s23, 16, %s661_s6, [#allocation3]  }
  0x29   : > { %p4606_p6 = scmp.ne.s32.totalorder %s4604_s27, 0 }
  0x2a   : > { %p4607_p8 = scmp.eq.s32.totalorder (!%p4606_p6), %s4120_s26, 0 }
  0x2b   : > { %701 = sbr.rel (%p4606_p6) target bundleno = 6684 (0x1a1c), region = 116 }
  0x32   : > { %3966 = dma.done.wait (%p4607_p8), [#allocation3], 16   ;;  %p4608_p7 = pmov %p4607_p8 }
  0x33   : > { %p777_p9 = scmp.lt.s32.totalorder %s4120_s26, 1  ;;  %v3974_v0 = vmov 0.0|0.0   ;;  %vm3975_vm0 = vmmov 0   ;;  %v3976_v1 = vmov 0.0   ;;  %s4609_s2 = sld [smem:[#allocation9_spill]]  ;;  %vm813_vm1 = vcmask 261120  }
  0x34   : > { %3968 = vsyncadd (%p4608_p7), [#allocation3], 4294967280  ;;  %3756 = vmatprep.subr.bf16.mxu0 %v3974_v0  ;;  %3565 = vmatprep.mubr.msk.f32.mxu0 %vm3975_vm0, %v3976_v1  ;;  %s4610_s29 = sld [smem:[#allocation5_spill]]  ;;  %s4611_s7 = sld [smem:[#allocation10_spill]]  ;;  %vm895_vm2 = vcmask 64512   ;;  %vm2150_vm4 = vcmask 97280  }
  0x35   : > { %3573 = vmatprep.subr.mxu1 %v3976_v1  ;;  %3575 = vmatprep.mubr.msk.f32.mxu1 %vm3975_vm0, %v3976_v1  ;;  %s4630_s26 = smov (!%p777_p9, %s4120_s26), 1  ;;  %s4593_s30 = smov 120   ;;  %vm4357_vm3 = vmpackc.low %vm895_vm2, %vm895_vm2  ;;  %vm2170_vm5 = vcmask 1043456   ;;  %vm3988_vm6 = vmmov 1   ;;  %vm3193_vm8 = vcmask 523264  }
  0x36   : > { %s4182_s4 = sshll.u32 %s4630_s26, 3  ;;  %s4592_s3 = smov 96   ;;  %vm4386_vm7 = vmpackc.low %vm2170_vm5, %vm3988_vm6 }
  0x37   : > { %s4591_s25 = smov 88   ;;  %s4612_s28 = sld [smem:[#allocation7_spill]] }
  0x38   : > { %s3981_s6 = smov 64   ;;  %s4586_s0 = smov 80  }
  0x39   : > { %v802_v2 = vld [vmem:[%s4609_s2] sm:$0xff]  ;;  %v803_v3 = vld [vmem:[%s4609_s2 + $0x8] sm:$0xff]  ;;  %v804_v4 = vld [vmem:[%s4609_s2 + $0x10] sm:$0xff]  ;;  %s4587_s8 = smov 104   ;;  %s3986_s1 = smov 48  }
  0x3a   : > { %v3757_v5 = vpack.c.bf16 %v803_v3, %v802_v2  ;;  %v805_v6 = vld [vmem:[%s4609_s2 + $0x18] sm:$0xff]  ;;  %s780_s27 = scalar_lea.vmem %s4610_s29, %s4182_s4  ;;  %v3408_v9 = vld [vmem:[%s4611_s7] ss:$0 sm:$0xff]  ;;  %s4589_s7 = smov 112  }
  0x3b   : > { %v3760_v7 = vpack.c.bf16 %v805_v6, %v804_v4  ;;  %v4189_v8 = vld [vmem:[%s780_s27] sm:$0xff]  ;;  %s3980_s27 = smov 56  }
  0x3c   : > { %3758 = vmatpush3.bf16.msra.mxu0 %v3757_v5 }
  0x3d   : > { %3759 = vmatprep.subr.bf16.mxu0 %v3974_v0  ;;  %s789_s29 = scalar_lea.vmem %s4612_s28, %s4182_s4  ;;  %s4613_s28 = sld [smem:[#allocation11_spill]] }
  0x3e   : > { %v4222_v16 = vld [vmem:[%s789_s29] sm:$0xff] }
  0x40   : > { %3761 = vmatpush3.bf16.msra.mxu0 %v3760_v7 }
  0x41   : > { %3568 = vmatprep.subr.mxu0 %v3976_v1 }
  0x43   : > { %3566 = vmatmul.mubr.msk.f32.vlgmr.msra.gmra.mrb[0].mxu0 %vm813_vm1, %v4189_v8  ;;  %v888_v35 = vld [vmem:[%s4613_s28 + $0x8] sm:$0xff]  ;;  %v887_v44 = vld [vmem:[%s4613_s28] sm:$0xff] }
  0x44   : > { %3570 = vmatprep.mubr.msk.f32.mxu0 %vm3975_vm0, %v3976_v1 }
 0x116   : > { %v883_v10 = vpop.f32.mrb[0].mxu0 }
 0x117   : > { %v4199_v11 = vadd.f32 %v3408_v9, %v883_v10  ;;  %v3567_v12 = vpop.f32.mrb[1].mxu0  ;;  %v889_v10 = vld [vmem:[%s4613_s28 + $0x10] sm:$0xff] }
 0x119   : > { %1057 = vrot.lane.b32.xlu1 %v4199_v11, %s4593_s30  ;;  %893 = vrot.lane.b32.xlu0 %v4199_v11, %s4592_s3  ;;  %s3470_s3 = sshll.u32 %s4630_s26, 4  ;;  %s4615_s30 = sld [smem:[#allocation6_spill]] }
 0x11d   : > { %1059 = vrot.lane.b32.xlu0 %v4199_v11, %s4591_s25  ;;  %s4621_s25 = smov 96  }
 0x11f   : > { %s785_s29 = scalar_lea.vmem %s4615_s30, %s3470_s3  ;;  %s4619_s3 = smov 120  }
 0x120   : > { %s4624_s30 = smov 88  }
 0x18b   : > { %v894_v13 = vpop.permute.xlu0 %893  ;;  %v1058_v15 = vpop.permute.xlu1 %1057 }
 0x18c   : > { %3569 = vmatpush3.xpose.msk.msra.mxu0 %vm895_vm2, %v894_v13 }
 0x18d   : > { %3578 = vmatprep.subr.mxu0 %v3976_v1 }
 0x18f   : > { %3571 = vmatmul.mubr.msk.f32.vlgmr.msra.gmra.mrb[2].mxu0 %vm895_vm2, %v4199_v11  ;;  %v1060_v14 = vpop.permute.xlu0 %1059 }
 0x190   : > { %3579 = vmatpush3.xpose.msk.msra.mxu0 %vm895_vm2, %v1060_v14  ;;  %3580 = vmatprep.mubr.msk.f32.mxu0 %vm3975_vm0, %v3976_v1 }
 0x191   : > { %3588 = vmatprep.subr.mxu0 %v3976_v1 }
 0x193   : > { %3581 = vmatmul.mubr.msk.f32.vlgmr.msra.gmra.mrb[4].mxu0 %vm895_vm2, %v1058_v15 }
 0x194   : > { %3590 = vmatprep.mubr.msk.f32.mxu0 %vm3975_vm0, %v3976_v1  ;;  %3589 = vmatpush3.msra.mxu0 %v888_v35 }
 0x195   : > { %3598 = vmatprep.subr.mxu0 %v3976_v1 }
 0x262   : > { %v966_v17 = vpop.f32.mrb[2].mxu0 }
 0x263   : > { %v967_v18 = vadd.f32 %v966_v17, %v4222_v16  ;;  %v3572_v19 = vpop.f32.mrb[3].mxu0 }
 0x265   : > { %v970_v20 = vsel %vm895_vm2, %v967_v18, -inf }
 0x266   : > { %971 = vmax.xlane.f32.xlu1 %v970_v20  ;;  %v1131_v21 = vpop.f32.mrb[4].mxu0 }
 0x267   : > { %v1132_v22 = vadd.f32 %v1131_v21, %v4222_v16  ;;  %v3582_v23 = vpop.f32.mrb[5].mxu0 }
 0x269   : > { %v1135_v24 = vsel %vm895_vm2, %v1132_v22, -inf }
 0x26a   : > { %1136 = vmax.xlane.f32.xlu0 %v1135_v24 }
 0x2f3   : > { %v972_v25 = vpop.xlane.xlu1 %971 }
 0x2f4   : > { %v973_v26 = vsub.f32 %v967_v18, %v972_v25 }
 0x2f6   : > { %v974_v27 = vmul.f32 1.442695, %v973_v26 }
 0x2f7   : > { %v1137_v28 = vpop.xlane.xlu0 %1136 }
 0x2f8   : > { %3895 = vpow2.f32 %v974_v27  ;;  %v1138_v29 = vsub.f32 %v1132_v22, %v1137_v28 }
 0x2fa   : > { %v1139_v30 = vmul.f32 1.442695, %v1138_v29 }
 0x2fc   : > { %3897 = vpow2.f32 %v1139_v30 }
 0x302   : > { %v3896_v31 = vpop.eup %3895 }
 0x303   : > { %v976_v32 = vsel %vm895_vm2, %v3896_v31, 0.0 }
 0x304   : > { %977 = vadd.xlane.f32.xlu0 %v976_v32 }
 0x306   : > { %v3898_v33 = vpop.eup %3897 }
 0x307   : > { %v1141_v34 = vsel %vm895_vm2, %v3898_v33, 0.0 }
 0x308   : > { %1142 = vadd.xlane.f32.xlu1 %v1141_v34 }
 0x319   : > { %1146 = vrot.lane.b32.xlu1 %v4199_v11, %s3980_s27  ;;  %s4614_s27 = sld [smem:[#allocation12_spill]] }
 0x31a   : > { %981 = vrot.lane.b32.xlu0 %v4199_v11, %s3981_s6  ;;  %s4585_s6 = smov 72  }
 0x31d   : > { %1370 = vrot.lane.b32.xlu1 %v4199_v11, %s4586_s0  ;;  %s4616_s0 = sld [smem:[#allocation13_spill]] }
 0x31e   : > { %1368 = vrot.lane.b32.xlu0 %v4199_v11, %s4589_s7 }
 0x31f   : > { %v3426_v32 = vld [vmem:[%s4614_s27] ss:$0 sm:$0xff]  ;;  %s4626_s27 = smov 104  }
 0x391   : > { %v978_v36 = vpop.xlane.xlu0 %977 }
 0x392   : > { %3899 = vrcp.f32 %v978_v36 }
 0x395   : > { %v1143_v37 = vpop.xlane.xlu1 %1142  ;;  %v982_v38 = vpop.permute.xlu0 %981 }
 0x396   : > { %3901 = vrcp.f32 %v1143_v37  ;;  %3574 = vmatpush3.msra.mxu1 %v982_v38 }
 0x397   : > { %3583 = vmatprep.subr.mxu1 %v3976_v1 }
 0x399   : > { %v1147_v41 = vpop.permute.xlu1 %1146  ;;  %v1369_v50 = vpop.permute.xlu0 %1368 }
 0x39c   : > { %v3900_v39 = vpop.eup %3899 }
 0x39d   : > { %v980_v40 = vmul.f32 %v3900_v39, %v3896_v31  ;;  %v1371_v48 = vpop.permute.xlu1 %1370 }
 0x39f   : > { %3576 = vmatmul.mubr.msk.f32.vlgmr.msra.gmra.mrb[0].mxu1 %vm895_vm2, %v980_v40 }
 0x3a0   : > { %v3902_v42 = vpop.eup %3901  ;;  %3584 = vmatpush3.msra.mxu1 %v1147_v41  ;;  %3585 = vmatprep.mubr.msk.f32.mxu1 %vm3975_vm0, %v3976_v1 }
 0x3a1   : > { %v1145_v43 = vmul.f32 %v3902_v42, %v3898_v33  ;;  %3593 = vmatprep.subr.mxu1 %v3976_v1 }
 0x3a3   : > { %3586 = vmatmul.mubr.msk.f32.vlgmr.msra.gmra.mrb[2].mxu1 %vm895_vm2, %v1145_v43 }
 0x3a4   : > { %3595 = vmatprep.mubr.msk.f32.mxu1 %vm3975_vm0, %v3976_v1  ;;  %3594 = vmatpush3.msra.mxu1 %v887_v44  ;;  %v1968_v44 = vld [vmem:[%s4568_s12] sm:$0xff] }
 0x3a5   : > { %3603 = vmatprep.subr.mxu1 %v3976_v1 }
 0x472   : > { %v1053_v45 = vpop.f32.mrb[0].mxu1 }
 0x473   : > { %v3577_v46 = vpop.f32.mrb[1].mxu1  ;;  %3596 = vmatmul.mubr.msk.f32.vlgmr.msra.gmra.mrb[4].mxu1 %vm895_vm2, %v1053_v45  ;;  %v1969_v45 = vld [vmem:[%s4568_s12 + $0x8] sm:$0xff] }
 0x474   : > { %3605 = vmatprep.mubr.msk.f32.mxu1 %vm3975_vm0, %v3976_v1  ;;  %v1970_v46 = vld [vmem:[%s4568_s12 + $0x10] sm:$0xff] }
 0x476   : > { %v1218_v47 = vpop.f32.mrb[2].mxu1 }
 0x477   : > { %v3587_v49 = vpop.f32.mrb[3].mxu1  ;;  %3591 = vmatmul.mubr.msk.f32.vlgmr.msra.gmra.mrb[6].mxu0 %vm895_vm2, %v1218_v47  ;;  %v1971_v47 = vld [vmem:[%s4568_s12 + $0x18] sm:$0xff] }
 0x478   : > { %3599 = vmatpush3.xpose.msk.msra.mxu0 %vm895_vm2, %v1371_v48  ;;  %3600 = vmatprep.mubr.msk.f32.mxu0 %vm3975_vm0, %v3976_v1  ;;  %v3772_v48 = vpack.c.bf16 %v1971_v47, %v1970_v46  ;;  %v798_v49 = vld [vmem:[%s785_s29] sm:$0xff] }
 0x479   : > { %3608 = vmatprep.subr.mxu0 %v3976_v1 }
 0x47b   : > { %3601 = vmatmul.mubr.msk.f32.vlgmr.msra.gmra.mrb[8].mxu0 %vm895_vm2, %v1369_v50  ;;  %v799_v50 = vld [vmem:[%s785_s29 + $0x8] sm:$0xf]  ;;  %s4627_s29 = smov 80  }
 0x47c   : > { %3610 = vmatprep.mubr.msk.f32.mxu0 %vm3975_vm0, %v3976_v1  ;;  %3609 = vmatpush3.msra.mxu0 %v889_v10 }
 0x47d   : > { %3618 = vmatprep.subr.mxu0 %v3976_v1 }
 0x546   : > { %v1364_v51 = vpop.f32.mrb[4].mxu1 }
 0x547   : > { %v3597_v52 = vpop.f32.mrb[5].mxu1 }
 0x548   : > { %v1885_v52 = vld [vmem:[%s4566_s10 + $0x8] sm:$0xff] }
 0x54a   : > { %v1291_v53 = vpop.f32.mrb[6].mxu0 }
 0x54b   : > { %v1365_v54 = vadd.f32 %v1364_v51, %v1291_v53  ;;  %v3592_v55 = vpop.f32.mrb[7].mxu0  ;;  %v1884_v51 = vld [vmem:[%s4566_s10] sm:$0xff] }
 0x54c   : > { %v3763_v53 = vpack.c.bf16 %v1885_v52, %v1884_v51  ;;  %v1887_v55 = vld [vmem:[%s4566_s10 + $0x18] sm:$0xff] }
 0x54e   : > { %v1442_v56 = vpop.f32.mrb[8].mxu0 }
 0x54f   : > { %v1443_v57 = vadd.f32 %v1442_v56, %v4222_v16  ;;  %v3602_v58 = vpop.f32.mrb[9].mxu0 }
 0x551   : > { %v1446_v59 = vsel %vm895_vm2, %v1443_v57, -inf }
 0x552   : > { %1447 = vmax.xlane.f32.xlu1 %v1446_v59 }
 0x563   : > { %1609 = vrot.lane.b32.xlu1 %v4199_v11, %s4585_s6 }
 0x567   : > { %1607 = vrot.lane.b32.xlu1 %v4199_v11, %s4587_s8 }
 0x5df   : > { %v1448_v60 = vpop.xlane.xlu1 %1447 }
 0x5e0   : > { %v1449_v61 = vsub.f32 %v1443_v57, %v1448_v60 }
 0x5e2   : > { %v1450_v62 = vmul.f32 1.442695, %v1449_v61  ;;  %v3427_v61 = vld [vmem:[%s4616_s0] ss:$0 sm:$0xff]  ;;  %s4620_s0 = sld [smem:[#allocation8_spill]] }
 0x5e3   : > { %v1610_v6 = vpop.permute.xlu1 %1609 }
 0x5e4   : > { %3903 = vpow2.f32 %v1450_v62 }
 0x5e7   : > { %v1608_v9 = vpop.permute.xlu1 %1607 }
 0x5e8   : > { %s792_s8 = scalar_lea.vmem %s4620_s0, %s4630_s26  ;;  %s4628_s0 = smov 72  }
 0x5ee   : > { %v3904_v63 = vpop.eup %3903 }
 0x5ef   : > { %v1452_v2 = vsel %vm895_vm2, %v3904_v63, 0.0 }
 0x5f0   : > { %1453 = vadd.xlane.f32.xlu0 %v1452_v2 }
 0x606   : > { %1457 = vrot.lane.b32.xlu0 %v4199_v11, %s3986_s1  ;;  %s3987_s1 = smov 40  }
 0x67d   : > { %v1454_v3 = vpop.xlane.xlu0 %1453 }
 0x67e   : > { %3905 = vrcp.f32 %v1454_v3 }
 0x681   : > { %v1458_v4 = vpop.permute.xlu0 %1457 }
 0x682   : > { %3604 = vmatpush3.msra.mxu1 %v1458_v4  ;;  %v3431_v4 = vld [vmem:[%s4569_s13] ss:$0 sm:$0xff] }
 0x683   : > { %3613 = vmatprep.subr.mxu1 %v3976_v1 }
 0x688   : > { %v3906_v5 = vpop.eup %3905 }
 0x689   : > { %v1456_v7 = vmul.f32 %v3906_v5, %v3904_v63  ;;  %v3428_v63 = vld [vmem:[%s4565_s9] ss:$0 sm:$0xff] }
 0x68b   : > { %3606 = vmatmul.mubr.msk.f32.vlgmr.msra.gmra.mrb[6].mxu1 %vm895_vm2, %v1456_v7 }
 0x68c   : > { %3614 = vmatpush3.xpose.msk.msra.mxu1 %vm895_vm2, %v1610_v6  ;;  %3615 = vmatprep.mubr.msk.f32.mxu1 %vm3975_vm0, %v3976_v1 }
 0x68d   : > { %3623 = vmatprep.subr.mxu1 %v3976_v1 }
 0x68f   : > { %3616 = vmatmul.mubr.msk.f32.vlgmr.msra.gmra.mrb[8].mxu1 %vm895_vm2, %v1608_v9 }
 0x690   : > { %3625 = vmatprep.mubr.msk.f32.mxu1 %vm3975_vm0, %v3976_v1 }
 0x75e   : > { %v1529_v12 = vpop.f32.mrb[6].mxu1 }
 0x75f   : > { %v3607_v13 = vpop.f32.mrb[7].mxu1  ;;  %3611 = vmatmul.mubr.msk.f32.vlgmr.msra.gmra.mrb[10].mxu0 %vm895_vm2, %v1529_v12 }
 0x760   : > { %3620 = vmatprep.mubr.msk.f32.mxu0 %vm3975_vm0, %v3976_v1 }
 0x762   : > { %v1681_v14 = vpop.f32.mrb[8].mxu1 }
 0x763   : > { %v1682_v15 = vadd.f32 %v1681_v14, %v4222_v16  ;;  %v3617_v17 = vpop.f32.mrb[9].mxu1  ;;  %v890_v16 = vld [vmem:[%s4613_s28 + $0x18] sm:$0xff]  ;;  %v3429_v14 = vld [vmem:[%s4567_s11] ss:$0 sm:$0xff] }
 0x764   : > { %3624 = vmatpush3.msra.mxu1 %v890_v16 }
 0x765   : > { %v1685_v18 = vsel %vm895_vm2, %v1682_v15, -inf }
 0x766   : > { %1686 = vmax.xlane.f32.xlu0 %v1685_v18 }
 0x77c   : > { %1696 = vrot.lane.b32.xlu0 %v4199_v11, %s3987_s1 }
 0x7f3   : > { %v1687_v19 = vpop.xlane.xlu0 %1686 }
 0x7f4   : > { %v1688_v20 = vsub.f32 %v1682_v15, %v1687_v19  ;;  %v4379_v19 = vld [vmem:[%s792_s8] ss:$0 sm:$0xff] }
 0x7f6   : > { %v1689_v21 = vmul.f32 1.442695, %v1688_v20 }
 0x7f7   : > { %v1697_v22 = vpop.permute.xlu0 %1696 }
 0x7f8   : > { %3907 = vpow2.f32 %v1689_v21  ;;  %3619 = vmatpush3.msra.mxu0 %v1697_v22 }
 0x7f9   : > { %3762 = vmatprep.subr.bf16.mxu0 %v3974_v0 }
 0x802   : > { %v3908_v23 = vpop.eup %3907 }
 0x803   : > { %v1691_v24 = vsel %vm895_vm2, %v3908_v23, 0.0 }
 0x804   : > { %1692 = vadd.xlane.f32.xlu1 %v1691_v24 }
 0x832   : > { %v1602_v25 = vpop.f32.mrb[10].mxu0 }
 0x833   : > { %v1606_v26 = vadd.f32 %v1602_v25, %v1365_v54  ;;  %v3612_v11 = vpop.f32.mrb[11].mxu0  ;;  %v1886_v54 = vld [vmem:[%s4566_s10 + $0x10] sm:$0xff] }
 0x834   : > { %v3766_v56 = vpack.c.bf16 %v1887_v55, %v1886_v54 }
 0x891   : > { %v1693_v27 = vpop.xlane.xlu1 %1692 }
 0x892   : > { %3909 = vrcp.f32 %v1693_v27 }
 0x89c   : > { %v3910_v28 = vpop.eup %3909 }
 0x89d   : > { %v1695_v29 = vmul.f32 %v3910_v28, %v3908_v23 }
 0x89f   : > { %3621 = vmatmul.mubr.msk.f32.vlgmr.msra.gmra.mrb[12].mxu0 %vm895_vm2, %v1695_v29 }
 0x8a0   : > { %3636 = vmatprep.mubr.msk.f32.mxu0 %vm3975_vm0, %v3976_v1  ;;  %3764 = vmatpush3.bf16.msra.mxu0 %v3763_v53 }
 0x8a1   : > { %3765 = vmatprep.subr.bf16.mxu0 %v3974_v0 }
 0x8a4   : > { %3767 = vmatpush3.bf16.msra.mxu0 %v3766_v56 }
 0x8a5   : > { %3776 = vmatprep.subr.bf16.mxu0 %v3974_v0 }
 0x972   : > { %v1768_v30 = vpop.f32.mrb[12].mxu0 }
 0x973   : > { %v3622_v31 = vpop.f32.mrb[13].mxu0  ;;  %3626 = vmatmul.mubr.msk.f32.vlgmr.msra.gmra.mrb[10].mxu1 %vm895_vm2, %v1768_v30 }
 0x974   : > { %3647 = vmatprep.mubr.msk.f32.mxu1 %vm813_vm1, %v798_v49 }
 0xa46   : > { %v1841_v33 = vpop.f32.mrb[10].mxu1 }
 0xa47   : > { %v1845_v34 = vadd.f32 %v1841_v33, %v1606_v26  ;;  %v3627_v35 = vpop.f32.mrb[11].mxu1 }
 0xa49   : > { %v1852_v36 = vadd.f32 %v3426_v32, %v1845_v34 }
 0xa4b   : > { %v1853_v37 = vadd.f32 %v1852_v36, %v4189_v8  ;;  %v3768_v8 = vpack.c.bf16 %v1969_v45, %v1968_v44 }
 0xa4d   : > { %v1856_v38 = vsel %vm813_vm1, %v1853_v37, 0.0  ;;  %3769 = vmatprep.subr.bf16.mxu1 %v3768_v8 }
 0xa4e   : > { %1857 = vadd.xlane.f32.xlu1 %v1856_v38  ;;  %3771 = vmatpush3.bf16.msra.mxu1 %v3768_v8 }
 0xa4f   : > { %3773 = vmatprep.subr.bf16.mxu1 %v3772_v48 }
 0xa52   : > { %3775 = vmatpush3.bf16.msra.mxu1 %v3772_v48 }
 0xa53   : > { %3780 = vmatprep.subr.bf16.mxu1 %v3974_v0 }
 0xa55   : > { %3648 = vmatmul.mubr.msk.f32.vlgmr.msra.gmra.mrb[12].mxu1 %vm813_vm1, %v799_v50 }
 0xa56   : > { %3661 = vmatprep.mubr.msk.f32.mxu1 %vm3975_vm0, %v3976_v1 }
 0xadb   : > { %v1858_v39 = vpop.xlane.xlu1 %1857 }
 0xadc   : > { %v1860_v40 = vmul.f32 0.03125, %v1858_v39 }
 0xade   : > { %v1861_v41 = vsub.f32 %v1853_v37, %v1860_v40  ;;  %v2060_v40 = vld [vmem:[%s4570_s14] sm:$0xff] }
 0xae0   : > { %v1862_v42 = vmul.f32 %v1861_v41, %v1861_v41 }
 0xae2   : > { %v1863_v43 = vsel %vm813_vm1, %v1862_v42, 0.0 }
 0xae3   : > { %1864 = vadd.xlane.f32.xlu1 %v1863_v43 }
 0xb28   : > { %v3649_v5 = vpop.f32.mrb[12].mxu1 }
 0xb29   : > { %v2057_v6 = vadd.f32 %v3649_v5, %v3431_v4  ;;  %v2051_v7 = vpop.f32.mrb[13].mxu1 }
 0xb2a   : > { %v2052_v9 = vadd.f32 %v3431_v4, %v2051_v7 }
 0xb2c   : > { %v4361_v12 = vpack.i.bf16 %v2057_v6, %v2052_v9  ;;  %v3777_v13 = vpack.c.bf16 %v2057_v6, %v2052_v9 }
 0xb2e   : > { %3866 = vrot.lane.b32.xlu0 %v4361_v12, %s4619_s3 }
 0xb70   : > { %v1865_v57 = vpop.xlane.xlu1 %1864 }
 0xb71   : > { %v1866_v58 = vmul.f32 0.03125, %v1865_v57 }
 0xb73   : > { %v1867_v59 = vadd.f32 1e-05, %v1866_v58 }
 0xb75   : > { %3911 = vrsqrt.f32 %v1867_v59 }
 0xb7f   : > { %v3912_v60 = vpop.eup %3911 }
 0xb80   : > { %v1869_v62 = vmul.f32 %v3912_v60, %v1861_v41  ;;  %v2061_v60 = vld [vmem:[%s4570_s14 + $0x8] sm:$0xff] }
 0xb82   : > { %v1876_v2 = vmul.f32 %v3427_v61, %v1869_v62 }
 0xb84   : > { %v4346_v3 = vadd.f32 %v3428_v63, %v1876_v2 }
 0xb86   : > { %3637 = vmatmul.mubr.msk.f32.vlgmr.msra.gmra.mrb[14].mxu0 %vm813_vm1, %v4346_v3 }
 0xb87   : > { %3654 = vmatprep.mubr.msk.f32.mxu0 %vm3975_vm0, %v3976_v1  ;;  %3779 = vmatpush3.bf16.xpose.msk.msra.mxu0 %vm4357_vm3, %v3777_v13 }
 0xb88   : > { %3788 = vmatprep.subr.bf16.mxu0 %v3974_v0 }
 0xba0   : > { %v3867_v33 = vpop.permute.xlu0 %3866 }
 0xba1   : > { %v3869_v35 = vunpack.i.h.bf16 %v3867_v33  ;;  %v3868_v36 = vunpack.i.l.bf16 %v3867_v33 }
 0xba3   : > { %v3785_v38 = vpack.c.bf16 %v3869_v35, %v3868_v36 }
 0xc59   : > { %v1964_v15 = vpop.f32.mrb[14].mxu0 }
 0xc5a   : > { %v1965_v17 = vadd.f32 %v3429_v14, %v1964_v15  ;;  %v3638_v18 = vpop.f32.mrb[15].mxu0 }
 0xc5c   : > { %2243 = vrot.lane.b32.xlu0 %v1965_v17, %s4619_s3  ;;  %3655 = vmatmul.mubr.msk.f32.vlgmr.msra.gmra.mrb[16].mxu0 %vm895_vm2, %v1965_v17  ;;  %s4625_s3 = smov 112  }
 0xc5d   : > { %3675 = vmatprep.mubr.msk.f32.mxu0 %vm3975_vm0, %v3976_v1 }
 0xcce   : > { %v2244_v39 = vpop.permute.xlu0 %2243 }
 0xd2f   : > { %v2146_v20 = vpop.f32.mrb[16].mxu0 }
 0xd30   : > { %v2147_v21 = vadd.f32 %v4379_v19, %v2146_v20  ;;  %v3656_v22 = vpop.f32.mrb[17].mxu0 }
 0xd32   : > { %v2151_v23 = vsel %vm2150_vm4, %v2147_v21, -inf }
 0xd33   : > { %2152 = vmax.xlane.f32.xlu1 %v2151_v23 }
 0xdc0   : > { %v2153_v24 = vpop.xlane.xlu1 %2152 }
 0xdc1   : > { %v2154_v16 = vsub.f32 %v2147_v21, %v2153_v24 }
 0xdc3   : > { %v2155_v25 = vmul.f32 1.442695, %v2154_v16 }
 0xdc5   : > { %3913 = vpow2.f32 %v2155_v25 }
 0xdcf   : > { %v3914_v26 = vpop.eup %3913 }
 0xdd0   : > { %v2157_v11 = vsel %vm2150_vm4, %v3914_v26, 0.0 }
 0xdd1   : > { %2158 = vadd.xlane.f32.xlu1 %v2157_v11 }
 0xde2   : > { %3861 = vrot.lane.b32.xlu1 %v4361_v12, %s4621_s25 }
 0xe5e   : > { %v2159_v27 = vpop.xlane.xlu1 %2158 }
 0xe5f   : > { %3915 = vrcp.f32 %v2159_v27 }
 0xe62   : > { %v3862_v28 = vpop.permute.xlu1 %3861 }
 0xe63   : > { %v3864_v29 = vunpack.i.h.bf16 %v3862_v28  ;;  %v3863_v30 = vunpack.i.l.bf16 %v3862_v28 }
 0xe65   : > { %v3781_v32 = vpack.c.bf16 %v3864_v29, %v3863_v30 }
 0xe67   : > { %3783 = vmatpush3.bf16.msk.msra.mxu1 %vm4386_vm7, %v3781_v32 }
 0xe68   : > { %3784 = vmatprep.subr.bf16.mxu1 %v3974_v0 }
 0xe69   : > { %v3916_v34 = vpop.eup %3915 }
 0xe6a   : > { %v2161_v37 = vmul.f32 %v3916_v34, %v3914_v26 }
 0xe6c   : > { %3662 = vmatmul.mubr.msk.f32.vlgmr.msra.gmra.mrb[14].mxu1 %vm2150_vm4, %v2161_v37 }
 0xe6d   : > { %3668 = vmatprep.mubr.msk.f32.mxu1 %vm3975_vm0, %v3976_v1 }
 0xe70   : > { %3787 = vmatpush3.bf16.xpose.msk.msra.mxu1 %vm4357_vm3, %v3785_v38 }
 0xe71   : > { %3683 = vmatprep.subr.mxu1 %v3976_v1 }
 0xe77   : > { %3669 = vmatmul.mubr.msk.f32.vlgmr.msra.gmra.mrb[16].mxu1 %vm895_vm2, %v2244_v39 }
 0xe78   : > { %3685 = vmatprep.mubr.msk.f32.mxu1 %vm3975_vm0, %v3976_v1  ;;  %3684 = vmatpush3.msra.mxu1 %v2060_v40 }
 0xe79   : > { %3796 = vmatprep.subr.bf16.mxu1 %v3974_v0 }
 0xf3f   : > { %v2239_v41 = vpop.f32.mrb[14].mxu1 }
 0xf40   : > { %v3663_v42 = vpop.f32.mrb[15].mxu1  ;;  %3686 = vmatmul.mubr.msk.f32.vlgmr.msra.gmra.mrb[18].mxu1 %vm895_vm2, %v2239_v41 }
 0xf41   : > { %3699 = vmatprep.mubr.msk.f32.mxu1 %vm3975_vm0, %v3976_v1 }
 0xf4a   : > { %v2321_v43 = vpop.f32.mrb[16].mxu1 }
 0xf4b   : > { %v2322_v44 = vadd.f32 %v4379_v19, %v2321_v43  ;;  %v3670_v45 = vpop.f32.mrb[17].mxu1  ;;  %v2062_v43 = vld [vmem:[%s4570_s14 + $0x10] sm:$0xff] }
 0xf4d   : > { %v2325_v8 = vsel %vm2150_vm4, %v2322_v44, -inf }
 0xf4e   : > { %2326 = vmax.xlane.f32.xlu0 %v2325_v8 }
 0xf64   : > { %3871 = vrot.lane.b32.xlu0 %v4361_v12, %s4624_s30 }
 0xf68   : > { %2562 = vrot.lane.b32.xlu0 %v1965_v17, %s4625_s3 }
 0xf6c   : > { %3881 = vrot.lane.b32.xlu0 %v4361_v12, %s4626_s27 }
 0xf70   : > { %2809 = vrot.lane.b32.xlu0 %v1965_v17, %s4626_s27 }
 0xfdb   : > { %v2327_v46 = vpop.xlane.xlu0 %2326 }
 0xfdc   : > { %v2328_v47 = vsub.f32 %v2322_v44, %v2327_v46 }
 0xfde   : > { %v2329_v48 = vmul.f32 1.442695, %v2328_v47 }
 0xfdf   : > { %v3872_v49 = vpop.permute.xlu0 %3871 }
 0xfe0   : > { %3917 = vpow2.f32 %v2329_v48  ;;  %v3874_v50 = vunpack.i.h.bf16 %v3872_v49  ;;  %v3873_v51 = vunpack.i.l.bf16 %v3872_v49 }
 0xfe2   : > { %v3789_v52 = vpack.c.bf16 %v3874_v50, %v3873_v51  ;;  %v2063_v51 = vld [vmem:[%s4570_s14 + $0x18] sm:$0xff] }
 0xfe3   : > { %v2563_v62 = vpop.permute.xlu0 %2562 }
 0xfe4   : > { %3791 = vmatpush3.bf16.msk.msra.mxu0 %vm4386_vm7, %v3789_v52 }
 0xfe5   : > { %3678 = vmatprep.subr.mxu0 %v3976_v1 }
 0xfe7   : > { %v3882_v6 = vpop.permute.xlu0 %3881 }
 0xfe8   : > { %v3884_v9 = vunpack.i.h.bf16 %v3882_v6  ;;  %v3883_v13 = vunpack.i.l.bf16 %v3882_v6 }
 0xfea   : > { %v3918_v53 = vpop.eup %3917  ;;  %v3801_v14 = vpack.c.bf16 %v3884_v9, %v3883_v13  ;;  %v3096_v13 = vld [vmem:[%s4574_s18 + $0x18] sm:$0xff] }
 0xfeb   : > { %v2331_v54 = vsel %vm2150_vm4, %v3918_v53, 0.0  ;;  %v2810_v15 = vpop.permute.xlu0 %2809 }
 0xfec   : > { %2332 = vadd.xlane.f32.xlu1 %v2331_v54 }
 0xffd   : > { %3876 = vrot.lane.b32.xlu1 %v4361_v12, %s4625_s3 }
0x1013   : > { %v2558_v55 = vpop.f32.mrb[18].mxu1 }
0x1014   : > { %v3687_v56 = vpop.f32.mrb[19].mxu1 }
0x1015   : > { %v3459_v56 = vld [vmem:[%s4571_s15] ss:$0 sm:$0xff] }
0x1079   : > { %v2333_v57 = vpop.xlane.xlu1 %2332 }
0x107a   : > { %3919 = vrcp.f32 %v2333_v57 }
0x107d   : > { %v3877_v61 = vpop.permute.xlu1 %3876 }
0x107e   : > { %v3879_v63 = vunpack.i.h.bf16 %v3877_v61  ;;  %v3878_v2 = vunpack.i.l.bf16 %v3877_v61 }
0x1080   : > { %v3793_v4 = vpack.c.bf16 %v3879_v63, %v3878_v2 }
0x1084   : > { %v3920_v58 = vpop.eup %3919 }
0x1085   : > { %v2335_v59 = vmul.f32 %v3920_v58, %v3918_v53 }
0x1087   : > { %3676 = vmatmul.mubr.msk.f32.vlgmr.msra.gmra.mrb[18].mxu0 %vm2150_vm4, %v2335_v59 }
0x1088   : > { %3679 = vmatpush3.msra.mxu0 %v2061_v60  ;;  %3680 = vmatprep.mubr.msk.f32.mxu0 %vm3975_vm0, %v3976_v1 }
0x1089   : > { %3792 = vmatprep.subr.bf16.mxu0 %v3974_v0 }
0x115a   : > { %v2412_v5 = vpop.f32.mrb[18].mxu0 }
0x115b   : > { %v3677_v7 = vpop.f32.mrb[19].mxu0  ;;  %3681 = vmatmul.mubr.msk.f32.vlgmr.msra.gmra.mrb[20].mxu0 %vm895_vm2, %v2412_v5 }
0x115c   : > { %3795 = vmatpush3.bf16.xpose.msk.msra.mxu0 %vm4357_vm3, %v3793_v4  ;;  %3692 = vmatprep.mubr.msk.f32.mxu0 %vm3975_vm0, %v3976_v1  ;;  %v3094_v7 = vld [vmem:[%s4574_s18 + $0x8] sm:$0xff] }
0x115d   : > { %3800 = vmatprep.subr.bf16.mxu0 %v3974_v0 }
0x1163   : > { %3693 = vmatmul.mubr.msk.f32.vlgmr.msra.gmra.mrb[22].mxu0 %vm895_vm2, %v2563_v62 }
0x1164   : > { %3803 = vmatpush3.bf16.xpose.msk.msra.mxu0 %vm4357_vm3, %v3801_v14  ;;  %3711 = vmatprep.mubr.msk.f32.mxu0 %vm3975_vm0, %v3976_v1 }
0x1165   : > { %3808 = vmatprep.subr.bf16.mxu0 %v3974_v0 }
0x116b   : > { %3712 = vmatmul.mubr.msk.f32.vlgmr.msra.gmra.mrb[24].mxu0 %vm895_vm2, %v2810_v15  ;;  %v3178_v15 = vld [vmem:[%s4576_s20] sm:$0xff] }
0x116c   : > { %3734 = vmatprep.mubr.msk.f32.mxu0 %vm3975_vm0, %v3976_v1 }
0x122e   : > { %v2485_v17 = vpop.f32.mrb[20].mxu0 }
0x122f   : > { %v4445_v18 = vadd.f32 %v2558_v55, %v2485_v17  ;;  %v3682_v20 = vpop.f32.mrb[21].mxu0  ;;  %v3179_v17 = vld [vmem:[%s4576_s20 + $0x8] sm:$0xff] }
0x1230   : > { %v3815_v20 = vpack.c.bf16 %v3179_v17, %v3178_v15 }
0x1236   : > { %v2640_v21 = vpop.f32.mrb[22].mxu0 }
0x1237   : > { %v2641_v22 = vadd.f32 %v4379_v19, %v2640_v21  ;;  %v3694_v10 = vpop.f32.mrb[23].mxu0  ;;  %v3181_v21 = vld [vmem:[%s4576_s20 + $0x18] sm:$0xff] }
0x1238   : > { %v3182_v10 = vld [vmem:[%s4576_s20 + $0x20] sm:$0xff] }
0x1239   : > { %v2644_v23 = vsel %vm2150_vm4, %v2641_v22, -inf }
0x123a   : > { %2645 = vmax.xlane.f32.xlu1 %v2644_v23  ;;  %v3183_v23 = vld [vmem:[%s4576_s20 + $0x28] sm:$0xff] }
0x123e   : > { %v2887_v24 = vpop.f32.mrb[24].mxu0 }
0x123f   : > { %v2888_v16 = vadd.f32 %v4379_v19, %v2887_v24  ;;  %v3713_v25 = vpop.f32.mrb[25].mxu0  ;;  %v3821_v24 = vpack.c.bf16 %v3183_v23, %v3182_v10 }
0x1241   : > { %v2891_v26 = vsel %vm2150_vm4, %v2888_v16, -inf }
0x1242   : > { %2892 = vmax.xlane.f32.xlu1 %v2891_v26 }
0x12c7   : > { %v2646_v11 = vpop.xlane.xlu1 %2645 }
0x12c8   : > { %v2647_v27 = vsub.f32 %v2641_v22, %v2646_v11 }
0x12ca   : > { %v2648_v28 = vmul.f32 1.442695, %v2647_v27  ;;  %v3460_v27 = vld [vmem:[%s4572_s16] ss:$0 sm:$0xff] }
0x12cc   : > { %3921 = vpow2.f32 %v2648_v28 }
0x12cf   : > { %v2893_v29 = vpop.xlane.xlu1 %2892 }
0x12d0   : > { %v2894_v30 = vsub.f32 %v2888_v16, %v2893_v29  ;;  %v3461_v29 = vld [vmem:[%s4573_s17] ss:$0 sm:$0xff] }
0x12d2   : > { %v2895_v32 = vmul.f32 1.442695, %v2894_v30 }
0x12d4   : > { %3923 = vpow2.f32 %v2895_v32 }
0x12d6   : > { %v3922_v33 = vpop.eup %3921 }
0x12d7   : > { %v2650_v34 = vsel %vm2150_vm4, %v3922_v33, 0.0 }
0x12d8   : > { %2651 = vadd.xlane.f32.xlu0 %v2650_v34 }
0x12de   : > { %v3924_v35 = vpop.eup %3923 }
0x12df   : > { %v2897_v36 = vsel %vm2150_vm4, %v3924_v35, 0.0 }
0x12e0   : > { %2898 = vadd.xlane.f32.xlu1 %v2897_v36 }
0x12ee   : > { %3886 = vrot.lane.b32.xlu0 %v4361_v12, %s4627_s29  ;;  %s796_s29 = scalar_lea.vmem %s4580_s24, %s4182_s4 }
0x12f1   : > { %3891 = vrot.lane.b32.xlu1 %v4361_v12, %s4628_s0 }
0x1365   : > { %v2652_v19 = vpop.xlane.xlu0 %2651 }
0x1366   : > { %3925 = vrcp.f32 %v2652_v19 }
0x1369   : > { %v3887_v37 = vpop.permute.xlu0 %3886 }
0x136a   : > { %v3889_v38 = vunpack.i.h.bf16 %v3887_v37  ;;  %v3888_v39 = vunpack.i.l.bf16 %v3887_v37 }
0x136c   : > { %v3797_v40 = vpack.c.bf16 %v3889_v38, %v3888_v39  ;;  %v3464_v39 = vld [vmem:[%s4577_s21] ss:$0 sm:$0xff] }
0x136d   : > { %v2899_v12 = vpop.xlane.xlu1 %2898 }
0x136e   : > { %3799 = vmatpush3.bf16.msk.msra.mxu1 %vm4386_vm7, %v3797_v40  ;;  %3927 = vrcp.f32 %v2899_v12 }
0x136f   : > { %3702 = vmatprep.subr.mxu1 %v3976_v1 }
0x1370   : > { %v3926_v41 = vpop.eup %3925 }
0x1371   : > { %v2654_v42 = vmul.f32 %v3926_v41, %v3922_v33  ;;  %v3892_v44 = vpop.permute.xlu1 %3891  ;;  %v3185_v33 = vld [vmem:[%s4576_s20 + $0x38] sm:$0xff] }
0x1372   : > { %v3894_v45 = vunpack.i.h.bf16 %v3892_v44  ;;  %v3893_v8 = vunpack.i.l.bf16 %v3892_v44 }
0x1373   : > { %3700 = vmatmul.mubr.msk.f32.vlgmr.msra.gmra.mrb[20].mxu1 %vm2150_vm4, %v2654_v42 }
0x1374   : > { %3703 = vmatpush3.msra.mxu1 %v2062_v43  ;;  %3704 = vmatprep.mubr.msk.f32.mxu1 %vm3975_vm0, %v3976_v1  ;;  %v3805_v47 = vpack.c.bf16 %v3894_v45, %v3893_v8 }
0x1375   : > { %3804 = vmatprep.subr.bf16.mxu1 %v3974_v0 }
0x1378   : > { %v3928_v46 = vpop.eup %3927 }
0x1379   : > { %v2901_v50 = vmul.f32 %v3928_v46, %v3924_v35  ;;  %v3462_v35 = vld [vmem:[%s4575_s19] ss:$0 sm:$0xff] }
0x1446   : > { %v2731_v48 = vpop.f32.mrb[20].mxu1 }
0x1447   : > { %v3701_v49 = vpop.f32.mrb[21].mxu1  ;;  %3705 = vmatmul.mubr.msk.f32.vlgmr.msra.gmra.mrb[22].mxu1 %vm895_vm2, %v2731_v48 }
0x1448   : > { %3807 = vmatpush3.bf16.msk.msra.mxu1 %vm4386_vm7, %v3805_v47  ;;  %3718 = vmatprep.mubr.msk.f32.mxu1 %vm3975_vm0, %v3976_v1 }
0x1449   : > { %3721 = vmatprep.subr.mxu1 %v3976_v1 }
0x144b   : > { %3719 = vmatmul.mubr.msk.f32.vlgmr.msra.gmra.mrb[24].mxu1 %vm2150_vm4, %v2901_v50 }
0x144c   : > { %3723 = vmatprep.mubr.msk.f32.mxu1 %vm3975_vm0, %v3976_v1  ;;  %3722 = vmatpush3.msra.mxu1 %v2063_v51 }
0x144d   : > { %3814 = vmatprep.subr.bf16.mxu1 %v3974_v0 }
0x151a   : > { %v2804_v31 = vpop.f32.mrb[22].mxu1 }
0x151b   : > { %v2808_v52 = vadd.f32 %v2804_v31, %v4445_v18  ;;  %v3706_v53 = vpop.f32.mrb[23].mxu1  ;;  %v3180_v18 = vld [vmem:[%s4576_s20 + $0x10] sm:$0xff]  ;;  %v3466_v31 = vld [vmem:[%s4578_s22] ss:$0 sm:$0xff] }
0x151c   : > { %v3818_v22 = vpack.c.bf16 %v3181_v21, %v3180_v18  ;;  %v3467_v53 = vld [vmem:[#allocation2] ss:$0 sm:$0xff] }
0x151e   : > { %v2978_v54 = vpop.f32.mrb[24].mxu1 }
0x151f   : > { %v3720_v55 = vpop.f32.mrb[25].mxu1  ;;  %3724 = vmatmul.mubr.msk.f32.vlgmr.msra.gmra.mrb[26].mxu1 %vm895_vm2, %v2978_v54 }
0x1520   : > { %3753 = vmatprep.mubr.msk.f32.mxu1 %vm3975_vm0, %v3976_v1  ;;  %v3093_v1 = vld [vmem:[%s4574_s18] sm:$0xff]  ;;  %3816 = vmatpush3.bf16.msra.mxu1 %v3815_v20 }
0x1521   : > { %v3809_v9 = vpack.c.bf16 %v3094_v7, %v3093_v1  ;;  %3817 = vmatprep.subr.bf16.mxu1 %v3974_v0 }
0x1523   : > { %3810 = vmatpush3.bf16.msra.mxu0 %v3809_v9 }
0x1524   : > { %3811 = vmatprep.subr.bf16.mxu0 %v3974_v0  ;;  %3819 = vmatpush3.bf16.msra.mxu1 %v3818_v22 }
0x1525   : > { %3820 = vmatprep.subr.bf16.mxu1 %v3974_v0 }
0x1528   : > { %3822 = vmatpush3.bf16.msra.mxu1 %v3821_v24 }
0x1529   : > { %3823 = vmatprep.subr.bf16.mxu1 %v3974_v0  ;;  %v3184_v0 = vld [vmem:[%s4576_s20 + $0x30] sm:$0xff] }
0x152a   : > { %v3824_v34 = vpack.c.bf16 %v3185_v33, %v3184_v0 }
0x152c   : > { %3825 = vmatpush3.bf16.msra.mxu1 %v3824_v34 }
0x15f2   : > { %v3051_v57 = vpop.f32.mrb[26].mxu1 }
0x15f3   : > { %v3055_v58 = vadd.f32 %v3051_v57, %v2808_v52  ;;  %v3725_v59 = vpop.f32.mrb[27].mxu1 }
0x15f5   : > { %v3062_v60 = vadd.f32 %v3459_v56, %v3055_v58 }
0x15f7   : > { %v3063_v61 = vadd.f32 %v3062_v60, %v4346_v3  ;;  %v3095_v3 = vld [vmem:[%s4574_s18 + $0x10] sm:$0xff] }
0x15f8   : > { %v3812_v14 = vpack.c.bf16 %v3096_v13, %v3095_v3 }
0x15f9   : > { %v3066_v62 = vsel %vm813_vm1, %v3063_v61, 0.0 }
0x15fa   : > { %3067 = vadd.xlane.f32.xlu0 %v3066_v62  ;;  %3813 = vmatpush3.bf16.msra.mxu0 %v3812_v14 }
0x1687   : > { %v3068_v63 = vpop.xlane.xlu0 %3067 }
0x1688   : > { %v3069_v2 = vmul.f32 0.03125, %v3068_v63 }
0x168a   : > { %v3070_v4 = vsub.f32 %v3063_v61, %v3069_v2 }
0x168c   : > { %v3071_v5 = vmul.f32 %v3070_v4, %v3070_v4 }
0x168e   : > { %v3072_v6 = vsel %vm813_vm1, %v3071_v5, 0.0 }
0x168f   : > { %3073 = vadd.xlane.f32.xlu1 %v3072_v6 }
0x171c   : > { %v3074_v16 = vpop.xlane.xlu1 %3073 }
0x171d   : > { %v3075_v25 = vmul.f32 0.03125, %v3074_v16 }
0x171f   : > { %v3076_v26 = vadd.f32 1e-05, %v3075_v25 }
0x1721   : > { %3929 = vrsqrt.f32 %v3076_v26 }
0x172b   : > { %v3930_v11 = vpop.eup %3929 }
0x172c   : > { %v3078_v28 = vmul.f32 %v3930_v11, %v3070_v4 }
0x172e   : > { %v3085_v30 = vmul.f32 %v3460_v27, %v3078_v28 }
0x1730   : > { %v3092_v32 = vadd.f32 %v3461_v29, %v3085_v30 }
0x1732   : > { %3735 = vmatmul.mubr.msk.f32.vlgmr.msra.gmra.mrb[26].mxu0 %vm813_vm1, %v3092_v32 }
0x1805   : > { %v3173_v36 = vpop.f32.mrb[26].mxu0 }
0x1806   : > { %v3174_v19 = vadd.f32 %v3462_v35, %v3173_v36  ;;  %v3736_v37 = vpop.f32.mrb[27].mxu0 }
0x1808   : > { %v3177_v38 = vmax.f32 %v3174_v19, 0.0 }
0x180a   : > { %3754 = vmatmul.mubr.msk.f32.vlgmr.msra.gmra.mrb[28].mxu1 %vm3193_vm8, %v3177_v38 }
0x18dd   : > { %v3263_v40 = vpop.f32.mrb[28].mxu1 }
0x18de   : > { %v3264_v41 = vadd.f32 %v3464_v39, %v3263_v40  ;;  %v3755_v42 = vpop.f32.mrb[29].mxu1 }
0x18e0   : > { %v3267_v43 = vadd.f32 %v3264_v41, %v3092_v32 }
0x18e2   : > { %v3270_v12 = vsel %vm813_vm1, %v3267_v43, 0.0 }
0x18e3   : > { %3271 = vadd.xlane.f32.xlu0 %v3270_v12 }
0x1970   : > { %v3272_v44 = vpop.xlane.xlu0 %3271 }
0x1971   : > { %v3273_v45 = vmul.f32 0.03125, %v3272_v44 }
0x1973   : > { %v3274_v8 = vsub.f32 %v3267_v43, %v3273_v45 }
0x1975   : > { %v3275_v46 = vmul.f32 %v3274_v8, %v3274_v8 }
0x1977   : > { %v3276_v47 = vsel %vm813_vm1, %v3275_v46, 0.0 }
0x1978   : > { %3277 = vadd.xlane.f32.xlu0 %v3276_v47 }
0x1a05   : > { %v3278_v48 = vpop.xlane.xlu0 %3277 }
0x1a06   : > { %v3279_v49 = vmul.f32 0.03125, %v3278_v48 }
0x1a08   : > { %v3280_v50 = vadd.f32 1e-05, %v3279_v49 }
0x1a0a   : > { %3931 = vrsqrt.f32 %v3280_v50 }
0x1a14   : > { %v3932_v51 = vpop.eup %3931 }
0x1a15   : > { %v3282_v52 = vmul.f32 %v3932_v51, %v3274_v8 }
0x1a17   : > { %v3289_v54 = vmul.f32 %v3466_v31, %v3282_v52 }
0x1a19   : > { %v3296_v55 = vadd.f32 %v3467_v53, %v3289_v54 }
0x1a1b   : > { %3297 = vst.msk [vmem:[%s796_s29] sm:$0xff] %vm813_vm1, %v3296_v55 }
0x1a1c PF: > { %s35_s5 = sadd.s32 1, %s3971_s5  }
0x1a1d   : > { %p32_p2 = scmp.ge.s32.totalorder %s35_s5, 4  }
0x1a1f   :  { %34 = sbr.rel (!%p32_p2) target bundleno = 11 (0xb), region = 160 }
0x1a26   :  { %3317 = vsyncpa [#allocation3], 1 }
0x1a27   :  { %3319 = vsyncpa [#allocation3 + $0x1], 1 }

// kernel: seq2seq_forward.9
= control target key start
LH: loop header
LB: loop body
LE: loop exit
PB: predicated region body
PF: predicated region fallthrough
CT: control target
= control target key end

     0   :  { %s4449_s0 = inlined_call_operand.vmem [shape: f32[2,8,32], index: 0, kind: input, shape index: {}]   ;;  %s4450_s1 = inlined_call_operand.vmem [shape: f32[2,12,32], index: 1, kind: input, shape index: {}]   ;;  %s4451_s2 = inlined_call_operand.vmem [shape: f32[2,8,8], index: 2, kind: input, shape index: {}]   ;;  %s4452_s3 = inlined_call_operand.vmem [shape: f32[2,1,12], index: 3, kind: input, shape index: {}]   ;;  %s4453_s4 = inlined_call_operand.vmem [shape: f32[32,96], index: 4, kind: input, shape index: {}]   ;;  %s4454_s5 = inlined_call_operand.vmem [shape: f32[1,96], index: 5, kind: input, shape index: {}]   ;;  %s4455_s6 = inlined_call_operand.vmem [shape: f32[32,32], index: 6, kind: input, shape index: {}]   ;;  %s4456_s7 = inlined_call_operand.vmem [shape: f32[1,32], index: 7, kind: input, shape index: {}]   ;;  %s4457_s8 = inlined_call_operand.vmem [shape: f32[1,32], index: 8, kind: input, shape index: {}]   ;;  %s4458_s9 = inlined_call_operand.vmem [shape: f32[1,32], index: 9, kind: input, shape index: {}]   ;;  %s4459_s10 = inlined_call_operand.vmem [shape: f32[32,32], index: 10, kind: input, shape index: {}]   ;;  %s4460_s11 = inlined_call_operand.vmem [shape: f32[1,32], index: 11, kind: input, shape index: {}]   ;;  %s4461_s12 = inlined_call_operand.vmem [shape: f32[32,64], index: 12, kind: input, shape index: {}]   ;;  %s4462_s13 = inlined_call_operand.vmem [shape: f32[1,64], index: 13, kind: input, shape index: {}]   ;;  %s4463_s14 = inlined_call_operand.vmem [shape: f32[32,32], index: 14, kind: input, shape index: {}]   ;;  %s4464_s15 = inlined_call_operand.vmem [shape: f32[1,32], index: 15, kind: input, shape index: {}]   ;;  %s4465_s16 = inlined_call_operand.vmem [shape: f32[1,32], index: 16, kind: input, shape index: {}]   ;;  %s4466_s17 = inlined_call_operand.vmem [shape: f32[1,32], index: 17, kind: input, shape index: {}]   ;;  %s4467_s18 = inlined_call_operand.vmem [shape: f32[32,64], index: 18, kind: input, shape index: {}]   ;;  %s4468_s19 = inlined_call_operand.vmem [shape: f32[1,64], index: 19, kind: input, shape index: {}]   ;;  %s4469_s20 = inlined_call_operand.vmem [shape: f32[64,32], index: 20, kind: input, shape index: {}]   ;;  %s4470_s21 = inlined_call_operand.vmem [shape: f32[1,32], index: 21, kind: input, shape index: {}]   ;;  %s4471_s22 = inlined_call_operand.vmem [shape: f32[1,32], index: 22, kind: input, shape index: {}]   ;;  %s4472_s23 = inlined_call_operand.vmem [shape: f32[1,32], index: 23, kind: input, shape index: {}]   ;;  %s4473_s24 = inlined_call_operand.vmem [shape: f32[2,8,32], index: 24, kind: output, shape index: {}]  }
   0x1   :  { %4486 = sst [smem:[#allocation2_spill]] %s4449_s0 }
   0x2   :  { %4487 = sst [smem:[#allocation3_spill]] %s4450_s1 }
   0x3   :  { %4488 = sst [smem:[#allocation4_spill]] %s4451_s2 }
   0x4   :  { %4489 = sst [smem:[#allocation5_spill]] %s4452_s3 }
   0x5   :  { %4490 = sst [smem:[#allocation6_spill]] %s4453_s4 }
   0x6   :  { %4491 = sst [smem:[#allocation7_spill]] %s4454_s5  ;;  %s4043_s5 = smov 0  }
   0x7   :  { %4492 = sst [smem:[#allocation8_spill]] %s4455_s6 }
   0x8   :  { %4493 = sst [smem:[#allocation9_spill]] %s4456_s7 }
   0x9   :  { %4494 = sst [smem:[#allocation10_spill]] %s4457_s8 }
   0xa LB: > { %s3371_s26 = sadd.s32 4294967295, %s3901_s5   ;;  %p3375_p0 = scmp.ge.s32.totalorder %s3901_s5, 1  ;;  %s3901_s5 = sphi %s4043_s5, %s34_s5  }
   0xb   : > { %p688_p1 = scmp.lt.s32.totalorder %s3901_s5, 3 }
   0xd   : > { %p689_p2 = pnand %p3375_p0, %p688_p1 }
   0xe   : > { %s4495_s6 = sld [smem:[#allocation6_spill]] (!%p689_p2)  ;;  %v3903_v3 = vmov (!%p689_p2), 0.0|0.0   ;;  %vm3904_vm0 = vmmov (!%p689_p2), 0   ;;  %v3905_v6 = vmov (!%p689_p2), 0.0   ;;  %p764_p3 = scmp.lt.s32.totalorder (!%p689_p2), %s3371_s26, 1  ;;  %vm800_vm1 = vcmask (!%p689_p2), 261120  }
   0xf   : > { %692 = sbr.rel (%p689_p2) target bundleno = 6647 (0x19f7), region = 116  ;;  %3729 = vmatprep.subr.bf16.mxu0 (!%p689_p2), %v3903_v3  ;;  %3538 = vmatprep.mubr.msk.f32.mxu0 (!%p689_p2), %vm3904_vm0, %v3905_v6  ;;  %s4496_s1 = sld [smem:[#allocation2_spill]] (!%p689_p2)  ;;  %vm882_vm2 = vcmask (!%p689_p2), 64512   ;;  %vm2137_vm4 = vcmask (!%p689_p2), 97280   ;;  %vm2157_vm5 = vcmask (!%p689_p2), 1043456   ;;  %vm3917_vm6 = vmmov (!%p689_p2), 1  }
  0x10   : > { %3546 = vmatprep.subr.mxu1 (!%p689_p2), %v3905_v6  ;;  %3548 = vmatprep.mubr.msk.f32.mxu1 (!%p689_p2), %vm3904_vm0, %v3905_v6  ;;  %s4497_s29 = sld [smem:[#allocation7_spill]] (!%p689_p2)  ;;  %s4484_s0 = smov (!%p689_p2), 120   ;;  %vm4247_vm3 = vmpackc.low (!%p689_p2), %vm882_vm2, %vm882_vm2  ;;  %vm3180_vm8 = vcmask (!%p689_p2), 523264  }
  0x11   : > { %s4483_s7 = smov (!%p689_p2), 96   ;;  %s4482_s30 = smov (!%p689_p2), 88   ;;  %vm4276_vm7 = vmpackc.low (!%p689_p2), %vm2157_vm5, %vm3917_vm6 }
  0x12   : > { %s4498_s4 = sld [smem:[#allocation4_spill]] (!%p689_p2)  ;;  %s3910_s28 = smov (!%p689_p2), 64  }
  0x13   : > { %s4477_s2 = smov (!%p689_p2), 80   ;;  %s4478_s3 = smov (!%p689_p2), 104  }
  0x14   : > { %v789_v0 = vld [vmem:[%s4495_s6] sm:$0xff] (!%p689_p2)  ;;  %v790_v1 = vld [vmem:[%s4495_s6 + $0x8] sm:$0xff] (!%p689_p2)  ;;  %v791_v2 = vld [vmem:[%s4495_s6 + $0x10] sm:$0xff] (!%p689_p2)  ;;  %s3915_s8 = smov (!%p689_p2), 48  }
  0x15   : > { %v3730_v4 = vpack.c.bf16 (!%p689_p2), %v790_v1, %v789_v0  ;;  %v792_v5 = vld [vmem:[%s4495_s6 + $0x18] sm:$0xff] (!%p689_p2) }
  0x16   : > { %v3733_v7 = vpack.c.bf16 %v792_v5, %v791_v2  ;;  %s4516_s26 = smov (!%p764_p3, %s3371_s26), 1  ;;  %v3381_v9 = vld [vmem:[%s4497_s29] ss:$0 sm:$0xff]  ;;  %s4480_s29 = smov 112  }
  0x17   : > { %3731 = vmatpush3.bf16.msra.mxu0 %v3730_v4  ;;  %s4073_s25 = sshll.u32 %s4516_s26, 3 }
  0x18   : > { %3732 = vmatprep.subr.bf16.mxu0 %v3903_v3  ;;  %s767_s27 = scalar_lea.vmem %s4496_s1, %s4073_s25  ;;  %s776_s1 = scalar_lea.vmem %s4498_s4, %s4073_s25 }
  0x19   : > { %v4079_v8 = vld [vmem:[%s767_s27] sm:$0xff]  ;;  %s3909_s27 = smov 56   ;;  %s4499_s4 = sld [smem:[#allocation8_spill]] }
  0x1a   : > { %v4112_v16 = vld [vmem:[%s776_s1] sm:$0xff] }
  0x1b   : > { %3734 = vmatpush3.bf16.msra.mxu0 %v3733_v7 }
  0x1c   : > { %3541 = vmatprep.subr.mxu0 %v3905_v6 }
  0x1e   : > { %3539 = vmatmul.mubr.msk.f32.vlgmr.msra.gmra.mrb[0].mxu0 %vm800_vm1, %v4079_v8 }
  0x1f   : > { %3543 = vmatprep.mubr.msk.f32.mxu0 %vm3904_vm0, %v3905_v6  ;;  %v875_v35 = vld [vmem:[%s4499_s4 + $0x8] sm:$0xff]  ;;  %v874_v44 = vld [vmem:[%s4499_s4] sm:$0xff] }
  0xf1   : > { %v870_v10 = vpop.f32.mrb[0].mxu0 }
  0xf2   : > { %v4089_v11 = vadd.f32 %v3381_v9, %v870_v10  ;;  %v3540_v12 = vpop.f32.mrb[1].mxu0  ;;  %v876_v10 = vld [vmem:[%s4499_s4 + $0x10] sm:$0xff] }
  0xf4   : > { %1044 = vrot.lane.b32.xlu1 %v4089_v11, %s4484_s0  ;;  %880 = vrot.lane.b32.xlu0 %v4089_v11, %s4483_s7  ;;  %s3443_s7 = sshll.u32 %s4516_s26, 4  ;;  %s4501_s0 = sld [smem:[#allocation3_spill]] }
  0xf8   : > { %1046 = vrot.lane.b32.xlu0 %v4089_v11, %s4482_s30  ;;  %s4507_s30 = smov 96  }
  0xfa   : > { %s772_s1 = scalar_lea.vmem %s4501_s0, %s3443_s7  ;;  %s4505_s7 = smov 120  }
  0xfb   : > { %s4510_s0 = smov 88  }
 0x166   : > { %v881_v13 = vpop.permute.xlu0 %880  ;;  %v1045_v15 = vpop.permute.xlu1 %1044 }
 0x167   : > { %3542 = vmatpush3.xpose.msk.msra.mxu0 %vm882_vm2, %v881_v13 }
 0x168   : > { %3551 = vmatprep.subr.mxu0 %v3905_v6 }
 0x16a   : > { %3544 = vmatmul.mubr.msk.f32.vlgmr.msra.gmra.mrb[2].mxu0 %vm882_vm2, %v4089_v11  ;;  %v1047_v14 = vpop.permute.xlu0 %1046 }
 0x16b   : > { %3552 = vmatpush3.xpose.msk.msra.mxu0 %vm882_vm2, %v1047_v14  ;;  %3553 = vmatprep.mubr.msk.f32.mxu0 %vm3904_vm0, %v3905_v6 }
 0x16c   : > { %3561 = vmatprep.subr.mxu0 %v3905_v6 }
 0x16e   : > { %3554 = vmatmul.mubr.msk.f32.vlgmr.msra.gmra.mrb[4].mxu0 %vm882_vm2, %v1045_v15 }
 0x16f   : > { %3563 = vmatprep.mubr.msk.f32.mxu0 %vm3904_vm0, %v3905_v6  ;;  %3562 = vmatpush3.msra.mxu0 %v875_v35 }
 0x170   : > { %3571 = vmatprep.subr.mxu0 %v3905_v6 }
 0x23d   : > { %v953_v17 = vpop.f32.mrb[2].mxu0 }
 0x23e   : > { %v954_v18 = vadd.f32 %v953_v17, %v4112_v16  ;;  %v3545_v19 = vpop.f32.mrb[3].mxu0 }
 0x240   : > { %v957_v20 = vsel %vm882_vm2, %v954_v18, -inf }
 0x241   : > { %958 = vmax.xlane.f32.xlu1 %v957_v20  ;;  %v1118_v21 = vpop.f32.mrb[4].mxu0 }
 0x242   : > { %v1119_v22 = vadd.f32 %v1118_v21, %v4112_v16  ;;  %v3555_v23 = vpop.f32.mrb[5].mxu0 }
 0x244   : > { %v1122_v24 = vsel %vm882_vm2, %v1119_v22, -inf }
 0x245   : > { %1123 = vmax.xlane.f32.xlu0 %v1122_v24 }
 0x2ce   : > { %v959_v25 = vpop.xlane.xlu1 %958 }
 0x2cf   : > { %v960_v26 = vsub.f32 %v954_v18, %v959_v25 }
 0x2d1   : > { %v961_v27 = vmul.f32 1.442695, %v960_v26 }
 0x2d2   : > { %v1124_v28 = vpop.xlane.xlu0 %1123 }
 0x2d3   : > { %3857 = vpow2.f32 %v961_v27  ;;  %v1125_v29 = vsub.f32 %v1119_v22, %v1124_v28 }
 0x2d5   : > { %v1126_v30 = vmul.f32 1.442695, %v1125_v29 }
 0x2d7   : > { %3859 = vpow2.f32 %v1126_v30 }
 0x2dd   : > { %v3858_v31 = vpop.eup %3857 }
 0x2de   : > { %v963_v32 = vsel %vm882_vm2, %v3858_v31, 0.0 }
 0x2df   : > { %964 = vadd.xlane.f32.xlu0 %v963_v32 }
 0x2e1   : > { %v3860_v33 = vpop.eup %3859 }
 0x2e2   : > { %v1128_v34 = vsel %vm882_vm2, %v3860_v33, 0.0 }
 0x2e3   : > { %1129 = vadd.xlane.f32.xlu1 %v1128_v34 }
 0x2f4   : > { %1133 = vrot.lane.b32.xlu1 %v4089_v11, %s3909_s27  ;;  %s4500_s27 = sld [smem:[#allocation9_spill]] }
 0x2f5   : > { %968 = vrot.lane.b32.xlu0 %v4089_v11, %s3910_s28  ;;  %s4476_s28 = smov 72  }
 0x2f8   : > { %1357 = vrot.lane.b32.xlu1 %v4089_v11, %s4477_s2  ;;  %s4502_s2 = sld [smem:[#allocation10_spill]] }
 0x2f9   : > { %1355 = vrot.lane.b32.xlu0 %v4089_v11, %s4480_s29 }
 0x2fa   : > { %v3399_v32 = vld [vmem:[%s4500_s27] ss:$0 sm:$0xff]  ;;  %s4512_s27 = smov 104  }
 0x36c   : > { %v965_v36 = vpop.xlane.xlu0 %964 }
 0x36d   : > { %3861 = vrcp.f32 %v965_v36 }
 0x370   : > { %v1130_v37 = vpop.xlane.xlu1 %1129  ;;  %v969_v38 = vpop.permute.xlu0 %968 }
 0x371   : > { %3863 = vrcp.f32 %v1130_v37  ;;  %3547 = vmatpush3.msra.mxu1 %v969_v38 }
 0x372   : > { %3556 = vmatprep.subr.mxu1 %v3905_v6 }
 0x374   : > { %v1134_v41 = vpop.permute.xlu1 %1133  ;;  %v1356_v50 = vpop.permute.xlu0 %1355 }
 0x377   : > { %v3862_v39 = vpop.eup %3861 }
 0x378   : > { %v967_v40 = vmul.f32 %v3862_v39, %v3858_v31  ;;  %v1358_v48 = vpop.permute.xlu1 %1357 }
 0x37a   : > { %3549 = vmatmul.mubr.msk.f32.vlgmr.msra.gmra.mrb[0].mxu1 %vm882_vm2, %v967_v40 }
 0x37b   : > { %v3864_v42 = vpop.eup %3863  ;;  %3557 = vmatpush3.msra.mxu1 %v1134_v41  ;;  %3558 = vmatprep.mubr.msk.f32.mxu1 %vm3904_vm0, %v3905_v6 }
 0x37c   : > { %v1132_v43 = vmul.f32 %v3864_v42, %v3860_v33  ;;  %3566 = vmatprep.subr.mxu1 %v3905_v6 }
 0x37e   : > { %3559 = vmatmul.mubr.msk.f32.vlgmr.msra.gmra.mrb[2].mxu1 %vm882_vm2, %v1132_v43 }
 0x37f   : > { %3568 = vmatprep.mubr.msk.f32.mxu1 %vm3904_vm0, %v3905_v6  ;;  %3567 = vmatpush3.msra.mxu1 %v874_v44  ;;  %v1955_v44 = vld [vmem:[%s4461_s12] sm:$0xff] }
 0x380   : > { %3576 = vmatprep.subr.mxu1 %v3905_v6 }
 0x44d   : > { %v1040_v45 = vpop.f32.mrb[0].mxu1 }
 0x44e   : > { %v3550_v46 = vpop.f32.mrb[1].mxu1  ;;  %3569 = vmatmul.mubr.msk.f32.vlgmr.msra.gmra.mrb[4].mxu1 %vm882_vm2, %v1040_v45  ;;  %v1956_v45 = vld [vmem:[%s4461_s12 + $0x8] sm:$0xff] }
 0x44f   : > { %3578 = vmatprep.mubr.msk.f32.mxu1 %vm3904_vm0, %v3905_v6  ;;  %v1957_v46 = vld [vmem:[%s4461_s12 + $0x10] sm:$0xff] }
 0x451   : > { %v1205_v47 = vpop.f32.mrb[2].mxu1 }
 0x452   : > { %v3560_v49 = vpop.f32.mrb[3].mxu1  ;;  %3564 = vmatmul.mubr.msk.f32.vlgmr.msra.gmra.mrb[6].mxu0 %vm882_vm2, %v1205_v47  ;;  %v1958_v47 = vld [vmem:[%s4461_s12 + $0x18] sm:$0xff] }
 0x453   : > { %3572 = vmatpush3.xpose.msk.msra.mxu0 %vm882_vm2, %v1358_v48  ;;  %3573 = vmatprep.mubr.msk.f32.mxu0 %vm3904_vm0, %v3905_v6  ;;  %v3745_v48 = vpack.c.bf16 %v1958_v47, %v1957_v46  ;;  %v785_v49 = vld [vmem:[%s772_s1] sm:$0xff] }
 0x454   : > { %3581 = vmatprep.subr.mxu0 %v3905_v6 }
 0x456   : > { %3574 = vmatmul.mubr.msk.f32.vlgmr.msra.gmra.mrb[8].mxu0 %vm882_vm2, %v1356_v50  ;;  %v786_v50 = vld [vmem:[%s772_s1 + $0x8] sm:$0xf]  ;;  %s4513_s1 = smov 80  }
 0x457   : > { %3583 = vmatprep.mubr.msk.f32.mxu0 %vm3904_vm0, %v3905_v6  ;;  %3582 = vmatpush3.msra.mxu0 %v876_v10 }
 0x458   : > { %3591 = vmatprep.subr.mxu0 %v3905_v6 }
 0x521   : > { %v1351_v51 = vpop.f32.mrb[4].mxu1 }
 0x522   : > { %v3570_v52 = vpop.f32.mrb[5].mxu1 }
 0x523   : > { %v1872_v52 = vld [vmem:[%s4459_s10 + $0x8] sm:$0xff] }
 0x525   : > { %v1278_v53 = vpop.f32.mrb[6].mxu0 }
 0x526   : > { %v1352_v54 = vadd.f32 %v1351_v51, %v1278_v53  ;;  %v3565_v55 = vpop.f32.mrb[7].mxu0  ;;  %v1871_v51 = vld [vmem:[%s4459_s10] sm:$0xff] }
 0x527   : > { %v3736_v53 = vpack.c.bf16 %v1872_v52, %v1871_v51  ;;  %v1874_v55 = vld [vmem:[%s4459_s10 + $0x18] sm:$0xff] }
 0x529   : > { %v1429_v56 = vpop.f32.mrb[8].mxu0 }
 0x52a   : > { %v1430_v57 = vadd.f32 %v1429_v56, %v4112_v16  ;;  %v3575_v58 = vpop.f32.mrb[9].mxu0 }
 0x52c   : > { %v1433_v59 = vsel %vm882_vm2, %v1430_v57, -inf }
 0x52d   : > { %1434 = vmax.xlane.f32.xlu1 %v1433_v59 }
 0x53e   : > { %1596 = vrot.lane.b32.xlu1 %v4089_v11, %s4476_s28 }
 0x542   : > { %1594 = vrot.lane.b32.xlu1 %v4089_v11, %s4478_s3 }
 0x5ba   : > { %v1435_v60 = vpop.xlane.xlu1 %1434 }
 0x5bb   : > { %v1436_v61 = vsub.f32 %v1430_v57, %v1435_v60 }
 0x5bd   : > { %v1437_v62 = vmul.f32 1.442695, %v1436_v61  ;;  %v3400_v61 = vld [vmem:[%s4502_s2] ss:$0 sm:$0xff]  ;;  %s4506_s2 = sld [smem:[#allocation5_spill]] }
 0x5be   : > { %v1597_v5 = vpop.permute.xlu1 %1596 }
 0x5bf   : > { %3865 = vpow2.f32 %v1437_v62 }
 0x5c2   : > { %v1595_v9 = vpop.permute.xlu1 %1594 }
 0x5c3   : > { %s779_s3 = scalar_lea.vmem %s4506_s2, %s4516_s26  ;;  %s4514_s2 = smov 72  }
 0x5c9   : > { %v3866_v63 = vpop.eup %3865 }
 0x5ca   : > { %v1439_v0 = vsel %vm882_vm2, %v3866_v63, 0.0 }
 0x5cb   : > { %1440 = vadd.xlane.f32.xlu0 %v1439_v0 }
 0x5e1   : > { %1444 = vrot.lane.b32.xlu0 %v4089_v11, %s3915_s8  ;;  %s3916_s8 = smov 40  }
 0x658   : > { %v1441_v1 = vpop.xlane.xlu0 %1440 }
 0x659   : > { %3867 = vrcp.f32 %v1441_v1 }
 0x65c   : > { %v1445_v2 = vpop.permute.xlu0 %1444 }
 0x65d   : > { %3577 = vmatpush3.msra.mxu1 %v1445_v2  ;;  %v3404_v2 = vld [vmem:[%s4462_s13] ss:$0 sm:$0xff] }
 0x65e   : > { %3586 = vmatprep.subr.mxu1 %v3905_v6 }
 0x663   : > { %v3868_v4 = vpop.eup %3867 }
 0x664   : > { %v1443_v7 = vmul.f32 %v3868_v4, %v3866_v63  ;;  %v3401_v63 = vld [vmem:[%s4458_s9] ss:$0 sm:$0xff] }
 0x666   : > { %3579 = vmatmul.mubr.msk.f32.vlgmr.msra.gmra.mrb[6].mxu1 %vm882_vm2, %v1443_v7 }
 0x667   : > { %3587 = vmatpush3.xpose.msk.msra.mxu1 %vm882_vm2, %v1597_v5  ;;  %3588 = vmatprep.mubr.msk.f32.mxu1 %vm3904_vm0, %v3905_v6 }
 0x668   : > { %3596 = vmatprep.subr.mxu1 %v3905_v6 }
 0x66a   : > { %3589 = vmatmul.mubr.msk.f32.vlgmr.msra.gmra.mrb[8].mxu1 %vm882_vm2, %v1595_v9 }
 0x66b   : > { %3598 = vmatprep.mubr.msk.f32.mxu1 %vm3904_vm0, %v3905_v6 }
 0x739   : > { %v1516_v12 = vpop.f32.mrb[6].mxu1 }
 0x73a   : > { %v3580_v13 = vpop.f32.mrb[7].mxu1  ;;  %3584 = vmatmul.mubr.msk.f32.vlgmr.msra.gmra.mrb[10].mxu0 %vm882_vm2, %v1516_v12 }
 0x73b   : > { %3593 = vmatprep.mubr.msk.f32.mxu0 %vm3904_vm0, %v3905_v6 }
 0x73d   : > { %v1668_v14 = vpop.f32.mrb[8].mxu1 }
 0x73e   : > { %v1669_v15 = vadd.f32 %v1668_v14, %v4112_v16  ;;  %v3590_v17 = vpop.f32.mrb[9].mxu1  ;;  %v877_v16 = vld [vmem:[%s4499_s4 + $0x18] sm:$0xff]  ;;  %v3402_v14 = vld [vmem:[%s4460_s11] ss:$0 sm:$0xff] }
 0x73f   : > { %3597 = vmatpush3.msra.mxu1 %v877_v16 }
 0x740   : > { %v1672_v18 = vsel %vm882_vm2, %v1669_v15, -inf }
 0x741   : > { %1673 = vmax.xlane.f32.xlu0 %v1672_v18 }
 0x757   : > { %1683 = vrot.lane.b32.xlu0 %v4089_v11, %s3916_s8 }
 0x7ce   : > { %v1674_v19 = vpop.xlane.xlu0 %1673 }
 0x7cf   : > { %v1675_v20 = vsub.f32 %v1669_v15, %v1674_v19  ;;  %v4269_v19 = vld [vmem:[%s779_s3] ss:$0 sm:$0xff]  ;;  %s783_s3 = scalar_lea.vmem %s4473_s24, %s4073_s25 }
 0x7d1   : > { %v1676_v21 = vmul.f32 1.442695, %v1675_v20 }
 0x7d2   : > { %v1684_v22 = vpop.permute.xlu0 %1683 }
 0x7d3   : > { %3869 = vpow2.f32 %v1676_v21  ;;  %3592 = vmatpush3.msra.mxu0 %v1684_v22 }
 0x7d4   : > { %3735 = vmatprep.subr.bf16.mxu0 %v3903_v3 }
 0x7dd   : > { %v3870_v23 = vpop.eup %3869 }
 0x7de   : > { %v1678_v24 = vsel %vm882_vm2, %v3870_v23, 0.0 }
 0x7df   : > { %1679 = vadd.xlane.f32.xlu1 %v1678_v24 }
 0x80d   : > { %v1589_v25 = vpop.f32.mrb[10].mxu0 }
 0x80e   : > { %v1593_v26 = vadd.f32 %v1589_v25, %v1352_v54  ;;  %v3585_v11 = vpop.f32.mrb[11].mxu0  ;;  %v1873_v54 = vld [vmem:[%s4459_s10 + $0x10] sm:$0xff] }
 0x80f   : > { %v3739_v56 = vpack.c.bf16 %v1874_v55, %v1873_v54 }
 0x86c   : > { %v1680_v27 = vpop.xlane.xlu1 %1679 }
 0x86d   : > { %3871 = vrcp.f32 %v1680_v27 }
 0x877   : > { %v3872_v28 = vpop.eup %3871 }
 0x878   : > { %v1682_v29 = vmul.f32 %v3872_v28, %v3870_v23 }
 0x87a   : > { %3594 = vmatmul.mubr.msk.f32.vlgmr.msra.gmra.mrb[12].mxu0 %vm882_vm2, %v1682_v29 }
 0x87b   : > { %3609 = vmatprep.mubr.msk.f32.mxu0 %vm3904_vm0, %v3905_v6  ;;  %3737 = vmatpush3.bf16.msra.mxu0 %v3736_v53 }
 0x87c   : > { %3738 = vmatprep.subr.bf16.mxu0 %v3903_v3 }
 0x87f   : > { %3740 = vmatpush3.bf16.msra.mxu0 %v3739_v56 }
 0x880   : > { %3749 = vmatprep.subr.bf16.mxu0 %v3903_v3 }
 0x94d   : > { %v1755_v30 = vpop.f32.mrb[12].mxu0 }
 0x94e   : > { %v3595_v31 = vpop.f32.mrb[13].mxu0  ;;  %3599 = vmatmul.mubr.msk.f32.vlgmr.msra.gmra.mrb[10].mxu1 %vm882_vm2, %v1755_v30 }
 0x94f   : > { %3620 = vmatprep.mubr.msk.f32.mxu1 %vm800_vm1, %v785_v49 }
 0xa21   : > { %v1828_v33 = vpop.f32.mrb[10].mxu1 }
 0xa22   : > { %v1832_v34 = vadd.f32 %v1828_v33, %v1593_v26  ;;  %v3600_v35 = vpop.f32.mrb[11].mxu1 }
 0xa24   : > { %v1839_v36 = vadd.f32 %v3399_v32, %v1832_v34 }
 0xa26   : > { %v1840_v37 = vadd.f32 %v1839_v36, %v4079_v8  ;;  %v3741_v8 = vpack.c.bf16 %v1956_v45, %v1955_v44 }
 0xa28   : > { %v1843_v38 = vsel %vm800_vm1, %v1840_v37, 0.0  ;;  %3742 = vmatprep.subr.bf16.mxu1 %v3741_v8 }
 0xa29   : > { %1844 = vadd.xlane.f32.xlu1 %v1843_v38  ;;  %3744 = vmatpush3.bf16.msra.mxu1 %v3741_v8 }
 0xa2a   : > { %3746 = vmatprep.subr.bf16.mxu1 %v3745_v48 }
 0xa2d   : > { %3748 = vmatpush3.bf16.msra.mxu1 %v3745_v48 }
 0xa2e   : > { %3753 = vmatprep.subr.bf16.mxu1 %v3903_v3 }
 0xa30   : > { %3621 = vmatmul.mubr.msk.f32.vlgmr.msra.gmra.mrb[12].mxu1 %vm800_vm1, %v786_v50 }
 0xa31   : > { %3634 = vmatprep.mubr.msk.f32.mxu1 %vm3904_vm0, %v3905_v6 }
 0xab6   : > { %v1845_v39 = vpop.xlane.xlu1 %1844 }
 0xab7   : > { %v1847_v40 = vmul.f32 0.03125, %v1845_v39 }
 0xab9   : > { %v1848_v41 = vsub.f32 %v1840_v37, %v1847_v40  ;;  %v2047_v40 = vld [vmem:[%s4463_s14] sm:$0xff] }
 0xabb   : > { %v1849_v42 = vmul.f32 %v1848_v41, %v1848_v41 }
 0xabd   : > { %v1850_v43 = vsel %vm800_vm1, %v1849_v42, 0.0 }
 0xabe   : > { %1851 = vadd.xlane.f32.xlu1 %v1850_v43 }
 0xb03   : > { %v3622_v4 = vpop.f32.mrb[12].mxu1 }
 0xb04   : > { %v2044_v5 = vadd.f32 %v3622_v4, %v3404_v2  ;;  %v2038_v7 = vpop.f32.mrb[13].mxu1 }
 0xb05   : > { %v2039_v9 = vadd.f32 %v3404_v2, %v2038_v7 }
 0xb07   : > { %v4251_v12 = vpack.i.bf16 %v2044_v5, %v2039_v9  ;;  %v3750_v13 = vpack.c.bf16 %v2044_v5, %v2039_v9 }
 0xb09   : > { %3828 = vrot.lane.b32.xlu0 %v4251_v12, %s4505_s7 }
 0xb4b   : > { %v1852_v57 = vpop.xlane.xlu1 %1851 }
 0xb4c   : > { %v1853_v58 = vmul.f32 0.03125, %v1852_v57 }
 0xb4e   : > { %v1854_v59 = vadd.f32 1e-05, %v1853_v58 }
 0xb50   : > { %3873 = vrsqrt.f32 %v1854_v59 }
 0xb5a   : > { %v3874_v60 = vpop.eup %3873 }
 0xb5b   : > { %v1856_v62 = vmul.f32 %v3874_v60, %v1848_v41  ;;  %v2048_v60 = vld [vmem:[%s4463_s14 + $0x8] sm:$0xff] }
 0xb5d   : > { %v1863_v0 = vmul.f32 %v3400_v61, %v1856_v62 }
 0xb5f   : > { %v4236_v1 = vadd.f32 %v3401_v63, %v1863_v0 }
 0xb61   : > { %3610 = vmatmul.mubr.msk.f32.vlgmr.msra.gmra.mrb[14].mxu0 %vm800_vm1, %v4236_v1 }
 0xb62   : > { %3627 = vmatprep.mubr.msk.f32.mxu0 %vm3904_vm0, %v3905_v6  ;;  %3752 = vmatpush3.bf16.xpose.msk.msra.mxu0 %vm4247_vm3, %v3750_v13 }
 0xb63   : > { %3761 = vmatprep.subr.bf16.mxu0 %v3903_v3 }
 0xb7b   : > { %v3829_v33 = vpop.permute.xlu0 %3828 }
 0xb7c   : > { %v3831_v35 = vunpack.i.h.bf16 %v3829_v33  ;;  %v3830_v36 = vunpack.i.l.bf16 %v3829_v33 }
 0xb7e   : > { %v3758_v38 = vpack.c.bf16 %v3831_v35, %v3830_v36 }
 0xc34   : > { %v1951_v15 = vpop.f32.mrb[14].mxu0 }
 0xc35   : > { %v1952_v17 = vadd.f32 %v3402_v14, %v1951_v15  ;;  %v3611_v18 = vpop.f32.mrb[15].mxu0 }
 0xc37   : > { %2230 = vrot.lane.b32.xlu0 %v1952_v17, %s4505_s7  ;;  %3628 = vmatmul.mubr.msk.f32.vlgmr.msra.gmra.mrb[16].mxu0 %vm882_vm2, %v1952_v17  ;;  %s4511_s7 = smov 112  }
 0xc38   : > { %3648 = vmatprep.mubr.msk.f32.mxu0 %vm3904_vm0, %v3905_v6 }
 0xca9   : > { %v2231_v39 = vpop.permute.xlu0 %2230 }
 0xd0a   : > { %v2133_v20 = vpop.f32.mrb[16].mxu0 }
 0xd0b   : > { %v2134_v21 = vadd.f32 %v4269_v19, %v2133_v20  ;;  %v3629_v22 = vpop.f32.mrb[17].mxu0 }
 0xd0d   : > { %v2138_v23 = vsel %vm2137_vm4, %v2134_v21, -inf }
 0xd0e   : > { %2139 = vmax.xlane.f32.xlu1 %v2138_v23 }
 0xd9b   : > { %v2140_v24 = vpop.xlane.xlu1 %2139 }
 0xd9c   : > { %v2141_v16 = vsub.f32 %v2134_v21, %v2140_v24 }
 0xd9e   : > { %v2142_v25 = vmul.f32 1.442695, %v2141_v16 }
 0xda0   : > { %3875 = vpow2.f32 %v2142_v25 }
 0xdaa   : > { %v3876_v26 = vpop.eup %3875 }
 0xdab   : > { %v2144_v11 = vsel %vm2137_vm4, %v3876_v26, 0.0 }
 0xdac   : > { %2145 = vadd.xlane.f32.xlu1 %v2144_v11 }
 0xdbd   : > { %3823 = vrot.lane.b32.xlu1 %v4251_v12, %s4507_s30 }
 0xe39   : > { %v2146_v27 = vpop.xlane.xlu1 %2145 }
 0xe3a   : > { %3877 = vrcp.f32 %v2146_v27 }
 0xe3d   : > { %v3824_v28 = vpop.permute.xlu1 %3823 }
 0xe3e   : > { %v3826_v29 = vunpack.i.h.bf16 %v3824_v28  ;;  %v3825_v30 = vunpack.i.l.bf16 %v3824_v28 }
 0xe40   : > { %v3754_v32 = vpack.c.bf16 %v3826_v29, %v3825_v30 }
 0xe42   : > { %3756 = vmatpush3.bf16.msk.msra.mxu1 %vm4276_vm7, %v3754_v32 }
 0xe43   : > { %3757 = vmatprep.subr.bf16.mxu1 %v3903_v3 }
 0xe44   : > { %v3878_v34 = vpop.eup %3877 }
 0xe45   : > { %v2148_v37 = vmul.f32 %v3878_v34, %v3876_v26 }
 0xe47   : > { %3635 = vmatmul.mubr.msk.f32.vlgmr.msra.gmra.mrb[14].mxu1 %vm2137_vm4, %v2148_v37 }
 0xe48   : > { %3641 = vmatprep.mubr.msk.f32.mxu1 %vm3904_vm0, %v3905_v6 }
 0xe4b   : > { %3760 = vmatpush3.bf16.xpose.msk.msra.mxu1 %vm4247_vm3, %v3758_v38 }
 0xe4c   : > { %3656 = vmatprep.subr.mxu1 %v3905_v6 }
 0xe52   : > { %3642 = vmatmul.mubr.msk.f32.vlgmr.msra.gmra.mrb[16].mxu1 %vm882_vm2, %v2231_v39 }
 0xe53   : > { %3658 = vmatprep.mubr.msk.f32.mxu1 %vm3904_vm0, %v3905_v6  ;;  %3657 = vmatpush3.msra.mxu1 %v2047_v40 }
 0xe54   : > { %3769 = vmatprep.subr.bf16.mxu1 %v3903_v3 }
 0xf1a   : > { %v2226_v41 = vpop.f32.mrb[14].mxu1 }
 0xf1b   : > { %v3636_v42 = vpop.f32.mrb[15].mxu1  ;;  %3659 = vmatmul.mubr.msk.f32.vlgmr.msra.gmra.mrb[18].mxu1 %vm882_vm2, %v2226_v41 }
 0xf1c   : > { %3672 = vmatprep.mubr.msk.f32.mxu1 %vm3904_vm0, %v3905_v6 }
 0xf25   : > { %v2308_v43 = vpop.f32.mrb[16].mxu1 }
 0xf26   : > { %v2309_v44 = vadd.f32 %v4269_v19, %v2308_v43  ;;  %v3643_v45 = vpop.f32.mrb[17].mxu1  ;;  %v2049_v43 = vld [vmem:[%s4463_s14 + $0x10] sm:$0xff] }
 0xf28   : > { %v2312_v8 = vsel %vm2137_vm4, %v2309_v44, -inf }
 0xf29   : > { %2313 = vmax.xlane.f32.xlu0 %v2312_v8 }
 0xf3f   : > { %3833 = vrot.lane.b32.xlu0 %v4251_v12, %s4510_s0 }
 0xf43   : > { %2549 = vrot.lane.b32.xlu0 %v1952_v17, %s4511_s7 }
 0xf47   : > { %3843 = vrot.lane.b32.xlu0 %v4251_v12, %s4512_s27 }
 0xf4b   : > { %2796 = vrot.lane.b32.xlu0 %v1952_v17, %s4512_s27 }
 0xfb6   : > { %v2314_v46 = vpop.xlane.xlu0 %2313 }
 0xfb7   : > { %v2315_v47 = vsub.f32 %v2309_v44, %v2314_v46 }
 0xfb9   : > { %v2316_v48 = vmul.f32 1.442695, %v2315_v47 }
 0xfba   : > { %v3834_v49 = vpop.permute.xlu0 %3833 }
 0xfbb   : > { %3879 = vpow2.f32 %v2316_v48  ;;  %v3836_v50 = vunpack.i.h.bf16 %v3834_v49  ;;  %v3835_v51 = vunpack.i.l.bf16 %v3834_v49 }
 0xfbd   : > { %v3762_v52 = vpack.c.bf16 %v3836_v50, %v3835_v51  ;;  %v2050_v51 = vld [vmem:[%s4463_s14 + $0x18] sm:$0xff] }
 0xfbe   : > { %v2550_v62 = vpop.permute.xlu0 %2549 }
 0xfbf   : > { %3764 = vmatpush3.bf16.msk.msra.mxu0 %vm4276_vm7, %v3762_v52 }
 0xfc0   : > { %3651 = vmatprep.subr.mxu0 %v3905_v6 }
 0xfc2   : > { %v3844_v5 = vpop.permute.xlu0 %3843 }
 0xfc3   : > { %v3846_v9 = vunpack.i.h.bf16 %v3844_v5  ;;  %v3845_v13 = vunpack.i.l.bf16 %v3844_v5 }
 0xfc5   : > { %v3880_v53 = vpop.eup %3879  ;;  %v3774_v14 = vpack.c.bf16 %v3846_v9, %v3845_v13  ;;  %v3083_v13 = vld [vmem:[%s4467_s18 + $0x18] sm:$0xff] }
 0xfc6   : > { %v2318_v54 = vsel %vm2137_vm4, %v3880_v53, 0.0  ;;  %v2797_v15 = vpop.permute.xlu0 %2796 }
 0xfc7   : > { %2319 = vadd.xlane.f32.xlu1 %v2318_v54 }
 0xfd8   : > { %3838 = vrot.lane.b32.xlu1 %v4251_v12, %s4511_s7 }
 0xfee   : > { %v2545_v55 = vpop.f32.mrb[18].mxu1 }
 0xfef   : > { %v3660_v56 = vpop.f32.mrb[19].mxu1 }
 0xff0   : > { %v3432_v56 = vld [vmem:[%s4464_s15] ss:$0 sm:$0xff] }
0x1054   : > { %v2320_v57 = vpop.xlane.xlu1 %2319 }
0x1055   : > { %3881 = vrcp.f32 %v2320_v57 }
0x1058   : > { %v3839_v61 = vpop.permute.xlu1 %3838 }
0x1059   : > { %v3841_v63 = vunpack.i.h.bf16 %v3839_v61  ;;  %v3840_v0 = vunpack.i.l.bf16 %v3839_v61 }
0x105b   : > { %v3766_v2 = vpack.c.bf16 %v3841_v63, %v3840_v0 }
0x105f   : > { %v3882_v58 = vpop.eup %3881 }
0x1060   : > { %v2322_v59 = vmul.f32 %v3882_v58, %v3880_v53 }
0x1062   : > { %3649 = vmatmul.mubr.msk.f32.vlgmr.msra.gmra.mrb[18].mxu0 %vm2137_vm4, %v2322_v59 }
0x1063   : > { %3652 = vmatpush3.msra.mxu0 %v2048_v60  ;;  %3653 = vmatprep.mubr.msk.f32.mxu0 %vm3904_vm0, %v3905_v6 }
0x1064   : > { %3765 = vmatprep.subr.bf16.mxu0 %v3903_v3 }
0x1135   : > { %v2399_v4 = vpop.f32.mrb[18].mxu0 }
0x1136   : > { %v3650_v7 = vpop.f32.mrb[19].mxu0  ;;  %3654 = vmatmul.mubr.msk.f32.vlgmr.msra.gmra.mrb[20].mxu0 %vm882_vm2, %v2399_v4 }
0x1137   : > { %3768 = vmatpush3.bf16.xpose.msk.msra.mxu0 %vm4247_vm3, %v3766_v2  ;;  %3665 = vmatprep.mubr.msk.f32.mxu0 %vm3904_vm0, %v3905_v6  ;;  %v3081_v7 = vld [vmem:[%s4467_s18 + $0x8] sm:$0xff] }
0x1138   : > { %3773 = vmatprep.subr.bf16.mxu0 %v3903_v3 }
0x113e   : > { %3666 = vmatmul.mubr.msk.f32.vlgmr.msra.gmra.mrb[22].mxu0 %vm882_vm2, %v2550_v62 }
0x113f   : > { %3776 = vmatpush3.bf16.xpose.msk.msra.mxu0 %vm4247_vm3, %v3774_v14  ;;  %3684 = vmatprep.mubr.msk.f32.mxu0 %vm3904_vm0, %v3905_v6 }
0x1140   : > { %3781 = vmatprep.subr.bf16.mxu0 %v3903_v3 }
0x1146   : > { %3685 = vmatmul.mubr.msk.f32.vlgmr.msra.gmra.mrb[24].mxu0 %vm882_vm2, %v2797_v15  ;;  %v3165_v15 = vld [vmem:[%s4469_s20] sm:$0xff] }
0x1147   : > { %3707 = vmatprep.mubr.msk.f32.mxu0 %vm3904_vm0, %v3905_v6 }
0x1209   : > { %v2472_v17 = vpop.f32.mrb[20].mxu0 }
0x120a   : > { %v4335_v18 = vadd.f32 %v2545_v55, %v2472_v17  ;;  %v3655_v20 = vpop.f32.mrb[21].mxu0  ;;  %v3166_v17 = vld [vmem:[%s4469_s20 + $0x8] sm:$0xff] }
0x120b   : > { %v3788_v20 = vpack.c.bf16 %v3166_v17, %v3165_v15 }
0x1211   : > { %v2627_v21 = vpop.f32.mrb[22].mxu0 }
0x1212   : > { %v2628_v22 = vadd.f32 %v4269_v19, %v2627_v21  ;;  %v3667_v10 = vpop.f32.mrb[23].mxu0  ;;  %v3168_v21 = vld [vmem:[%s4469_s20 + $0x18] sm:$0xff] }
0x1213   : > { %v3169_v10 = vld [vmem:[%s4469_s20 + $0x20] sm:$0xff] }
0x1214   : > { %v2631_v23 = vsel %vm2137_vm4, %v2628_v22, -inf }
0x1215   : > { %2632 = vmax.xlane.f32.xlu1 %v2631_v23  ;;  %v3170_v23 = vld [vmem:[%s4469_s20 + $0x28] sm:$0xff] }
0x1219   : > { %v2874_v24 = vpop.f32.mrb[24].mxu0 }
0x121a   : > { %v2875_v16 = vadd.f32 %v4269_v19, %v2874_v24  ;;  %v3686_v25 = vpop.f32.mrb[25].mxu0  ;;  %v3794_v24 = vpack.c.bf16 %v3170_v23, %v3169_v10 }
0x121c   : > { %v2878_v26 = vsel %vm2137_vm4, %v2875_v16, -inf }
0x121d   : > { %2879 = vmax.xlane.f32.xlu1 %v2878_v26 }
0x12a2   : > { %v2633_v11 = vpop.xlane.xlu1 %2632 }
0x12a3   : > { %v2634_v27 = vsub.f32 %v2628_v22, %v2633_v11 }
0x12a5   : > { %v2635_v28 = vmul.f32 1.442695, %v2634_v27  ;;  %v3433_v27 = vld [vmem:[%s4465_s16] ss:$0 sm:$0xff] }
0x12a7   : > { %3883 = vpow2.f32 %v2635_v28 }
0x12aa   : > { %v2880_v29 = vpop.xlane.xlu1 %2879 }
0x12ab   : > { %v2881_v30 = vsub.f32 %v2875_v16, %v2880_v29  ;;  %v3434_v29 = vld [vmem:[%s4466_s17] ss:$0 sm:$0xff] }
0x12ad   : > { %v2882_v32 = vmul.f32 1.442695, %v2881_v30 }
0x12af   : > { %3885 = vpow2.f32 %v2882_v32 }
0x12b1   : > { %v3884_v33 = vpop.eup %3883 }
0x12b2   : > { %v2637_v34 = vsel %vm2137_vm4, %v3884_v33, 0.0 }
0x12b3   : > { %2638 = vadd.xlane.f32.xlu0 %v2637_v34 }
0x12b9   : > { %v3886_v35 = vpop.eup %3885 }
0x12ba   : > { %v2884_v36 = vsel %vm2137_vm4, %v3886_v35, 0.0 }
0x12bb   : > { %2885 = vadd.xlane.f32.xlu1 %v2884_v36 }
0x12c9   : > { %3848 = vrot.lane.b32.xlu0 %v4251_v12, %s4513_s1 }
0x12cc   : > { %3853 = vrot.lane.b32.xlu1 %v4251_v12, %s4514_s2 }
0x1340   : > { %v2639_v19 = vpop.xlane.xlu0 %2638 }
0x1341   : > { %3887 = vrcp.f32 %v2639_v19 }
0x1344   : > { %v3849_v37 = vpop.permute.xlu0 %3848 }
0x1345   : > { %v3851_v38 = vunpack.i.h.bf16 %v3849_v37  ;;  %v3850_v39 = vunpack.i.l.bf16 %v3849_v37 }
0x1347   : > { %v3770_v40 = vpack.c.bf16 %v3851_v38, %v3850_v39  ;;  %v3437_v39 = vld [vmem:[%s4470_s21] ss:$0 sm:$0xff] }
0x1348   : > { %v2886_v12 = vpop.xlane.xlu1 %2885 }
0x1349   : > { %3772 = vmatpush3.bf16.msk.msra.mxu1 %vm4276_vm7, %v3770_v40  ;;  %3889 = vrcp.f32 %v2886_v12 }
0x134a   : > { %3675 = vmatprep.subr.mxu1 %v3905_v6 }
0x134b   : > { %v3888_v41 = vpop.eup %3887 }
0x134c   : > { %v2641_v42 = vmul.f32 %v3888_v41, %v3884_v33  ;;  %v3854_v44 = vpop.permute.xlu1 %3853  ;;  %v3172_v33 = vld [vmem:[%s4469_s20 + $0x38] sm:$0xff] }
0x134d   : > { %v3856_v45 = vunpack.i.h.bf16 %v3854_v44  ;;  %v3855_v8 = vunpack.i.l.bf16 %v3854_v44 }
0x134e   : > { %3673 = vmatmul.mubr.msk.f32.vlgmr.msra.gmra.mrb[20].mxu1 %vm2137_vm4, %v2641_v42 }
0x134f   : > { %3676 = vmatpush3.msra.mxu1 %v2049_v43  ;;  %3677 = vmatprep.mubr.msk.f32.mxu1 %vm3904_vm0, %v3905_v6  ;;  %v3778_v47 = vpack.c.bf16 %v3856_v45, %v3855_v8 }
0x1350   : > { %3777 = vmatprep.subr.bf16.mxu1 %v3903_v3 }
0x1353   : > { %v3890_v46 = vpop.eup %3889 }
0x1354   : > { %v2888_v50 = vmul.f32 %v3890_v46, %v3886_v35  ;;  %v3435_v35 = vld [vmem:[%s4468_s19] ss:$0 sm:$0xff] }
0x1421   : > { %v2718_v48 = vpop.f32.mrb[20].mxu1 }
0x1422   : > { %v3674_v49 = vpop.f32.mrb[21].mxu1  ;;  %3678 = vmatmul.mubr.msk.f32.vlgmr.msra.gmra.mrb[22].mxu1 %vm882_vm2, %v2718_v48 }
0x1423   : > { %3780 = vmatpush3.bf16.msk.msra.mxu1 %vm4276_vm7, %v3778_v47  ;;  %3691 = vmatprep.mubr.msk.f32.mxu1 %vm3904_vm0, %v3905_v6 }
0x1424   : > { %3694 = vmatprep.subr.mxu1 %v3905_v6 }
0x1426   : > { %3692 = vmatmul.mubr.msk.f32.vlgmr.msra.gmra.mrb[24].mxu1 %vm2137_vm4, %v2888_v50 }
0x1427   : > { %3696 = vmatprep.mubr.msk.f32.mxu1 %vm3904_vm0, %v3905_v6  ;;  %3695 = vmatpush3.msra.mxu1 %v2050_v51 }
0x1428   : > { %3787 = vmatprep.subr.bf16.mxu1 %v3903_v3 }
0x14f5   : > { %v2791_v31 = vpop.f32.mrb[22].mxu1 }
0x14f6   : > { %v2795_v52 = vadd.f32 %v2791_v31, %v4335_v18  ;;  %v3679_v53 = vpop.f32.mrb[23].mxu1  ;;  %v3167_v18 = vld [vmem:[%s4469_s20 + $0x10] sm:$0xff]  ;;  %v3439_v31 = vld [vmem:[%s4471_s22] ss:$0 sm:$0xff] }
0x14f7   : > { %v3791_v22 = vpack.c.bf16 %v3168_v21, %v3167_v18  ;;  %v3440_v53 = vld [vmem:[%s4472_s23] ss:$0 sm:$0xff] }
0x14f9   : > { %v2965_v54 = vpop.f32.mrb[24].mxu1 }
0x14fa   : > { %v3693_v55 = vpop.f32.mrb[25].mxu1  ;;  %3697 = vmatmul.mubr.msk.f32.vlgmr.msra.gmra.mrb[26].mxu1 %vm882_vm2, %v2965_v54 }
0x14fb   : > { %3726 = vmatprep.mubr.msk.f32.mxu1 %vm3904_vm0, %v3905_v6  ;;  %v3080_v6 = vld [vmem:[%s4467_s18] sm:$0xff]  ;;  %3789 = vmatpush3.bf16.msra.mxu1 %v3788_v20 }
0x14fc   : > { %v3782_v9 = vpack.c.bf16 %v3081_v7, %v3080_v6  ;;  %3790 = vmatprep.subr.bf16.mxu1 %v3903_v3 }
0x14fe   : > { %3783 = vmatpush3.bf16.msra.mxu0 %v3782_v9 }
0x14ff   : > { %3784 = vmatprep.subr.bf16.mxu0 %v3903_v3  ;;  %3792 = vmatpush3.bf16.msra.mxu1 %v3791_v22 }
0x1500   : > { %3793 = vmatprep.subr.bf16.mxu1 %v3903_v3 }
0x1503   : > { %3795 = vmatpush3.bf16.msra.mxu1 %v3794_v24 }
0x1504   : > { %3796 = vmatprep.subr.bf16.mxu1 %v3903_v3  ;;  %v3171_v3 = vld [vmem:[%s4469_s20 + $0x30] sm:$0xff] }
0x1505   : > { %v3797_v34 = vpack.c.bf16 %v3172_v33, %v3171_v3 }
0x1507   : > { %3798 = vmatpush3.bf16.msra.mxu1 %v3797_v34 }
0x15cd   : > { %v3038_v57 = vpop.f32.mrb[26].mxu1 }
0x15ce   : > { %v3042_v58 = vadd.f32 %v3038_v57, %v2795_v52  ;;  %v3698_v59 = vpop.f32.mrb[27].mxu1 }
0x15d0   : > { %v3049_v60 = vadd.f32 %v3432_v56, %v3042_v58 }
0x15d2   : > { %v3050_v61 = vadd.f32 %v3049_v60, %v4236_v1  ;;  %v3082_v1 = vld [vmem:[%s4467_s18 + $0x10] sm:$0xff] }
0x15d3   : > { %v3785_v14 = vpack.c.bf16 %v3083_v13, %v3082_v1 }
0x15d4   : > { %v3053_v62 = vsel %vm800_vm1, %v3050_v61, 0.0 }
0x15d5   : > { %3054 = vadd.xlane.f32.xlu0 %v3053_v62  ;;  %3786 = vmatpush3.bf16.msra.mxu0 %v3785_v14 }
0x1662   : > { %v3055_v63 = vpop.xlane.xlu0 %3054 }
0x1663   : > { %v3056_v0 = vmul.f32 0.03125, %v3055_v63 }
0x1665   : > { %v3057_v2 = vsub.f32 %v3050_v61, %v3056_v0 }
0x1667   : > { %v3058_v4 = vmul.f32 %v3057_v2, %v3057_v2 }
0x1669   : > { %v3059_v5 = vsel %vm800_vm1, %v3058_v4, 0.0 }
0x166a   : > { %3060 = vadd.xlane.f32.xlu1 %v3059_v5 }
0x16f7   : > { %v3061_v16 = vpop.xlane.xlu1 %3060 }
0x16f8   : > { %v3062_v25 = vmul.f32 0.03125, %v3061_v16 }
0x16fa   : > { %v3063_v26 = vadd.f32 1e-05, %v3062_v25 }
0x16fc   : > { %3891 = vrsqrt.f32 %v3063_v26 }
0x1706   : > { %v3892_v11 = vpop.eup %3891 }
0x1707   : > { %v3065_v28 = vmul.f32 %v3892_v11, %v3057_v2 }
0x1709   : > { %v3072_v30 = vmul.f32 %v3433_v27, %v3065_v28 }
0x170b   : > { %v3079_v32 = vadd.f32 %v3434_v29, %v3072_v30 }
0x170d   : > { %3708 = vmatmul.mubr.msk.f32.vlgmr.msra.gmra.mrb[26].mxu0 %vm800_vm1, %v3079_v32 }
0x17e0   : > { %v3160_v36 = vpop.f32.mrb[26].mxu0 }
0x17e1   : > { %v3161_v19 = vadd.f32 %v3435_v35, %v3160_v36  ;;  %v3709_v37 = vpop.f32.mrb[27].mxu0 }
0x17e3   : > { %v3164_v38 = vmax.f32 %v3161_v19, 0.0 }
0x17e5   : > { %3727 = vmatmul.mubr.msk.f32.vlgmr.msra.gmra.mrb[28].mxu1 %vm3180_vm8, %v3164_v38 }
0x18b8   : > { %v3250_v40 = vpop.f32.mrb[28].mxu1 }
0x18b9   : > { %v3251_v41 = vadd.f32 %v3437_v39, %v3250_v40  ;;  %v3728_v42 = vpop.f32.mrb[29].mxu1 }
0x18bb   : > { %v3254_v43 = vadd.f32 %v3251_v41, %v3079_v32 }
0x18bd   : > { %v3257_v12 = vsel %vm800_vm1, %v3254_v43, 0.0 }
0x18be   : > { %3258 = vadd.xlane.f32.xlu0 %v3257_v12 }
0x194b   : > { %v3259_v44 = vpop.xlane.xlu0 %3258 }
0x194c   : > { %v3260_v45 = vmul.f32 0.03125, %v3259_v44 }
0x194e   : > { %v3261_v8 = vsub.f32 %v3254_v43, %v3260_v45 }
0x1950   : > { %v3262_v46 = vmul.f32 %v3261_v8, %v3261_v8 }
0x1952   : > { %v3263_v47 = vsel %vm800_vm1, %v3262_v46, 0.0 }
0x1953   : > { %3264 = vadd.xlane.f32.xlu0 %v3263_v47 }
0x19e0   : > { %v3265_v48 = vpop.xlane.xlu0 %3264 }
0x19e1   : > { %v3266_v49 = vmul.f32 0.03125, %v3265_v48 }
0x19e3   : > { %v3267_v50 = vadd.f32 1e-05, %v3266_v49 }
0x19e5   : > { %3893 = vrsqrt.f32 %v3267_v50 }
0x19ef   : > { %v3894_v51 = vpop.eup %3893 }
0x19f0   : > { %v3269_v52 = vmul.f32 %v3894_v51, %v3261_v8 }
0x19f2   : > { %v3276_v54 = vmul.f32 %v3439_v31, %v3269_v52 }
0x19f4   : > { %v3283_v55 = vadd.f32 %v3440_v53, %v3276_v54 }
0x19f6   : > { %3284 = vst.msk [vmem:[%s783_s3] sm:$0xff] %vm800_vm1, %v3283_v55 }
0x19f7 PF: > { %s34_s5 = sadd.s32 1, %s3901_s5  }
0x19f8   : > { %p31_p4 = scmp.ge.s32.totalorder %s34_s5, 4  }
0x19fa   :  { %33 = sbr.rel (!%p31_p4) target bundleno = 10 (0xa), region = 155 }

</bundles_post_ra>
